<compile_context>
chip_gen: v6e
topology: v6e:2x2x1
jax: 0.10.0
libtpu: 0.0.40
codegen_flags: <defaults>
</compile_context>

<pallas_src>
import functools

import jax
import jax.numpy as jnp
import numpy as np
from jax.experimental import pallas as pl
from jax.experimental.pallas import tpu as pltpu


# ----------------------------- kernels ----------------------------------------


def _conv1_flow_kernel(patch_ref, w1_ref, b1_ref, fw2_ref, fb2_ref, coords_ref,
                       hmask_ref, coords_out_ref, gpad_ref, *, H, W, Ch):
    """One batch element: fused conv1 (mask+flow hidden) + full flow head.

    patch_ref  : (1, H*W, 9*Cin) bf16   im2col patch (built in the wrapper)
    w1_ref     : (9*Cin, 2*Ch)   bf16   fused conv1 weights [mask | flow]
    b1_ref     : (1, 2*Ch)       f32
    fw2_ref    : (Ch, 9*Cout)    bf16   flow conv2, all taps (col = tap*Cout+c)
    fb2_ref    : (1, Cout)       f32
    coords_ref : (1, H*W, Cout)  f32
    hmask_ref  : (1, H*W, Ch)    bf16   mask hidden (consumed by mask kernel)
    coords_out_ref : (1, H*W, Cout) f32
    gpad_ref   : VMEM (H+2, W+2, 9*Cout) f32  padded per-tap flow products
    """
    Cout = fb2_ref.shape[-1]
    NT = 9 * Cout
    HW = H * W

    # ---- fused conv1 (3x3, padding=1): one im2col matmul, K = 9*Cin ---------
    hcat = jnp.dot(patch_ref[0], w1_ref[...],
                   preferred_element_type=jnp.float32) + b1_ref[0]
    hcat = jnp.maximum(hcat, 0.0)                          # (HW, 2*Ch) f32

    # mask hidden -> HBM (bf16, lane-dense Ch=256 last dim)
    hmask_ref[0] = hcat[:, :Ch].astype(jnp.bfloat16)

    # ---- flow conv2 (3x3, padding=1): one K=Ch, N=9*Cout matmul -------------
    h_flow = hcat[:, Ch:].astype(jnp.bfloat16)             # (HW, Ch)
    g = jnp.dot(h_flow, fw2_ref[...],
                preferred_element_type=jnp.float32)        # (HW, 9*Cout)

    # zero only the 1-pixel border; interior is fully overwritten
    zrow = jnp.zeros((1, W + 2, NT), jnp.float32)
    zcol = jnp.zeros((H + 2, 1, NT), jnp.float32)
    gpad_ref[0:1, :, :] = zrow
    gpad_ref[H + 1:H + 2, :, :] = zrow
    gpad_ref[:, 0:1, :] = zcol
    gpad_ref[:, W + 1:W + 2, :] = zcol
    gpad_ref[1:H + 1, 1:W + 1, :] = g.reshape(H, W, NT)

    # 9 shift-and-adds, each picking its tap's Cout output channels
    acc = jnp.zeros((HW, Cout), jnp.float32)
    for t in range(9):
        dy, dx = t // 3, t % 3
        shifted = gpad_ref[dy:dy + H, dx:dx + W, :].reshape(HW, NT)
        acc = acc + shifted[:, t * Cout:(t + 1) * Cout]
    dflow = acc + fb2_ref[0]
    coords_out_ref[0] = (coords_ref[0] + dflow).astype(coords_out_ref.dtype)


def _mask_kernel(h_ref, w2_ref, b2_ref, out_ref):
    """Mask 1x1 head tile: (HW, Ch) @ (Ch, cm_tile), lane-dense output.

    h_ref  : (1, HW, Ch)      bf16
    w2_ref : (Ch, cm_tile)    bf16   pre-scaled by 0.25
    b2_ref : (1, cm_tile)     f32    pre-scaled by 0.25
    out_ref: (1, HW, cm_tile)
    """
    m = jnp.dot(h_ref[0], w2_ref[...], preferred_element_type=jnp.float32)
    out_ref[0] = (m + b2_ref[...]).astype(out_ref.dtype)


# ----------------------------- wrapper helpers ---------------------------------


def _vmem_budget_bytes():
    """~75% of physical per-core VMEM (64 MiB on v7x, 128 MiB on v5e/v6e)."""
    cap = 64 * 1024 * 1024  # conservative fallback (v7x-sized)
    try:
        cap = int(pltpu.get_tpu_info().vmem_capacity_bytes)
    except Exception:
        pass
    return (3 * cap) // 4


def _pick_cm_tile(cm_pad, hw, ch, out_bytes, budget):
    """Largest 128-multiple divisor of cm_pad whose per-step buffers fit budget."""
    headroom = 4 * 1024 * 1024                 # Mosaic internal scratch / misc
    fixed = hw * ch * 2 * 2                    # hidden block, bf16, 2 buffers
    best = 128
    for cand in range(128, cm_pad + 1, 128):
        if cm_pad % cand:
            continue
        need = (fixed
                + ch * cand * 2 * 2            # w2 tile, bf16, 2 buffers
                + 8 * cand * 4 * 2             # bias tile (sublane-padded)
                + hw * cand * out_bytes * 2)   # output tile, 2 buffers
        if need + headroom <= budget:
            best = cand
    return best


# ----------------------------- wrapper -----------------------------------------


def update_block_forward(imgf, coords1, params, *, mask_out_dtype=jnp.float32):
    """imgf: [N,H,W,C] (as the PyTorch module receives it, pre-permute);
    coords1: [N,2,H,W].  Returns (mask [N,2304,H,W], coords1+dflow [N,2,H,W])."""
    N, H, W, Cin = imgf.shape
    Ch = params["mask_w1"].shape[-1]            # 256
    Cm = params["mask_w2"].shape[-1]            # 16*16*9 = 2304
    Cout = params["flow_w2"].shape[-1]          # 2
    HW = H * W

    # ---- im2col patch in the wrapper (no in-kernel relayout) -----------------
    xpad = jnp.pad(imgf, ((0, 0), (1, 1), (1, 1), (0, 0)))
    cols = [xpad[:, dy:dy + H, dx:dx + W, :]
            for dy in range(3) for dx in range(3)]
    patch = jnp.concatenate(cols, axis=-1).reshape(N, HW, 9 * Cin)
    patch = patch.astype(jnp.bfloat16)

    coords_flat = jnp.transpose(coords1, (0, 2, 3, 1)).reshape(N, HW, Cout)

    # fused conv1: columns [0:Ch) = mask hidden, [Ch:2Ch) = flow hidden
    w1cat = jnp.concatenate([params["mask_w1"], params["flow_w1"]], axis=-1)
    w1cat = w1cat.reshape(9 * Cin, 2 * Ch).astype(jnp.bfloat16)
    b1cat = jnp.concatenate([params["mask_b1"], params["flow_b1"]], axis=-1)

    # flow conv2: all 9 taps as one (Ch, 9*Cout) matrix; col = tap*Cout + c
    fw2cat = jnp.transpose(params["flow_w2"].reshape(9, Ch, Cout),
                           (1, 0, 2)).reshape(Ch, 9 * Cout).astype(jnp.bfloat16)
    fb2 = params["flow_b2"]

    # mask 1x1 head: pre-scale by 0.25 (exact), pad Cm to a multiple of 128
    Cm_pad = ((Cm + 127) // 128) * 128
    mw2 = (0.25 * params["mask_w2"]).astype(jnp.bfloat16)        # (Ch, Cm)
    mb2 = (0.25 * params["mask_b2"]).reshape(1, Cm)              # (1, Cm)
    if Cm_pad != Cm:
        mw2 = jnp.pad(mw2, ((0, 0), (0, Cm_pad - Cm)))
        mb2 = jnp.pad(mb2, ((0, 0), (0, Cm_pad - Cm)))

    budget = _vmem_budget_bytes()
    out_bytes = np.dtype(mask_out_dtype).itemsize
    cm_tile = _pick_cm_tile(Cm_pad, HW, Ch, out_bytes, budget)
    g_cm = Cm_pad // cm_tile

    # ---- kernel 1: fused conv1 + flow head, grid over batch ------------------
    conv_kernel = functools.partial(_conv1_flow_kernel, H=H, W=W, Ch=Ch)
    h_mask, coords_out_flat = pl.pallas_call(
        conv_kernel,
        out_shape=(jax.ShapeDtypeStruct((N, HW, Ch), jnp.bfloat16),
                   jax.ShapeDtypeStruct((N, HW, Cout), jnp.float32)),
        grid=(N,),
        in_specs=[
            pl.BlockSpec((1, HW, 9 * Cin), lambda n: (n, 0, 0)),
            pl.BlockSpec((9 * Cin, 2 * Ch), lambda n: (0, 0)),
            pl.BlockSpec((1, 2 * Ch), lambda n: (0, 0)),
            pl.BlockSpec((Ch, 9 * Cout), lambda n: (0, 0)),
            pl.BlockSpec((1, Cout), lambda n: (0, 0)),
            pl.BlockSpec((1, HW, Cout), lambda n: (n, 0, 0)),
        ],
        out_specs=(
            pl.BlockSpec((1, HW, Ch), lambda n: (n, 0, 0)),
            pl.BlockSpec((1, HW, Cout), lambda n: (n, 0, 0)),
        ),
        scratch_shapes=[pltpu.VMEM((H + 2, W + 2, 9 * Cout), jnp.float32)],
        compiler_params=pltpu.CompilerParams(
            dimension_semantics=("parallel",),
            vmem_limit_bytes=budget),
    )(patch, w1cat, b1cat, fw2cat, fb2, coords_flat)

    # ---- kernel 2: mask 1x1 head, lane-dense cm tiles -------------------------
    mask_hwc = pl.pallas_call(
        _mask_kernel,
        out_shape=jax.ShapeDtypeStruct((N, HW, Cm_pad), mask_out_dtype),
        grid=(N, g_cm),
        in_specs=[
            pl.BlockSpec((1, HW, Ch), lambda n, c: (n, 0, 0)),
            pl.BlockSpec((Ch, cm_tile), lambda n, c: (0, c)),
            pl.BlockSpec((1, cm_tile), lambda n, c: (0, c)),
        ],
        out_specs=pl.BlockSpec((1, HW, cm_tile), lambda n, c: (n, 0, c)),
        compiler_params=pltpu.CompilerParams(
            dimension_semantics=("parallel", "parallel"),
            vmem_limit_bytes=budget),
    )(h_mask, mw2, mb2)

    # tiny NHWC -> NCHW plumbing in the wrapper
    mask = jnp.transpose(mask_hwc[:, :, :Cm].reshape(N, H, W, Cm), (0, 3, 1, 2))
    coords_out = jnp.transpose(coords_out_flat.reshape(N, H, W, Cout),
                               (0, 3, 1, 2))
    return mask, coords_out


# --------------------------- reference (pure JAX) ------------------------------


def update_block_reference(imgf, coords1, p):
    """Pure-JAX replica of the PyTorch forward, for a numerical sanity check."""
    x = jnp.transpose(imgf, (0, 3, 1, 2))  # NCHW, like imgf.permute(0,3,1,2)

    def conv(x_nchw, w_hwio, b, pad):
        y = jax.lax.conv_general_dilated(
            x_nchw, w_hwio, window_strides=(1, 1),
            padding=[(pad, pad), (pad, pad)],
            dimension_numbers=("NCHW", "HWIO", "NCHW"))
        return y + b.reshape(1, -1, 1, 1)

    # mask head
    h = jnp.maximum(conv(x, p["mask_w1"], p["mask_b1"][0], 1), 0.0)
    w2_1x1 = p["mask_w2"].reshape(1, 1, *p["mask_w2"].shape)
    mask = 0.25 * conv(h, w2_1x1, p["mask_b2"][0], 0)
    # flow head
    h2 = jnp.maximum(conv(x, p["flow_w1"], p["flow_b1"][0], 1), 0.0)
    dflow = conv(h2, p["flow_w2"], p["flow_b2"][0], 1)
    return mask, coords1 + dflow


# ----------------------------- main --------------------------------------------


def make_params(key, cin, ch=256, cm=16 * 16 * 9, cout=2):
    ks = jax.random.split(key, 8)

    def w(k, shape, fan_in):
        return (jax.random.normal(k, shape, jnp.float32) /
                jnp.sqrt(float(fan_in)))

    return {
        # flow head: conv3x3(cin->ch), conv3x3(ch->2)
        "flow_w1": w(ks[0], (3, 3, cin, ch), 9 * cin),
        "flow_b1": 0.1 * w(ks[1], (1, ch), 1),
        "flow_w2": w(ks[2], (3, 3, ch, cout), 9 * ch),
        "flow_b2": 0.1 * w(ks[3], (1, cout), 1),
        # mask head: conv3x3(cin->ch), conv1x1(ch->cm)
        "mask_w1": w(ks[4], (3, 3, cin, ch), 9 * cin),
        "mask_b1": 0.1 * w(ks[5], (1, ch), 1),
        "mask_w2": w(ks[6], (ch, cm), ch),
        "mask_b2": 0.1 * w(ks[7], (1, cm), 1),
    }


if __name__ == "__main__":
    key = jax.random.PRNGKey(0)
    k_img, k_coords, k_params = jax.random.split(key, 3)

    N, H, W, C = 2, 8, 8, 32  # small hidden_dim=32; heads keep 256 / 2304 widths
    imgf = jax.random.normal(k_img, (N, H, W, C), jnp.float32)        # NHWC
    coords1 = jax.random.normal(k_coords, (N, 2, H, W), jnp.float32)  # NCHW
    params = make_params(k_params, C)

    mask, coords_out = jax.jit(update_block_forward)(imgf, coords1, params)
    jax.block_until_ready((mask, coords_out))

    # sanity: shapes + numerics vs. a pure-JAX reference of the PyTorch forward
    assert mask.shape == (N, 16 * 16 * 9, H, W), mask.shape
    assert coords_out.shape == (N, 2, H, W), coords_out.shape
    mask_ref, coords_ref = update_block_reference(imgf, coords1, params)
    np.testing.assert_allclose(np.asarray(mask, dtype=np.float32),
                               np.asarray(mask_ref),
                               rtol=5e-2, atol=5e-2)
    np.testing.assert_allclose(np.asarray(coords_out), np.asarray(coords_ref),
                               rtol=5e-2, atol=5e-2)

    print("KERNEL_OK")
</pallas_src>

<mosaic_0001>
module attributes {stable_mosaic.version = 11 : i64} {
  func.func @_mask_kernel(%arg0: i32, %arg1: i32, %arg2: memref<1x64x256xbf16, #tpu.memory_space<vmem>>, %arg3: memref<256x2304xbf16, #tpu.memory_space<vmem>>, %arg4: memref<1x2304xf32, #tpu.memory_space<vmem>>, %arg5: memref<1x64x2304xf32, #tpu.memory_space<vmem>>) attributes {dimension_semantics = [#tpu.dimension_semantics<parallel>, #tpu.dimension_semantics<parallel>], iteration_bounds = array<i64: 2, 1>, scalar_prefetch = 0 : i64, scratch_operands = 0 : i64, tpu.core_type = #tpu.core_type<tc>, window_params = [{transform_indices = @transform_0, window_bounds = array<i64: 1, 64, 256>}, {transform_indices = @transform_1, window_bounds = array<i64: 256, 2304>}, {transform_indices = @transform_2, window_bounds = array<i64: 1, 2304>}, {transform_indices = @transform_3, window_bounds = array<i64: 1, 64, 2304>}]} {
    %c0 = arith.constant 0 : index
    %c0_0 = arith.constant 0 : index
    %c0_1 = arith.constant 0 : index
    %0 = vector.load %arg2[%c0, %c0_0, %c0_1] : memref<1x64x256xbf16, #tpu.memory_space<vmem>>, vector<1x64x256xbf16>
    %1 = vector.shape_cast %0 : vector<1x64x256xbf16> to vector<64x256xbf16>
    %c0_2 = arith.constant 0 : index
    %c0_3 = arith.constant 0 : index
    %2 = vector.load %arg3[%c0_2, %c0_3] : memref<256x2304xbf16, #tpu.memory_space<vmem>>, vector<256x2304xbf16>
    %cst = arith.constant dense<0.000000e+00> : vector<64x2304xf32>
    %3 = tpu.matmul %1, %2, %cst {dimension_numbers = #tpu.dot_dimension_numbers<[1], [0], [0], [1], [0, 0, 1, 1], [], []>} : vector<64x256xbf16>, vector<256x2304xbf16>, vector<64x2304xf32> -> vector<64x2304xf32>
    %c0_4 = arith.constant 0 : index
    %c0_5 = arith.constant 0 : index
    %4 = vector.load %arg4[%c0_4, %c0_5] : memref<1x2304xf32, #tpu.memory_space<vmem>>, vector<1x2304xf32>
    %5 = vector.broadcast %4 : vector<1x2304xf32> to vector<64x2304xf32>
    %6 = arith.addf %3, %5 : vector<64x2304xf32>
    %c0_6 = arith.constant 0 : index
    %c0_7 = arith.constant 0 : index
    %c0_8 = arith.constant 0 : index
    %7 = vector.load %arg5[%c0_6, %c0_7, %c0_8] : memref<1x64x2304xf32, #tpu.memory_space<vmem>>, vector<1x64x2304xf32>
    %8 = vector.shape_cast %7 : vector<1x64x2304xf32> to vector<64x2304xf32>
    %9 = vector.shape_cast %6 : vector<64x2304xf32> to vector<1x64x2304xf32>
    tpu.vector_store %arg5[%c0_6, %c0_7, %c0_8], %9 {strides = array<i32>} : memref<1x64x2304xf32, #tpu.memory_space<vmem>>, vector<1x64x2304xf32>,
    return
  }
  func.func @transform_0(%arg0: i32, %arg1: i32) -> (i32, i32, i32) {
    %c0_i32 = arith.constant 0 : i32
    %c0_i32_0 = arith.constant 0 : i32
    %c0_i32_1 = arith.constant 0 : i32
    return %arg0, %c0_i32, %c0_i32_0 : i32, i32, i32
  }
  func.func @transform_1(%arg0: i32, %arg1: i32) -> (i32, i32) {
    %c0_i32 = arith.constant 0 : i32
    %c0_i32_0 = arith.constant 0 : i32
    return %c0_i32, %arg1 : i32, i32
  }
  func.func @transform_2(%arg0: i32, %arg1: i32) -> (i32, i32) {
    %c0_i32 = arith.constant 0 : i32
    %c0_i32_0 = arith.constant 0 : i32
    return %c0_i32, %arg1 : i32, i32
  }
  func.func @transform_3(%arg0: i32, %arg1: i32) -> (i32, i32, i32) {
    %c0_i32 = arith.constant 0 : i32
    %c0_i32_0 = arith.constant 0 : i32
    return %arg0, %c0_i32, %arg1 : i32, i32, i32
  }
}

module attributes {stable_mosaic.version = 11 : i64} {
  func.func @_conv1_flow_kernel(%arg0: i32, %arg1: memref<1x64x288xbf16, #tpu.memory_space<vmem>>, %arg2: memref<288x512xbf16, #tpu.memory_space<vmem>>, %arg3: memref<1x512xf32, #tpu.memory_space<vmem>>, %arg4: memref<256x18xbf16, #tpu.memory_space<vmem>>, %arg5: memref<1x2xf32, #tpu.memory_space<vmem>>, %arg6: memref<1x64x2xf32, #tpu.memory_space<vmem>>, %arg7: memref<1x64x256xbf16, #tpu.memory_space<vmem>>, %arg8: memref<1x64x2xf32, #tpu.memory_space<vmem>>, %arg9: memref<10x10x18xf32, #tpu.memory_space<vmem>>) attributes {dimension_semantics = [#tpu.dimension_semantics<parallel>], iteration_bounds = array<i64: 2>, scalar_prefetch = 0 : i64, scratch_operands = 1 : i64, tpu.core_type = #tpu.core_type<tc>, window_params = [{transform_indices = @transform_0, window_bounds = array<i64: 1, 64, 288>}, {pipeline_mode = #tpu.pipeline_mode<synchronous>, transform_indices = @transform_1, window_bounds = array<i64: 288, 512>}, {pipeline_mode = #tpu.pipeline_mode<synchronous>, transform_indices = @transform_2, window_bounds = array<i64: 1, 512>}, {pipeline_mode = #tpu.pipeline_mode<synchronous>, transform_indices = @transform_3, window_bounds = array<i64: 256, 18>}, {pipeline_mode = #tpu.pipeline_mode<synchronous>, transform_indices = @transform_4, window_bounds = array<i64: 1, 2>}, {transform_indices = @transform_5, window_bounds = array<i64: 1, 64, 2>}, {transform_indices = @transform_6, window_bounds = array<i64: 1, 64, 256>}, {transform_indices = @transform_7, window_bounds = array<i64: 1, 64, 2>}]} {
    %c0 = arith.constant 0 : index
    %c0_0 = arith.constant 0 : index
    %c0_1 = arith.constant 0 : index
    %0 = vector.load %arg1[%c0, %c0_0, %c0_1] : memref<1x64x288xbf16, #tpu.memory_space<vmem>>, vector<1x64x288xbf16>
    %1 = vector.shape_cast %0 : vector<1x64x288xbf16> to vector<64x288xbf16>
    %c0_2 = arith.constant 0 : index
    %c0_3 = arith.constant 0 : index
    %2 = vector.load %arg2[%c0_2, %c0_3] : memref<288x512xbf16, #tpu.memory_space<vmem>>, vector<288x512xbf16>
    %cst = arith.constant dense<0.000000e+00> : vector<64x512xf32>
    %3 = tpu.matmul %1, %2, %cst {dimension_numbers = #tpu.dot_dimension_numbers<[1], [0], [0], [1], [0, 0, 1, 1], [], []>} : vector<64x288xbf16>, vector<288x512xbf16>, vector<64x512xf32> -> vector<64x512xf32>
    %c0_4 = arith.constant 0 : index
    %c0_5 = arith.constant 0 : index
    %4 = vector.load %arg3[%c0_4, %c0_5] : memref<1x512xf32, #tpu.memory_space<vmem>>, vector<1x512xf32>
    %5 = vector.shape_cast %4 : vector<1x512xf32> to vector<512xf32>
    %6 = vector.shape_cast %5 : vector<512xf32> to vector<1x512xf32>
    %7 = vector.broadcast %6 : vector<1x512xf32> to vector<64x512xf32>
    %8 = arith.addf %3, %7 : vector<64x512xf32>
    %cst_6 = arith.constant 0.000000e+00 : f32
    %9 = vector.broadcast %cst_6 : f32 to vector<64x512xf32>
    %10 = arith.maximumf %8, %9 : vector<64x512xf32>
    %11 = vector.extract_strided_slice %10 {offsets = [0, 0], sizes = [64, 256], strides = [1, 1]} : vector<64x512xf32> to vector<64x256xf32>
    %12 = arith.truncf %11 : vector<64x256xf32> to vector<64x256xbf16>
    %c0_7 = arith.constant 0 : index
    %c0_8 = arith.constant 0 : index
    %c0_9 = arith.constant 0 : index
    %13 = vector.load %arg7[%c0_7, %c0_8, %c0_9] : memref<1x64x256xbf16, #tpu.memory_space<vmem>>, vector<1x64x256xbf16>
    %14 = vector.shape_cast %13 : vector<1x64x256xbf16> to vector<64x256xbf16>
    %15 = vector.shape_cast %12 : vector<64x256xbf16> to vector<1x64x256xbf16>
    tpu.vector_store %arg7[%c0_7, %c0_8, %c0_9], %15 {strides = array<i32>} : memref<1x64x256xbf16, #tpu.memory_space<vmem>>, vector<1x64x256xbf16>,
    %16 = vector.extract_strided_slice %10 {offsets = [0, 256], sizes = [64, 256], strides = [1, 1]} : vector<64x512xf32> to vector<64x256xf32>
    %17 = arith.truncf %16 : vector<64x256xf32> to vector<64x256xbf16>
    %c0_10 = arith.constant 0 : index
    %c0_11 = arith.constant 0 : index
    %18 = vector.load %arg4[%c0_10, %c0_11] : memref<256x18xbf16, #tpu.memory_space<vmem>>, vector<256x18xbf16>
    %cst_12 = arith.constant dense<0.000000e+00> : vector<64x18xf32>
    %19 = tpu.matmul %17, %18, %cst_12 {dimension_numbers = #tpu.dot_dimension_numbers<[1], [0], [0], [1], [0, 0, 1, 1], [], []>} : vector<64x256xbf16>, vector<256x18xbf16>, vector<64x18xf32> -> vector<64x18xf32>
    %cst_13 = arith.constant 0.000000e+00 : f32
    %20 = vector.broadcast %cst_13 : f32 to vector<1x10x18xf32>
    %cst_14 = arith.constant 0.000000e+00 : f32
    %21 = vector.broadcast %cst_14 : f32 to vector<10x1x18xf32>
    %c0_15 = arith.constant 0 : index
    %c0_16 = arith.constant 0 : index
    %c0_17 = arith.constant 0 : index
    %22 = vector.load %arg9[%c0_15, %c0_16, %c0_17] : memref<10x10x18xf32, #tpu.memory_space<vmem>>, vector<1x10x18xf32>
    tpu.vector_store %arg9[%c0_15, %c0_16, %c0_17], %20 {strides = array<i32>} : memref<10x10x18xf32, #tpu.memory_space<vmem>>, vector<1x10x18xf32>,
    %c9 = arith.constant 9 : index
    %c0_18 = arith.constant 0 : index
    %c0_19 = arith.constant 0 : index
    %23 = vector.load %arg9[%c9, %c0_18, %c0_19] : memref<10x10x18xf32, #tpu.memory_space<vmem>>, vector<1x10x18xf32>
    tpu.vector_store %arg9[%c9, %c0_18, %c0_19], %20 {strides = array<i32>} : memref<10x10x18xf32, #tpu.memory_space<vmem>>, vector<1x10x18xf32>,
    %c0_20 = arith.constant 0 : index
    %c0_21 = arith.constant 0 : index
    %c0_22 = arith.constant 0 : index
    %24 = vector.load %arg9[%c0_20, %c0_21, %c0_22] : memref<10x10x18xf32, #tpu.memory_space<vmem>>, vector<10x1x18xf32>
    tpu.vector_store %arg9[%c0_20, %c0_21, %c0_22], %21 {strides = array<i32>} : memref<10x10x18xf32, #tpu.memory_space<vmem>>, vector<10x1x18xf32>,
    %c0_23 = arith.constant 0 : index
    %c9_24 = arith.constant 9 : index
    %c0_25 = arith.constant 0 : index
    %25 = vector.load %arg9[%c0_23, %c9_24, %c0_25] : memref<10x10x18xf32, #tpu.memory_space<vmem>>, vector<10x1x18xf32>
    tpu.vector_store %arg9[%c0_23, %c9_24, %c0_25], %21 {strides = array<i32>} : memref<10x10x18xf32, #tpu.memory_space<vmem>>, vector<10x1x18xf32>,
    %26 = vector.shape_cast %19 : vector<64x18xf32> to vector<8x8x18xf32>
    %c1 = arith.constant 1 : index
    %c1_26 = arith.constant 1 : index
    %c0_27 = arith.constant 0 : index
    %27 = vector.load %arg9[%c1, %c1_26, %c0_27] : memref<10x10x18xf32, #tpu.memory_space<vmem>>, vector<8x8x18xf32>
    tpu.vector_store %arg9[%c1, %c1_26, %c0_27], %26 {strides = array<i32>} : memref<10x10x18xf32, #tpu.memory_space<vmem>>, vector<8x8x18xf32>,
    %cst_28 = arith.constant 0.000000e+00 : f32
    %28 = vector.broadcast %cst_28 : f32 to vector<64x2xf32>
    %c0_29 = arith.constant 0 : index
    %c0_30 = arith.constant 0 : index
    %c0_31 = arith.constant 0 : index
    %29 = vector.load %arg9[%c0_29, %c0_30, %c0_31] : memref<10x10x18xf32, #tpu.memory_space<vmem>>, vector<8x8x18xf32>
    %30 = vector.shape_cast %29 : vector<8x8x18xf32> to vector<64x18xf32>
    %31 = vector.extract_strided_slice %30 {offsets = [0, 0], sizes = [64, 2], strides = [1, 1]} : vector<64x18xf32> to vector<64x2xf32>
    %32 = arith.addf %28, %31 : vector<64x2xf32>
    %c0_32 = arith.constant 0 : index
    %c1_33 = arith.constant 1 : index
    %c0_34 = arith.constant 0 : index
    %33 = vector.load %arg9[%c0_32, %c1_33, %c0_34] : memref<10x10x18xf32, #tpu.memory_space<vmem>>, vector<8x8x18xf32>
    %34 = vector.shape_cast %33 : vector<8x8x18xf32> to vector<64x18xf32>
    %35 = vector.extract_strided_slice %34 {offsets = [0, 2], sizes = [64, 2], strides = [1, 1]} : vector<64x18xf32> to vector<64x2xf32>
    %36 = arith.addf %32, %35 : vector<64x2xf32>
    %c0_35 = arith.constant 0 : index
    %c2 = arith.constant 2 : index
    %c0_36 = arith.constant 0 : index
    %37 = vector.load %arg9[%c0_35, %c2, %c0_36] : memref<10x10x18xf32, #tpu.memory_space<vmem>>, vector<8x8x18xf32>
    %38 = vector.shape_cast %37 : vector<8x8x18xf32> to vector<64x18xf32>
    %39 = vector.extract_strided_slice %38 {offsets = [0, 4], sizes = [64, 2], strides = [1, 1]} : vector<64x18xf32> to vector<64x2xf32>
    %40 = arith.addf %36, %39 : vector<64x2xf32>
    %c1_37 = arith.constant 1 : index
    %c0_38 = arith.constant 0 : index
    %c0_39 = arith.constant 0 : index
    %41 = vector.load %arg9[%c1_37, %c0_38, %c0_39] : memref<10x10x18xf32, #tpu.memory_space<vmem>>, vector<8x8x18xf32>
    %42 = vector.shape_cast %41 : vector<8x8x18xf32> to vector<64x18xf32>
    %43 = vector.extract_strided_slice %42 {offsets = [0, 6], sizes = [64, 2], strides = [1, 1]} : vector<64x18xf32> to vector<64x2xf32>
    %44 = arith.addf %40, %43 : vector<64x2xf32>
    %c1_40 = arith.constant 1 : index
    %c1_41 = arith.constant 1 : index
    %c0_42 = arith.constant 0 : index
    %45 = vector.load %arg9[%c1_40, %c1_41, %c0_42] : memref<10x10x18xf32, #tpu.memory_space<vmem>>, vector<8x8x18xf32>
    %46 = vector.shape_cast %45 : vector<8x8x18xf32> to vector<64x18xf32>
    %47 = vector.extract_strided_slice %46 {offsets = [0, 8], sizes = [64, 2], strides = [1, 1]} : vector<64x18xf32> to vector<64x2xf32>
    %48 = arith.addf %44, %47 : vector<64x2xf32>
    %c1_43 = arith.constant 1 : index
    %c2_44 = arith.constant 2 : index
    %c0_45 = arith.constant 0 : index
    %49 = vector.load %arg9[%c1_43, %c2_44, %c0_45] : memref<10x10x18xf32, #tpu.memory_space<vmem>>, vector<8x8x18xf32>
    %50 = vector.shape_cast %49 : vector<8x8x18xf32> to vector<64x18xf32>
    %51 = vector.extract_strided_slice %50 {offsets = [0, 10], sizes = [64, 2], strides = [1, 1]} : vector<64x18xf32> to vector<64x2xf32>
    %52 = arith.addf %48, %51 : vector<64x2xf32>
    %c2_46 = arith.constant 2 : index
    %c0_47 = arith.constant 0 : index
    %c0_48 = arith.constant 0 : index
    %53 = vector.load %arg9[%c2_46, %c0_47, %c0_48] : memref<10x10x18xf32, #tpu.memory_space<vmem>>, vector<8x8x18xf32>
    %54 = vector.shape_cast %53 : vector<8x8x18xf32> to vector<64x18xf32>
    %55 = vector.extract_strided_slice %54 {offsets = [0, 12], sizes = [64, 2], strides = [1, 1]} : vector<64x18xf32> to vector<64x2xf32>
    %56 = arith.addf %52, %55 : vector<64x2xf32>
    %c2_49 = arith.constant 2 : index
    %c1_50 = arith.constant 1 : index
    %c0_51 = arith.constant 0 : index
    %57 = vector.load %arg9[%c2_49, %c1_50, %c0_51] : memref<10x10x18xf32, #tpu.memory_space<vmem>>, vector<8x8x18xf32>
    %58 = vector.shape_cast %57 : vector<8x8x18xf32> to vector<64x18xf32>
    %59 = vector.extract_strided_slice %58 {offsets = [0, 14], sizes = [64, 2], strides = [1, 1]} : vector<64x18xf32> to vector<64x2xf32>
    %60 = arith.addf %56, %59 : vector<64x2xf32>
    %c2_52 = arith.constant 2 : index
    %c2_53 = arith.constant 2 : index
    %c0_54 = arith.constant 0 : index
    %61 = vector.load %arg9[%c2_52, %c2_53, %c0_54] : memref<10x10x18xf32, #tpu.memory_space<vmem>>, vector<8x8x18xf32>
    %62 = vector.shape_cast %61 : vector<8x8x18xf32> to vector<64x18xf32>
    %63 = vector.extract_strided_slice %62 {offsets = [0, 16], sizes = [64, 2], strides = [1, 1]} : vector<64x18xf32> to vector<64x2xf32>
    %64 = arith.addf %60, %63 : vector<64x2xf32>
    %c0_55 = arith.constant 0 : index
    %c0_56 = arith.constant 0 : index
    %65 = vector.load %arg5[%c0_55, %c0_56] : memref<1x2xf32, #tpu.memory_space<vmem>>, vector<1x2xf32>
    %66 = vector.shape_cast %65 : vector<1x2xf32> to vector<2xf32>
    %67 = vector.shape_cast %66 : vector<2xf32> to vector<1x2xf32>
    %68 = vector.broadcast %67 : vector<1x2xf32> to vector<64x2xf32>
    %69 = arith.addf %64, %68 : vector<64x2xf32>
    %c0_57 = arith.constant 0 : index
    %c0_58 = arith.constant 0 : index
    %c0_59 = arith.constant 0 : index
    %70 = vector.load %arg6[%c0_57, %c0_58, %c0_59] : memref<1x64x2xf32, #tpu.memory_space<vmem>>, vector<1x64x2xf32>
    %71 = vector.shape_cast %70 : vector<1x64x2xf32> to vector<64x2xf32>
    %72 = arith.addf %71, %69 : vector<64x2xf32>
    %c0_60 = arith.constant 0 : index
    %c0_61 = arith.constant 0 : index
    %c0_62 = arith.constant 0 : index
    %73 = vector.load %arg8[%c0_60, %c0_61, %c0_62] : memref<1x64x2xf32, #tpu.memory_space<vmem>>, vector<1x64x2xf32>
    %74 = vector.shape_cast %73 : vector<1x64x2xf32> to vector<64x2xf32>
    %75 = vector.shape_cast %72 : vector<64x2xf32> to vector<1x64x2xf32>
    tpu.vector_store %arg8[%c0_60, %c0_61, %c0_62], %75 {strides = array<i32>} : memref<1x64x2xf32, #tpu.memory_space<vmem>>, vector<1x64x2xf32>,
    return
  }
  func.func @transform_0(%arg0: i32) -> (i32, i32, i32) {
    %c0_i32 = arith.constant 0 : i32
    %c0_i32_0 = arith.constant 0 : i32
    %c0_i32_1 = arith.constant 0 : i32
    return %arg0, %c0_i32, %c0_i32_0 : i32, i32, i32
  }
  func.func @transform_1(%arg0: i32) -> (i32, i32) {
    %c0_i32 = arith.constant 0 : i32
    %c0_i32_0 = arith.constant 0 : i32
    %c0_i32_1 = arith.constant 0 : i32
    return %c0_i32, %c0_i32_0 : i32, i32
  }
  func.func @transform_2(%arg0: i32) -> (i32, i32) {
    %c0_i32 = arith.constant 0 : i32
    %c0_i32_0 = arith.constant 0 : i32
    %c0_i32_1 = arith.constant 0 : i32
    return %c0_i32, %c0_i32_0 : i32, i32
  }
  func.func @transform_3(%arg0: i32) -> (i32, i32) {
    %c0_i32 = arith.constant 0 : i32
    %c0_i32_0 = arith.constant 0 : i32
    %c0_i32_1 = arith.constant 0 : i32
    return %c0_i32, %c0_i32_0 : i32, i32
  }
  func.func @transform_4(%arg0: i32) -> (i32, i32) {
    %c0_i32 = arith.constant 0 : i32
    %c0_i32_0 = arith.constant 0 : i32
    %c0_i32_1 = arith.constant 0 : i32
    return %c0_i32, %c0_i32_0 : i32, i32
  }
  func.func @transform_5(%arg0: i32) -> (i32, i32, i32) {
    %c0_i32 = arith.constant 0 : i32
    %c0_i32_0 = arith.constant 0 : i32
    %c0_i32_1 = arith.constant 0 : i32
    return %arg0, %c0_i32, %c0_i32_0 : i32, i32, i32
  }
  func.func @transform_6(%arg0: i32) -> (i32, i32, i32) {
    %c0_i32 = arith.constant 0 : i32
    %c0_i32_0 = arith.constant 0 : i32
    %c0_i32_1 = arith.constant 0 : i32
    return %arg0, %c0_i32, %c0_i32_0 : i32, i32, i32
  }
  func.func @transform_7(%arg0: i32) -> (i32, i32, i32) {
    %c0_i32 = arith.constant 0 : i32
    %c0_i32_0 = arith.constant 0 : i32
    %c0_i32_1 = arith.constant 0 : i32
    return %arg0, %c0_i32, %c0_i32_0 : i32, i32, i32
  }
}

</mosaic_0001>

<bundles_post_ra>
// kernel: update_block_forward.2
= control target key start
LH: loop header
LB: loop body
LE: loop exit
PB: predicated region body
PF: predicated region fallthrough
CT: control target
= control target key end

     0   :  { %s2414_s24 = smov 0   ;;  %s3013_s0 = inlined_call_operand.vmem [shape: bf16[2,64,288], index: 0, kind: input, shape index: {}]   ;;  %s3014_s1 = inlined_call_operand.vmem [shape: bf16[288,512], index: 1, kind: input, shape index: {}]   ;;  %s3015_s2 = inlined_call_operand.vmem [shape: f32[1,512], index: 2, kind: input, shape index: {}]   ;;  %s3016_s3 = inlined_call_operand.vmem [shape: bf16[256,18], index: 3, kind: input, shape index: {}]   ;;  %s3017_s4 = inlined_call_operand.vmem [shape: f32[1,2], index: 4, kind: input, shape index: {}]   ;;  %s3018_s5 = inlined_call_operand.vmem [shape: f32[2,64,2], index: 5, kind: input, shape index: {}]   ;;  %s3019_s6 = inlined_call_operand.vmem [shape: bf16[2,64,256], index: 6, kind: output, shape index: {0}]   ;;  %s3020_s7 = inlined_call_operand.vmem [shape: f32[2,64,2], index: 7, kind: output, shape index: {1}]  }
   0x1 LB: > { %s2015_s25 = sadd.s32 4294967295, %s2362_s24   ;;  %p2019_p0 = scmp.ge.s32.totalorder %s2362_s24, 1  ;;  %s2362_s24 = sphi %s2414_s24, %s18_s24  }
   0x2   : > { %p250_p1 = scmp.lt.s32.totalorder %s2362_s24, 3 }
   0x4   : > { %p251_p2 = pnand %p2019_p0, %p250_p1 }
   0x5   : > { %p292_p3 = scmp.lt.s32.totalorder (!%p251_p2), %s2015_s25, 1  ;;  %s2367_s28 = smov (!%p251_p2), 114  }
   0x6   : > { %254 = sbr.rel (%p251_p2) target bundleno = 758 (0x2f6), region = 44  ;;  %s2368_s29 = smov (!%p251_p2), 124  }
   0x7   : > { %s2369_s30 = smov (!%p251_p2), 116   ;;  %s2370_s8 = smov (!%p251_p2), 122  }
   0x8   : > { %s2372_s9 = smov (!%p251_p2), 118   ;;  %s2373_s10 = smov (!%p251_p2), 112  }
   0xb   : > { %v2216_v0 = vld [vmem:[%s3014_s1 + $0xe4] ss:$16 sps:$4 sm:$0xff]   ;;  %v2218_v1 = vld [vmem:[%s3014_s1 + $0xe0] ss:$16 sps:$4 sm:$0xff]   ;;  %v2364_v2 = vmov 0   ;;  %s3022_s25 = smov (!%p292_p3, %s2015_s25), 1 }
   0xc   : > { %961 = vmatprep.mubr.bf16.mxu1 %v2364_v2  ;;  %856 = vmatprep.subr.bf16.mxu0 %v2216_v0  ;;  %v2219_v3 = vld [vmem:[%s3014_s1 + $0xc4] ss:$16 sps:$4 sm:$0xff]   ;;  %v2221_v4 = vld [vmem:[%s3014_s1 + $0xc0] ss:$16 sps:$4 sm:$0xff]   ;;  %s2197_s19 = smul.u32 96, %s3022_s25  ;;  %vm843_vm0 = vcmask 261120  }
   0xd   : > { %857 = vmatpush1.bf16.msra.mxu0 %v2218_v1  ;;  %v2222_v5 = vld [vmem:[%s3014_s1 + $0xa4] ss:$16 sps:$4 sm:$0xff]   ;;  %v2224_v6 = vld [vmem:[%s3014_s1 + $0xa0] ss:$16 sps:$4 sm:$0xff]   ;;  %v2243_v14 = vld [vmem:[%s3014_s1 + $0xe8] ss:$16 sps:$4 sm:$0xff]  }
   0xe   : > { %858 = vmatprep.subr.bf16.mxu0 %v2219_v3  ;;  %v2231_v7 = vld [vmem:[%s3014_s1 + $0x224] ss:$16 sps:$4 sm:$0xff]   ;;  %v2233_v8 = vld [vmem:[%s3014_s1 + $0x220] ss:$16 sps:$4 sm:$0xff]   ;;  %s2468_s11 = scalar_lea.vmem %s3013_s0, %s2197_s19  ;;  %v2245_v15 = vld [vmem:[%s3014_s1 + $0xec] ss:$16 sps:$4 sm:$0xff]  }
   0xf   : > { %v2225_v9 = vld [vmem:[%s3014_s1 + $0x84] ss:$16 sps:$4 sm:$0xff]   ;;  %941 = vmatprep.subr.bf16.mxu1 %v2231_v7  ;;  %v2239_v11 = vld [vmem:[%s3014_s1 + $0x200] ss:$16 sps:$4 sm:$0xff]   ;;  %v2252_v19 = vld [vmem:[%s3014_s1 + $0xcc] ss:$16 sps:$4 sm:$0xff]  }
  0x10   : > { %942 = vmatpush1.bf16.msra.mxu1 %v2233_v8  ;;  %v2237_v10 = vld [vmem:[%s3014_s1 + $0x204] ss:$16 sps:$4 sm:$0xff]   ;;  %v2227_v12 = vld [vmem:[%s3014_s1 + $0x80] ss:$16 sps:$4 sm:$0xff]   ;;  %v2250_v20 = vld [vmem:[%s3014_s1 + $0xc8] ss:$16 sps:$4 sm:$0xff]  }
  0x11   : > { %859 = vmatpush1.bf16.msra.mxu0 %v2221_v4  ;;  %v2228_v13 = vld [vmem:[%s3014_s1 + $0x64] ss:$16 sps:$4 sm:$0xff]   ;;  %943 = vmatprep.subr.bf16.mxu1 %v2237_v10  ;;  %v2230_v17 = vld [vmem:[%s3014_s1 + $0x60] ss:$16 sps:$4 sm:$0xff]   ;;  %v2258_v22 = vld [vmem:[%s3014_s1 + $0xac] ss:$16 sps:$4 sm:$0xff]  }
  0x12   : > { %860 = vmatprep.subr.bf16.mxu0 %v2222_v5  ;;  %v2477_v16 = vld [vmem:[%s2468_s11 + $0x8] ss:$12 sps:$4 sm:$0xff]   ;;  %v2236_v21 = vld [vmem:[%s3014_s1 + $0x40] ss:$16 sps:$4 sm:$0xff]   ;;  %v2264_v26 = vld [vmem:[%s3014_s1 + $0x8c] ss:$16 sps:$4 sm:$0xff]  }
  0x13   : > { %v2234_v18 = vld [vmem:[%s3014_s1 + $0x44] ss:$16 sps:$4 sm:$0xff]   ;;  %v2256_v24 = vld [vmem:[%s3014_s1 + $0xa8] ss:$16 sps:$4 sm:$0xff]   ;;  %v2242_v25 = vld [vmem:[%s3014_s1 + $0x20] ss:$16 sps:$4 sm:$0xff]  }
  0x14   : > { %944 = vmatpush1.bf16.msra.mxu1 %v2239_v11  ;;  %v2240_v23 = vld [vmem:[%s3014_s1 + $0x24] ss:$16 sps:$4 sm:$0xff]   ;;  %v2262_v28 = vld [vmem:[%s3014_s1 + $0x88] ss:$16 sps:$4 sm:$0xff]   ;;  %v2249_v29 = vld [vmem:[%s3014_s1] ss:$16 sps:$4 sm:$0xff]  }
  0x15   : > { %861 = vmatpush1.bf16.msra.mxu0 %v2224_v6  ;;  %1002 = vmatprep.subr.bf16.mxu1 %v2245_v15  ;;  %v2247_v27 = vld [vmem:[%s3014_s1 + $0x4] ss:$16 sps:$4 sm:$0xff]   ;;  %v2270_v30 = vld [vmem:[%s3014_s1 + $0x6c] ss:$16 sps:$4 sm:$0xff]   ;;  %v2268_v32 = vld [vmem:[%s3014_s1 + $0x68] ss:$16 sps:$4 sm:$0xff]  }
  0x16   : > { %862 = vmatprep.subr.bf16.mxu0 %v2225_v9  ;;  %v2253_v31 = vld [vmem:[%s3014_s1 + $0x1e4] ss:$16 sps:$4 sm:$0xff]   ;;  %v2255_v33 = vld [vmem:[%s3014_s1 + $0x1e0] ss:$16 sps:$4 sm:$0xff]   ;;  %v2276_v34 = vld [vmem:[%s3014_s1 + $0x4c] ss:$16 sps:$4 sm:$0xff]  }
  0x17   : > { %2111 = vmatmul.mubr.msk.bf16.vlgmr.msra.gmra.mxu1 %vm843_vm0, %v2477_v16  ;;  %v2259_v35 = vld [vmem:[%s3014_s1 + $0x1c4] ss:$16 sps:$4 sm:$0xff]   ;;  %v2274_v36 = vld [vmem:[%s3014_s1 + $0x48] ss:$16 sps:$4 sm:$0xff]   ;;  %v2261_v37 = vld [vmem:[%s3014_s1 + $0x1c0] ss:$16 sps:$4 sm:$0xff]  }
  0x18   : > { %1003 = vmatpush1.bf16.msra.mxu1 %v2243_v14  ;;  %971 = vmatprep.mubr.bf16.mxu1 %v2364_v2  ;;  %v2282_v38 = vld [vmem:[%s3014_s1 + $0x2c] ss:$16 sps:$4 sm:$0xff]   ;;  %v2265_v39 = vld [vmem:[%s3014_s1 + $0x1a4] ss:$16 sps:$4 sm:$0xff]   ;;  %v2267_v40 = vld [vmem:[%s3014_s1 + $0x1a0] ss:$16 sps:$4 sm:$0xff]  }
  0x19   : > { %863 = vmatpush1.bf16.msra.mxu0 %v2227_v12  ;;  %1004 = vmatprep.subr.bf16.mxu1 %v2252_v19  ;;  %v2280_v41 = vld [vmem:[%s3014_s1 + $0x28] ss:$16 sps:$4 sm:$0xff]   ;;  %v2288_v42 = vld [vmem:[%s3014_s1 + $0xc] ss:$16 sps:$4 sm:$0xff]   ;;  %v2303_v43 = vld [vmem:[%s2468_s11 + $0x4] ss:$12 sps:$4 sm:$0xff]  }
  0x1a   : > { %864 = vmatprep.subr.bf16.mxu0 %v2228_v13  ;;  %v2271_v44 = vld [vmem:[%s3014_s1 + $0x184] ss:$16 sps:$4 sm:$0xff]   ;;  %v2273_v45 = vld [vmem:[%s3014_s1 + $0x180] ss:$16 sps:$4 sm:$0xff]   ;;  %888 = vmatprep.mubr.bf16.mxu0 %v2303_v43  ;;  %v2286_v47 = vld [vmem:[%s3014_s1 + $0x8] ss:$16 sps:$4 sm:$0xff]  }
  0x1b   : > { %v2568_v46 = vld [vmem:[%s2468_s11 + $0x20] ss:$12 sps:$4 sm:$0xff]   ;;  %v2277_v49 = vld [vmem:[%s3014_s1 + $0x164] ss:$16 sps:$4 sm:$0xff]   ;;  %v2292_v52 = vld [vmem:[%s3014_s1 + $0x1e8] ss:$16 sps:$4 sm:$0xff]  }
  0x1c   : > { %1005 = vmatpush1.bf16.msra.mxu1 %v2250_v20  ;;  %v2294_v48 = vld [vmem:[%s3014_s1 + $0x1ec] ss:$16 sps:$4 sm:$0xff]   ;;  %v2279_v50 = vld [vmem:[%s3014_s1 + $0x160] ss:$16 sps:$4 sm:$0xff]   ;;  %v2283_v51 = vld [vmem:[%s3014_s1 + $0x144] ss:$16 sps:$4 sm:$0xff]  }
  0x1d   : > { %865 = vmatpush1.bf16.msra.mxu0 %v2230_v17  ;;  %1006 = vmatprep.subr.bf16.mxu1 %v2258_v22  ;;  %v2300_v53 = vld [vmem:[%s3014_s1 + $0x1cc] ss:$16 sps:$4 sm:$0xff]   ;;  %v2595_v54 = vld [vmem:[%s2468_s11 + $0x38] ss:$12 sps:$4 sm:$0xff]   ;;  %v2285_v55 = vld [vmem:[%s3014_s1 + $0x140] ss:$16 sps:$4 sm:$0xff]  }
  0x1e   : > { %866 = vmatprep.subr.bf16.mxu0 %v2234_v18  ;;  %v2298_v56 = vld [vmem:[%s3014_s1 + $0x1c8] ss:$16 sps:$4 sm:$0xff]   ;;  %v2310_v57 = vld [vmem:[%s3014_s1 + $0x1ac] ss:$16 sps:$4 sm:$0xff]   ;;  %v2289_v58 = vld [vmem:[%s3014_s1 + $0x124] ss:$16 sps:$4 sm:$0xff]  }
  0x1f   : > { %2112 = vmatmul.mubr.msk.bf16.gmra.mxu1 %vm843_vm0, %v2568_v46  ;;  %v2291_v59 = vld [vmem:[%s3014_s1 + $0x120] ss:$16 sps:$4 sm:$0xff]   ;;  %v2308_v60 = vld [vmem:[%s3014_s1 + $0x1a8] ss:$16 sps:$4 sm:$0xff]   ;;  %v2295_v61 = vld [vmem:[%s3014_s1 + $0x104] ss:$16 sps:$4 sm:$0xff]  }
  0x20   : > { %1007 = vmatpush1.bf16.msra.mxu1 %v2256_v24  ;;  %981 = vmatprep.mubr.bf16.mxu1 %v2364_v2  ;;  %v2313_v62 = vld [vmem:[%s3014_s1 + $0x18c] ss:$16 sps:$4 sm:$0xff]   ;;  %v2311_v63 = vld [vmem:[%s3014_s1 + $0x188] ss:$16 sps:$4 sm:$0xff]   ;;  %v2297_v1 = vld [vmem:[%s3014_s1 + $0x100] ss:$16 sps:$4 sm:$0xff]  }
  0x21   : > { %867 = vmatpush1.bf16.msra.mxu0 %v2236_v21  ;;  %1008 = vmatprep.subr.bf16.mxu1 %v2264_v26  ;;  %v2330_v0 = vld [vmem:[%s2468_s11 + $0x50] ss:$12 sps:$4 sm:$0xff]   ;;  %v2301_v5 = vld [vmem:[%s2468_s11] ss:$12 sps:$4 sm:$0xff]   ;;  %v2318_v6 = vld [vmem:[%s3014_s1 + $0x168] ss:$16 sps:$4 sm:$0xff]  }
  0x22   : > { %868 = vmatprep.subr.bf16.mxu0 %v2240_v23  ;;  %v2320_v3 = vld [vmem:[%s3014_s1 + $0x16c] ss:$16 sps:$4 sm:$0xff]   ;;  %v2304_v7 = vld [vmem:[%s3014_s1 + $0x228] ss:$16 sps:$4 sm:$0xff]   ;;  %v2324_v17 = vld [vmem:[%s2468_s11 + $0x34] ss:$12 sps:$4 sm:$0xff]  }
  0x23   : > { %v2306_v4 = vld [vmem:[%s3014_s1 + $0x22c] ss:$16 sps:$4 sm:$0xff]   ;;  %v2321_v11 = vld [vmem:[%s3014_s1 + $0x148] ss:$16 sps:$4 sm:$0xff]   ;;  %v2342_v24 = vld [vmem:[%s3016_s3 + $0x70] sm:$0xff]   ;;  %s2762_s22 = sshll.u32 %s3022_s25, 6 }
  0x24   : > { %1009 = vmatpush1.bf16.msra.mxu1 %v2262_v28  ;;  %v2314_v8 = vld [vmem:[%s2468_s11 + $0x1c] ss:$12 sps:$4 sm:$0xff]   ;;  %v2316_v14 = vld [vmem:[%s2468_s11 + $0x18] ss:$12 sps:$4 sm:$0xff]   ;;  %s2772_s27 = scalar_lea.vmem %s3019_s6, %s2762_s22  ;;  %vm1437_vm1 = vcmask 146432   ;;  %vm1439_vm2 = vcmask 140288   ;;  %s2957_s14 = scalar_lea.vmem %s3018_s5, %s2762_s22 }
  0x25   : > { %869 = vmatpush1.bf16.msra.mxu0 %v2242_v25  ;;  %1010 = vmatprep.subr.bf16.mxu1 %v2270_v30  ;;  %v2323_v9 = vld [vmem:[%s3014_s1 + $0x14c] ss:$16 sps:$4 sm:$0xff]   ;;  %v2327_v12 = vld [vmem:[%s3014_s1 + $0x208] ss:$16 sps:$4 sm:$0xff]   ;;  %v2347_v28 = vld [vmem:[%s3016_s3 + $0x20] sm:$0xff]   ;;  %vm1444_vm3 = vcmask 139264   ;;  %s2970_s19 = scalar_lea.vmem %s3020_s7, %s2762_s22 }
  0x26   : > { %870 = vmatprep.subr.bf16.mxu0 %v2247_v27  ;;  %v2329_v10 = vld [vmem:[%s3014_s1 + $0x20c] ss:$16 sps:$4 sm:$0xff]   ;;  %v2331_v15 = vld [vmem:[%s3014_s1 + $0x128] ss:$16 sps:$4 sm:$0xff]   ;;  %v2346_v27 = vld [vmem:[%s3016_s3 + $0x60] sm:$0xff]   ;;  %s2366_s25 = smov 126  }
  0x27   : > { %2113 = vmatmul.mubr.msk.bf16.gmra.mxu1 %vm843_vm0, %v2595_v54  ;;  %v2333_v13 = vld [vmem:[%s3014_s1 + $0x12c] ss:$16 sps:$4 sm:$0xff]   ;;  %v2334_v19 = vld [vmem:[%s3014_s1 + $0x108] ss:$16 sps:$4 sm:$0xff]   ;;  %vm1906_vm4 = vcmask 15360  }
  0x28   : > { %1011 = vmatpush1.bf16.msra.mxu1 %v2268_v32  ;;  %991 = vmatprep.mubr.bf16.mxu1 %v2364_v2  ;;  %v2336_v18 = vld [vmem:[%s3014_s1 + $0x10c] ss:$16 sps:$4 sm:$0xff]   ;;  %v2339_v22 = vld [vmem:[%s2468_s11 + $0x48] ss:$12 sps:$4 sm:$0xff]  }
  0x29   : > { %871 = vmatpush1.bf16.msra.mxu0 %v2249_v29  ;;  %1012 = vmatprep.subr.bf16.mxu1 %v2276_v34  ;;  %v2326_v20 = vld [vmem:[%s2468_s11 + $0x30] ss:$12 sps:$4 sm:$0xff]   ;;  %v2337_v21 = vld [vmem:[%s2468_s11 + $0x4c] ss:$12 sps:$4 sm:$0xff]   ;;  %s2371_s11 = smov 120  }
  0x2a   : > { %872 = vmatprep.subr.bf16.mxu0 %v2253_v31  ;;  %v2341_v23 = vld [vmem:[%s3016_s3 + $0x38] sm:$0xff]   ;;  %v2344_v25 = vld [vmem:[%s3016_s3 + $0x68] sm:$0xff]   ;;  %v2350_v31 = vld [vmem:[%s3016_s3 + $0x50] sm:$0xff]  }
  0x2b   : > { %v2345_v26 = vld [vmem:[%s3016_s3 + $0x28] sm:$0xff]   ;;  %v2348_v29 = vld [vmem:[%s3016_s3 + $0x58] sm:$0xff]   ;;  %v2351_v32 = vld [vmem:[%s3016_s3 + $0x10] sm:$0xff]  }
  0x2c   : > { %1013 = vmatpush1.bf16.msra.mxu1 %v2274_v36  ;;  %v2349_v30 = vld [vmem:[%s3016_s3 + $0x18] sm:$0xff]   ;;  %v2353_v34 = vld [vmem:[%s3016_s3 + $0x8] sm:$0xff]   ;;  %v2355_v36 = vld [vmem:[%s3016_s3] sm:$0xff]  }
  0x2d   : > { %873 = vmatpush2.bf16.msra.mxu0 %v2255_v33  ;;  %1014 = vmatprep.subr.bf16.mxu1 %v2282_v38  ;;  %v2352_v33 = vld [vmem:[%s3016_s3 + $0x48] sm:$0xff]  }
  0x2e   : > { %874 = vmatprep.subr.bf16.mxu0 %v2259_v35  ;;  %v2354_v35 = vld [vmem:[%s3016_s3 + $0x40] sm:$0xff]  }
  0x2f   : > { %2114 = vmatmul.mubr.msk.bf16.gmra.mxu1 %vm843_vm0, %v2330_v0 }
  0x30   : > { %1015 = vmatpush1.bf16.msra.mxu1 %v2280_v41  ;;  %1034 = vmatprep.mubr.bf16.mxu1 %v2303_v43 }
  0x31   : > { %875 = vmatpush2.bf16.msra.mxu0 %v2261_v37  ;;  %1016 = vmatprep.subr.bf16.mxu1 %v2288_v42 }
  0x32   : > { %876 = vmatprep.subr.bf16.mxu0 %v2265_v39 }
  0x34   : > { %1017 = vmatpush1.bf16.msra.mxu1 %v2286_v47 }
  0x35   : > { %877 = vmatpush2.bf16.msra.mxu0 %v2267_v40  ;;  %1018 = vmatprep.subr.bf16.mxu1 %v2294_v48 }
  0x36   : > { %878 = vmatprep.subr.bf16.mxu0 %v2271_v44 }
  0x38   : > { %1019 = vmatpush2.bf16.msra.mxu1 %v2292_v52 }
  0x39   : > { %879 = vmatpush2.bf16.msra.mxu0 %v2273_v45  ;;  %1020 = vmatprep.subr.bf16.mxu1 %v2300_v53  ;;  %v403_v45 = vlaneseq }
  0x3a   : > { %880 = vmatprep.subr.bf16.mxu0 %v2277_v49 }
  0x3b   : > { %v2736_v48 = vshrl.u32 %v403_v45, 7 }
  0x3c   : > { %1021 = vmatpush2.bf16.msra.mxu1 %v2298_v56 }
  0x3d   : > { %881 = vmatpush2.bf16.msra.mxu0 %v2279_v50  ;;  %1022 = vmatprep.subr.bf16.mxu1 %v2310_v57  ;;  %v405_v50 = vsub.s32 0, %v2736_v48  ;;  %v409_v52 = vsub.s32 1, %v2736_v48 }
  0x3e   : > { %882 = vmatprep.subr.bf16.mxu0 %v2283_v51  ;;  %v2744_v51 = vld [vmem:[%s3015_s2] sm:$0xf] }
  0x40   : > { %1023 = vmatpush2.bf16.msra.mxu1 %v2308_v60 }
  0x41   : > { %883 = vmatpush2.bf16.msra.mxu0 %v2285_v55  ;;  %1024 = vmatprep.subr.bf16.mxu1 %v2313_v62  ;;  %v2753_v55 = vrot.slane %v2744_v51, %v409_v52 }
  0x42   : > { %884 = vmatprep.subr.bf16.mxu0 %v2289_v58 }
  0x44   : > { %1025 = vmatpush2.bf16.msra.mxu1 %v2311_v63 }
  0x45   : > { %885 = vmatpush2.bf16.msra.mxu0 %v2291_v59  ;;  %1026 = vmatprep.subr.bf16.mxu1 %v2320_v3 }
  0x46   : > { %886 = vmatprep.subr.bf16.mxu0 %v2295_v61 }
  0x48   : > { %1027 = vmatpush2.bf16.msra.mxu1 %v2318_v6 }
  0x49   : > { %887 = vmatpush2.bf16.msra.mxu0 %v2297_v1  ;;  %1028 = vmatprep.subr.bf16.mxu1 %v2323_v9 }
  0x4a   : > { %1087 = vmatprep.subr.bf16.mxu0 %v2306_v4 }
  0x4c   : > { %889 = vmatmul.mubr.bf16.vlgmr.msra.gmra.mxu0 %v2301_v5  ;;  %1029 = vmatpush2.bf16.msra.mxu1 %v2321_v11 }
  0x4d   : > { %1088 = vmatpush1.bf16.msra.mxu0 %v2304_v7  ;;  %898 = vmatprep.mubr.bf16.mxu0 %v2314_v8 }
  0x4e   : > { %1089 = vmatprep.subr.bf16.mxu0 %v2329_v10  ;;  %1030 = vmatprep.subr.bf16.mxu1 %v2333_v13 }
  0x50   : > { %1031 = vmatpush2.bf16.msra.mxu1 %v2331_v15 }
  0x51   : > { %1090 = vmatpush1.bf16.msra.mxu0 %v2327_v12  ;;  %1032 = vmatprep.subr.bf16.mxu1 %v2336_v18 }
  0x54   : > { %899 = vmatmul.mubr.bf16.gmra.mxu0 %v2316_v14  ;;  %1033 = vmatpush2.bf16.msra.mxu1 %v2334_v19 }
  0x55   : > { %908 = vmatprep.mubr.bf16.mxu0 %v2324_v17 }
  0x57   : > { %1035 = vmatmul.mubr.bf16.vlgmr.msra.gmra.mxu1 %v2301_v5 }
  0x58   : > { %1044 = vmatprep.mubr.bf16.mxu1 %v2314_v8 }
  0x5c   : > { %909 = vmatmul.mubr.bf16.gmra.mxu0 %v2326_v20 }
  0x5d   : > { %918 = vmatprep.mubr.bf16.mxu0 %v2337_v21 }
  0x5f   : > { %1045 = vmatmul.mubr.bf16.gmra.mxu1 %v2316_v14 }
  0x60   : > { %1054 = vmatprep.mubr.bf16.mxu1 %v2324_v17 }
  0x64   : > { %919 = vmatmul.mubr.bf16.gmra.mxu0 %v2339_v22 }
  0x65   : > { %1107 = vmatprep.mubr.bf16.mxu0 %v2364_v2 }
  0x67   : > { %1055 = vmatmul.mubr.bf16.gmra.mxu1 %v2326_v20 }
  0x68   : > { %1064 = vmatprep.mubr.bf16.mxu1 %v2337_v21 }
  0x6c   : > { %2115 = vmatmul.mubr.msk.bf16.vlgmr.msra.gmra.mxu0 %vm843_vm0, %v2477_v16  ;;  %v2340_v16 = vld [vmem:[%s3016_s3 + $0x78] sm:$0xff]  }
  0x6d   : > { %1117 = vmatprep.mubr.bf16.mxu0 %v2364_v2  ;;  %2157 = vmatprep.subr.bf16.mxu1 %v2340_v16 }
  0x6e   : > { %2158 = vmatpush3.bf16.msra.mxu1 %v2341_v23 }
  0x6f   : > { %1065 = vmatmul.mubr.bf16.gmra.mxu1 %v2339_v22  ;;  %2159 = vmatprep.subr.bf16.mxu1 %v2342_v24 }
  0x74   : > { %2116 = vmatmul.mubr.msk.bf16.gmra.mxu0 %vm843_vm0, %v2568_v46 }
  0x75   : > { %1127 = vmatprep.mubr.bf16.mxu0 %v2364_v2 }
  0x7c   : > { %2117 = vmatmul.mubr.msk.bf16.gmra.mxu0 %vm843_vm0, %v2595_v54  ;;  %v2750_v54 = vrot.slane %v2744_v51, %v405_v50 }
  0x7d   : > { %1137 = vmatprep.mubr.bf16.mxu0 %v2364_v2  ;;  %v2343_v2 = vld [vmem:[%s3016_s3 + $0x30] sm:$0xff]  }
  0x7e   : > { %2160 = vmatpush3.bf16.msra.mxu1 %v2343_v2 }
  0x7f   : > { %2161 = vmatprep.subr.bf16.mxu1 %v2344_v25 }
  0x82   : > { %2162 = vmatpush3.bf16.msra.mxu1 %v2345_v26 }
  0x83   : > { %2163 = vmatprep.subr.bf16.mxu1 %v2346_v27 }
  0x84   : > { %2118 = vmatmul.mubr.msk.bf16.gmra.mxu0 %vm843_vm0, %v2330_v0 }
  0x86   : > { %2164 = vmatpush3.bf16.msra.mxu1 %v2347_v28 }
  0x87   : > { %2165 = vmatprep.subr.bf16.mxu1 %v2348_v29 }
  0x8a   : > { %2166 = vmatpush3.bf16.msra.mxu1 %v2349_v30 }
  0x8b   : > { %2167 = vmatprep.subr.bf16.mxu1 %v2350_v31 }
  0x8e   : > { %2168 = vmatpush3.bf16.msra.mxu1 %v2351_v32 }
  0x8f   : > { %2169 = vmatprep.subr.bf16.mxu1 %v2352_v33 }
  0x92   : > { %2170 = vmatpush3.bf16.msra.mxu1 %v2353_v34 }
  0x93   : > { %2171 = vmatprep.subr.bf16.mxu1 %v2354_v35 }
  0x96   : > { %2172 = vmatpush3.bf16.msra.mxu1 %v2355_v36 }
  0xd7   : > { %v963_v37 = vpop.f32.mrf.mxu1 }
  0xd9   : > { %v965_v38 = vpop.f32.mrf.mxu1 }
  0xdb   : > { %v967_v39 = vpop.f32.mrf.mxu1 }
  0xdd   : > { %v969_v40 = vpop.f32.mrf.mxu1 }
  0xdf   : > { %v973_v41 = vpop.f32.mrf.mxu1 }
  0xe1   : > { %v975_v42 = vpop.f32.mrf.mxu1 }
  0xe3   : > { %v977_v43 = vpop.f32.mrf.mxu1 }
  0xe5   : > { %v979_v44 = vpop.f32.mrf.mxu1 }
  0xe7   : > { %v983_v46 = vpop.f32.mrf.mxu1 }
  0xe9   : > { %v2734_v47 = vpop.f32.mrf.mxu1 }
  0xeb   : > { %v2738_v49 = vpop.f32.mrf.mxu1 }
  0xed   : > { %v2747_v53 = vpop.f32.mrf.mxu1 }
  0xef   : > { %v2755_v56 = vpop.f32.mrf.mxu1 }
  0xf1   : > { %v2759_v62 = vpop.f32.mrf.mxu1 }
  0xf3   : > { %v2766_v8 = vpop.f32.mrf.mxu1 }
  0xf5   : > { %v2777_v19 = vpop.f32.mrf.mxu1 }
 0x10c   : > { %v890_v57 = vpop.f32.mrf.mxu0 }
 0x10d   : > { %v891_v58 = vadd.f32 %v890_v57, %v2750_v54 }
 0x10e   : > { %v892_v59 = vpop.f32.mrf.mxu0 }
 0x10f   : > { %v964_v60 = vadd.f32 %v963_v37, %v891_v58  ;;  %v893_v61 = vadd.f32 %v892_v59, %v2753_v55 }
 0x110   : > { %v894_v63 = vpop.f32.mrf.mxu0 }
 0x111   : > { %v966_v0 = vadd.f32 %v965_v38, %v893_v61  ;;  %v895_v1 = vadd.f32 %v894_v63, %v2750_v54  ;;  %v1148_v4 = vmax.f32 %v964_v60, 0.0  ;;  %v413_v63 = vsub.s32 2, %v2736_v48 }
 0x112   : > { %v896_v3 = vpop.f32.mrf.mxu0 }
 0x113   : > { %v1149_v5 = vmax.f32 %v966_v0, 0.0  ;;  %v968_v6 = vadd.f32 %v967_v39, %v895_v1  ;;  %v897_v7 = vadd.f32 %v896_v3, %v2753_v55  ;;  %v417_v1 = vsub.s32 3, %v2736_v48 }
 0x114   : > { %v900_v9 = vpop.f32.mrf.mxu0 }
 0x115   : > { %v2149_v10 = vpack.c.bf16 %v1149_v5, %v1148_v4  ;;  %v970_v11 = vadd.f32 %v969_v40, %v897_v7  ;;  %v901_v12 = vadd.f32 %v900_v9, %v2750_v54  ;;  %v1152_v14 = vmax.f32 %v968_v6, 0.0 }
 0x116   : > { %v902_v13 = vpop.f32.mrf.mxu0  ;;  %v2803_v48 = vrot.slane %v2744_v51, %v417_v1 }
 0x117   : > { %1228 = vst [vmem:[%s2772_s27] sm:$0xff] %v2149_v10  ;;  %v1153_v15 = vmax.f32 %v970_v11, 0.0  ;;  %v974_v17 = vadd.f32 %v973_v41, %v901_v12  ;;  %v903_v18 = vadd.f32 %v902_v13, %v2753_v55  ;;  %v1036_v27 = vpop.f32.mrf.mxu1  ;;  %v2800_v12 = vrot.slane %v2744_v51, %v413_v63 }
 0x118   : > { %v904_v20 = vpop.f32.mrf.mxu0 }
 0x119   : > { %v2150_v21 = vpack.c.bf16 %v1153_v15, %v1152_v14  ;;  %v976_v22 = vadd.f32 %v975_v42, %v903_v18  ;;  %v905_v16 = vadd.f32 %v904_v20, %v2750_v54  ;;  %v1156_v24 = vmax.f32 %v974_v17, 0.0  ;;  %v1038_v32 = vpop.f32.mrf.mxu1 }
 0x11a   : > { %v906_v23 = vpop.f32.mrf.mxu0  ;;  %v1039_v51 = vadd.f32 %v1038_v32, %v2803_v48 }
 0x11b   : > { %1229 = vst [vmem:[%s2772_s27 + $0x8] sm:$0xff] %v2150_v21  ;;  %v1157_v2 = vmax.f32 %v976_v22, 0.0  ;;  %v978_v25 = vadd.f32 %v977_v43, %v905_v16  ;;  %v907_v26 = vadd.f32 %v906_v23, %v2753_v55  ;;  %v1040_v38 = vpop.f32.mrf.mxu1  ;;  %v1037_v21 = vadd.f32 %v1036_v27, %v2800_v12 }
 0x11c   : > { %v910_v28 = vpop.f32.mrf.mxu0 }
 0x11d   : > { %v2151_v29 = vpack.c.bf16 %v1157_v2, %v1156_v24  ;;  %v980_v30 = vadd.f32 %v979_v44, %v907_v26  ;;  %v911_v31 = vadd.f32 %v910_v28, %v2750_v54  ;;  %v1160_v34 = vmax.f32 %v978_v25, 0.0  ;;  %v1042_v43 = vpop.f32.mrf.mxu1 }
 0x11e   : > { %v912_v33 = vpop.f32.mrf.mxu0  ;;  %v1041_v24 = vadd.f32 %v1040_v38, %v2800_v12 }
 0x11f   : > { %1230 = vst [vmem:[%s2772_s27 + $0x10] sm:$0xff] %v2151_v29  ;;  %v1161_v35 = vmax.f32 %v980_v30, 0.0  ;;  %v984_v36 = vadd.f32 %v983_v46, %v911_v31  ;;  %v913_v37 = vadd.f32 %v912_v33, %v2753_v55  ;;  %v1046_v46 = vpop.f32.mrf.mxu1 }
 0x120   : > { %v914_v39 = vpop.f32.mrf.mxu0 }
 0x121   : > { %v2152_v40 = vpack.c.bf16 %v1161_v35, %v1160_v34  ;;  %v986_v41 = vadd.f32 %v2734_v47, %v913_v37  ;;  %v915_v42 = vadd.f32 %v914_v39, %v2750_v54  ;;  %v1164_v45 = vmax.f32 %v984_v36, 0.0  ;;  %v1048_v47 = vpop.f32.mrf.mxu1 }
 0x122   : > { %v916_v44 = vpop.f32.mrf.mxu0  ;;  %v1049_v33 = vadd.f32 %v1048_v47, %v2803_v48 }
 0x123   : > { %1231 = vst [vmem:[%s2772_s27 + $0x18] sm:$0xff] %v2152_v40  ;;  %v1165_v50 = vmax.f32 %v986_v41, 0.0  ;;  %v988_v52 = vadd.f32 %v2738_v49, %v915_v42  ;;  %v917_v57 = vadd.f32 %v916_v44, %v2753_v55  ;;  %v1050_v6 = vpop.f32.mrf.mxu1 }
 0x124   : > { %v920_v58 = vpop.f32.mrf.mxu0  ;;  %v1051_v37 = vadd.f32 %v1050_v6, %v2800_v12 }
 0x125   : > { %v2153_v59 = vpack.c.bf16 %v1165_v50, %v1164_v45  ;;  %v990_v60 = vadd.f32 %v2747_v53, %v917_v57  ;;  %v921_v61 = vadd.f32 %v920_v58, %v2750_v54  ;;  %v1168_v3 = vmax.f32 %v988_v52, 0.0  ;;  %v1052_v11 = vpop.f32.mrf.mxu1 }
 0x126   : > { %v922_v0 = vpop.f32.mrf.mxu0  ;;  %v1053_v44 = vadd.f32 %v1052_v11, %v2803_v48 }
 0x127   : > { %1232 = vst [vmem:[%s2772_s27 + $0x20] sm:$0xff] %v2153_v59  ;;  %v1169_v4 = vmax.f32 %v990_v60, 0.0  ;;  %v994_v49 = vadd.f32 %v2755_v56, %v921_v61  ;;  %v923_v5 = vadd.f32 %v922_v0, %v2753_v55  ;;  %v1056_v18 = vpop.f32.mrf.mxu1 }
 0x128   : > { %v924_v7 = vpop.f32.mrf.mxu0  ;;  %v1057_v59 = vadd.f32 %v1056_v18, %v2800_v12 }
 0x129   : > { %v2154_v9 = vpack.c.bf16 %v1169_v4, %v1168_v3  ;;  %v996_v53 = vadd.f32 %v2759_v62, %v923_v5  ;;  %v925_v10 = vadd.f32 %v924_v7, %v2750_v54  ;;  %v1172_v56 = vmax.f32 %v994_v49, 0.0  ;;  %v1058_v16 = vpop.f32.mrf.mxu1 }
 0x12a   : > { %v926_v13 = vpop.f32.mrf.mxu0  ;;  %v1059_v63 = vadd.f32 %v1058_v16, %v2803_v48 }
 0x12b   : > { %1233 = vst [vmem:[%s2772_s27 + $0x28] sm:$0xff] %v2154_v9  ;;  %v1173_v14 = vmax.f32 %v996_v53, 0.0  ;;  %v998_v15 = vadd.f32 %v2766_v8, %v925_v10  ;;  %v927_v17 = vadd.f32 %v926_v13, %v2753_v55  ;;  %v1043_v55 = vadd.f32 %v1042_v43, %v2803_v48  ;;  %v1060_v30 = vpop.f32.mrf.mxu1 }
 0x12c   : > { %v1109_v62 = vpop.f32.mrf.mxu0  ;;  %v1061_v4 = vadd.f32 %v1060_v30, %v2800_v12 }
 0x12d   : > { %v2155_v20 = vpack.c.bf16 %v1173_v14, %v1172_v56  ;;  %v1000_v54 = vadd.f32 %v2777_v19, %v927_v17  ;;  %v1176_v23 = vmax.f32 %v998_v15, 0.0  ;;  %v1110_v29 = vadd.f32 %v1109_v62, %v1037_v21  ;;  %v1062_v41 = vpop.f32.mrf.mxu1 }
 0x12e   : > { %v1111_v22 = vpop.f32.mrf.mxu0  ;;  %v1047_v19 = vadd.f32 %v1046_v46, %v2800_v12  ;;  %v1063_v53 = vadd.f32 %v1062_v41, %v2803_v48 }
 0x12f   : > { %1234 = vst [vmem:[%s2772_s27 + $0x30] sm:$0xff] %v2155_v20  ;;  %v1177_v2 = vmax.f32 %v1000_v54, 0.0  ;;  %v1112_v26 = vadd.f32 %v1111_v22, %v1039_v51  ;;  %v1150_v38 = vmax.f32 %v1110_v29, 0.0  ;;  %v1066_v52 = vpop.f32.mrf.mxu1 }
 0x130   : > { %v1113_v8 = vpop.f32.mrf.mxu0  ;;  %v1067_v15 = vadd.f32 %v1066_v52, %v2800_v12 }
 0x131   : > { %v2156_v25 = vpack.c.bf16 %v1177_v2, %v1176_v23  ;;  %v1114_v28 = vadd.f32 %v1113_v8, %v1041_v24  ;;  %v1151_v35 = vmax.f32 %v1112_v26, 0.0  ;;  %v1068_v1 = vpop.f32.mrf.mxu1 }
 0x132   : > { %v1115_v27 = vpop.f32.mrf.mxu0  ;;  %v1069_v20 = vadd.f32 %v1068_v1, %v2803_v48 }
 0x133   : > { %1235 = vst [vmem:[%s2772_s27 + $0x38] sm:$0xff] %v2156_v25  ;;  %v1116_v31 = vadd.f32 %v1115_v27, %v1043_v55  ;;  %v1154_v32 = vmax.f32 %v1114_v28, 0.0  ;;  %v1070_v11 = vpop.f32.mrf.mxu1 }
 0x134   : > { %v1119_v34 = vpop.f32.mrf.mxu0  ;;  %v1071_v16 = vadd.f32 %v1070_v11, %v2800_v12  ;;  %v2365_v12 = vmov 0.0  }
 0x135   : > { %v1155_v36 = vmax.f32 %v1116_v31, 0.0  ;;  %v1120_v39 = vadd.f32 %v1119_v34, %v1047_v19  ;;  %v1236_v45 = vpack.c.bf16 %v1154_v32, %v1150_v38  ;;  %v1072_v21 = vpop.f32.mrf.mxu1  ;;  %1438 = vst.msk [vmem:[#allocation2] sm:$0xff] %vm1437_vm1, %v2365_v12  ;;  %1442 = vst.msk [vmem:[#allocation2 + $0x90] sm:$0xff] %vm1437_vm1, %v2365_v12 }
 0x136   : > { %v1121_v40 = vpop.f32.mrf.mxu0  ;;  %v1073_v25 = vadd.f32 %v1072_v21, %v2803_v48  ;;  %1440 = vst.msk [vmem:[#allocation2 + $0x8] sm:$0x3] %vm1439_vm2, %v2365_v12  ;;  %1443 = vst.msk [vmem:[#allocation2 + $0x98] sm:$0x3] %vm1439_vm2, %v2365_v12 }
 0x137   : > { %v1237_v42 = vpack.c.bf16 %v1155_v36, %v1151_v35  ;;  %v1122_v43 = vadd.f32 %v1121_v40, %v1049_v33  ;;  %v1158_v46 = vmax.f32 %v1120_v39, 0.0  ;;  %1455 = vst.msk [vmem:[#allocation2 + $0x9] sm:$0x1] %vm1444_vm3, %v2365_v12  ;;  %1445 = vst.msk [vmem:[#allocation2] sm:$0x1] %vm1444_vm3, %v2365_v12 }
 0x138   : > { %v1123_v50 = vpop.f32.mrf.mxu0  ;;  %1446 = vst.msk [vmem:[#allocation2 + $0x10] sm:$0x1] %vm1444_vm3, %v2365_v12  ;;  %1447 = vst.msk [vmem:[#allocation2 + $0x20] sm:$0x1] %vm1444_vm3, %v2365_v12 }
 0x139   : > { %v1124_v57 = vadd.f32 %v1123_v50, %v1051_v37  ;;  %1404 = vmatprep.mubr.bf16.mxu1 %v1237_v42  ;;  %v1159_v60 = vmax.f32 %v1122_v43, 0.0  ;;  %1448 = vst.msk [vmem:[#allocation2 + $0x30] sm:$0x1] %vm1444_vm3, %v2365_v12  ;;  %1449 = vst.msk [vmem:[#allocation2 + $0x40] sm:$0x1] %vm1444_vm3, %v2365_v12 }
 0x13a   : > { %v1125_v58 = vpop.f32.mrf.mxu0  ;;  %1405 = vmatmul.mubr.bf16.vlgmr.msra.gmra.mxu1 %v1236_v45  ;;  %1450 = vst.msk [vmem:[#allocation2 + $0x50] sm:$0x1] %vm1444_vm3, %v2365_v12  ;;  %1451 = vst.msk [vmem:[#allocation2 + $0x60] sm:$0x1] %vm1444_vm3, %v2365_v12 }
 0x13b   : > { %v1162_v61 = vmax.f32 %v1124_v57, 0.0  ;;  %v1126_v47 = vadd.f32 %v1125_v58, %v1053_v44  ;;  %1452 = vst.msk [vmem:[#allocation2 + $0x70] sm:$0x1] %vm1444_vm3, %v2365_v12  ;;  %1453 = vst.msk [vmem:[#allocation2 + $0x80] sm:$0x1] %vm1444_vm3, %v2365_v12 }
 0x13c   : > { %v1129_v0 = vpop.f32.mrf.mxu0  ;;  %1454 = vst.msk [vmem:[#allocation2 + $0x90] sm:$0x1] %vm1444_vm3, %v2365_v12  ;;  %1456 = vst.msk [vmem:[#allocation2 + $0x19] sm:$0x1] %vm1444_vm3, %v2365_v12 }
 0x13d   : > { %v1163_v3 = vmax.f32 %v1126_v47, 0.0  ;;  %v1238_v49 = vpack.c.bf16 %v1162_v61, %v1158_v46  ;;  %v1130_v5 = vadd.f32 %v1129_v0, %v1057_v59  ;;  %1457 = vst.msk [vmem:[#allocation2 + $0x29] sm:$0x1] %vm1444_vm3, %v2365_v12  ;;  %1458 = vst.msk [vmem:[#allocation2 + $0x39] sm:$0x1] %vm1444_vm3, %v2365_v12  ;;  %v1490_v48 = vld [vmem:[#allocation2 + $0x1] sm:$0xff] }
 0x13e   : > { %v1131_v6 = vpop.f32.mrf.mxu0  ;;  %1459 = vst.msk [vmem:[#allocation2 + $0x49] sm:$0x1] %vm1444_vm3, %v2365_v12  ;;  %1460 = vst.msk [vmem:[#allocation2 + $0x59] sm:$0x1] %vm1444_vm3, %v2365_v12  ;;  %1506 = vrot.lane.b32.xlu0 %v1490_v48, %s2366_s25  ;;  %v1786_v34 = vld [vmem:[#allocation2 + $0x91] sm:$0xff]  ;;  %v1538_v35 = vld [vmem:[#allocation2 + $0x2] sm:$0xff] }
 0x13f   : > { %v1239_v7 = vpack.c.bf16 %v1163_v3, %v1159_v60  ;;  %v1132_v9 = vadd.f32 %v1131_v6, %v1059_v63  ;;  %v1166_v56 = vmax.f32 %v1130_v5, 0.0  ;;  %1461 = vst.msk [vmem:[#allocation2 + $0x69] sm:$0x1] %vm1444_vm3, %v2365_v12  ;;  %1462 = vst.msk [vmem:[#allocation2 + $0x79] sm:$0x1] %vm1444_vm3, %v2365_v12  ;;  %1809 = vrot.lane.b32.xlu1 %v1786_v34, %s2367_s28 }
 0x140   : > { %v1133_v10 = vpop.f32.mrf.mxu0  ;;  %1463 = vst.msk [vmem:[#allocation2 + $0x89] sm:$0x1] %vm1444_vm3, %v2365_v12  ;;  %1464 = vst.msk [vmem:[#allocation2 + $0x99] sm:$0x1] %vm1444_vm3, %v2365_v12  ;;  %v1474_v12 = vld [vmem:[#allocation2] sm:$0xff] }
 0x141   : > { %1412 = vmatprep.mubr.bf16.mxu1 %v1239_v7  ;;  %v1134_v13 = vadd.f32 %v1133_v10, %v1061_v4  ;;  %v1167_v17 = vmax.f32 %v1132_v9, 0.0 }
 0x142   : > { %1413 = vmatmul.mubr.bf16.gmra.mxu1 %v1238_v49  ;;  %v1135_v14 = vpop.f32.mrf.mxu0  ;;  %1554 = vrot.lane.b32.xlu0 %v1538_v35, %s2368_s29 }
 0x143   : > { %v1170_v18 = vmax.f32 %v1134_v13, 0.0  ;;  %v1136_v62 = vadd.f32 %v1135_v14, %v1063_v53  ;;  %v1738_v36 = vld [vmem:[#allocation2 + $0x90] sm:$0xff] }
 0x144   : > { %v1139_v54 = vpop.f32.mrf.mxu0  ;;  %1761 = vrot.lane.b32.xlu1 %v1738_v36, %s2369_s30 }
 0x145   : > { %v1171_v22 = vmax.f32 %v1136_v62, 0.0  ;;  %v1240_v51 = vpack.c.bf16 %v1170_v18, %v1166_v56  ;;  %v1140_v23 = vadd.f32 %v1139_v54, %v1067_v15 }
 0x146   : > { %v1141_v24 = vpop.f32.mrf.mxu0 }
 0x147   : > { %v1241_v2 = vpack.c.bf16 %v1171_v22, %v1167_v17  ;;  %v1142_v8 = vadd.f32 %v1141_v24, %v1069_v20  ;;  %v1174_v28 = vmax.f32 %v1140_v23, 0.0 }
 0x148   : > { %v1143_v55 = vpop.f32.mrf.mxu0 }
 0x149   : > { %1420 = vmatprep.mubr.bf16.mxu1 %v1241_v2  ;;  %v1144_v26 = vadd.f32 %v1143_v55, %v1071_v16  ;;  %v1175_v19 = vmax.f32 %v1142_v8, 0.0 }
 0x14a   : > { %1421 = vmatmul.mubr.bf16.gmra.mxu1 %v1240_v51  ;;  %v1145_v29 = vpop.f32.mrf.mxu0 }
 0x14b   : > { %v1178_v27 = vmax.f32 %v1144_v26, 0.0  ;;  %v1146_v30 = vadd.f32 %v1145_v29, %v1073_v25  ;;  %v1834_v29 = vld [vmem:[#allocation2 + $0x92] sm:$0xff] }
 0x14d   : > { %v1179_v31 = vmax.f32 %v1146_v30, 0.0  ;;  %v1242_v33 = vpack.c.bf16 %v1178_v27, %v1174_v28 }
 0x14f   : > { %v1243_v32 = vpack.c.bf16 %v1179_v31, %v1175_v19 }
 0x151   : > { %1428 = vmatprep.mubr.bf16.mxu1 %v1243_v32 }
 0x152   : > { %1429 = vmatmul.mubr.bf16.gmra.mxu1 %v1242_v33 }
 0x1b0   : > { %v1507_v25 = vpop.permute.xlu0 %1506 }
 0x1b1   : > { %v2940_v2 = vpop.permute.xlu1 %1809  ;;  %v1530_v35 = vadd.f32 %v1507_v25, %v1474_v12 }
 0x1b4   : > { %v1555_v28 = vpop.permute.xlu0 %1554 }
 0x1b6   : > { %v2946_v26 = vpop.permute.xlu1 %1761 }
 0x1fa   : > { %v2173_v37 = vpop.f32.mrf.mxu1 }
 0x1fc   : > { %v2174_v38 = vpop.f32.mrf.mxu1 }
 0x1fd   : > { %v2175_v39 = vadd.f32 %v2174_v38, %v2173_v37  ;;  %v1578_v38 = vadd.f32 %v1555_v28, %v1530_v35 }
 0x1fe   : > { %v2176_v40 = vpop.f32.mrf.mxu1 }
 0x1ff   : > { %1466 = vst.msk [vmem:[#allocation2 + $0x11] sm:$0xff] %vm1437_vm1, %v2175_v39 }
 0x200   : > { %v2177_v41 = vpop.f32.mrf.mxu1 }
 0x201   : > { %v2178_v42 = vadd.f32 %v2177_v41, %v2176_v40 }
 0x202   : > { %v2179_v43 = vpop.f32.mrf.mxu1 }
 0x203   : > { %1467 = vst.msk [vmem:[#allocation2 + $0x21] sm:$0xff] %vm1437_vm1, %v2178_v42 }
 0x204   : > { %v2180_v44 = vpop.f32.mrf.mxu1 }
 0x205   : > { %v2181_v45 = vadd.f32 %v2180_v44, %v2179_v43 }
 0x206   : > { %v2182_v50 = vpop.f32.mrf.mxu1  ;;  %v1539_v52 = vld [vmem:[#allocation2 + $0x12] sm:$0xff] }
 0x207   : > { %v1491_v57 = vld [vmem:[#allocation2 + $0x11] sm:$0xff]  ;;  %1468 = vst.msk [vmem:[#allocation2 + $0x31] sm:$0xff] %vm1437_vm1, %v2181_v45  ;;  %1556 = vrot.lane.b32.xlu1 %v1539_v52, %s2368_s29 }
 0x208   : > { %1508 = vrot.lane.b32.xlu0 %v1491_v57, %s2366_s25  ;;  %v2183_v46 = vpop.f32.mrf.mxu1  ;;  %v2858_v60 = vld [vmem:[#allocation2 + $0x10] sm:$0xff] }
 0x209   : > { %v2184_v58 = vadd.f32 %v2183_v46, %v2182_v50 }
 0x20a   : > { %v1492_v59 = vld [vmem:[#allocation2 + $0x21] sm:$0xff]  ;;  %v2185_v61 = vpop.f32.mrf.mxu1 }
 0x20b   : > { %1469 = vst.msk [vmem:[#allocation2 + $0x41] sm:$0xff] %vm1437_vm1, %v2184_v58  ;;  %1510 = vrot.lane.b32.xlu1 %v1492_v59, %s2366_s25  ;;  %v2864_v0 = vld [vmem:[#allocation2 + $0x20] sm:$0xff] }
 0x20c   : > { %1602 = vrot.lane.b32.xlu0 %v2858_v60, %s2370_s8  ;;  %v2186_v47 = vpop.f32.mrf.mxu1  ;;  %v1683_v7 = vld [vmem:[#allocation2 + $0x22] sm:$0xff] }
 0x20d   : > { %v2187_v63 = vadd.f32 %v2186_v47, %v2185_v61 }
 0x20e   : > { %v2188_v1 = vpop.f32.mrf.mxu1  ;;  %v1493_v11 = vld [vmem:[#allocation2 + $0x31] sm:$0xff] }
 0x20f   : > { %1604 = vrot.lane.b32.xlu1 %v2864_v0, %s2370_s8  ;;  %1470 = vst.msk [vmem:[#allocation2 + $0x51] sm:$0xff] %vm1437_vm1, %v2187_v63  ;;  %v1541_v13 = vld [vmem:[#allocation2 + $0x32] sm:$0xff] }
 0x210   : > { %1650 = vrot.lane.b32.xlu0 %v1491_v57, %s2371_s11  ;;  %v2189_v3 = vpop.f32.mrf.mxu1  ;;  %v2882_v56 = vld [vmem:[#allocation2 + $0x30] sm:$0xff] }
 0x211   : > { %v2190_v4 = vadd.f32 %v2189_v3, %v2188_v1  ;;  %v1890_v1 = vld [vmem:[%s2957_s14] sm:$0xff] }
 0x212   : > { %v2191_v49 = vpop.f32.mrf.mxu1  ;;  %v2892_v14 = vld [vmem:[#allocation2 + $0x40] sm:$0xff] }
 0x213   : > { %1652 = vrot.lane.b32.xlu1 %v1492_v59, %s2371_s11  ;;  %1471 = vst.msk [vmem:[#allocation2 + $0x61] sm:$0xff] %vm1437_vm1, %v2190_v4  ;;  %v1637_v15 = vld [vmem:[#allocation2 + $0x41] sm:$0xff] }
 0x214   : > { %1698 = vrot.lane.b32.xlu0 %v1539_v52, %s2372_s9  ;;  %v2192_v5 = vpop.f32.mrf.mxu1  ;;  %v1685_v17 = vld [vmem:[#allocation2 + $0x42] sm:$0xff] }
 0x215   : > { %v2193_v6 = vadd.f32 %v2192_v5, %v2191_v49 }
 0x216   : > { %v2194_v9 = vpop.f32.mrf.mxu1  ;;  %v1495_v18 = vld [vmem:[#allocation2 + $0x51] sm:$0xff] }
 0x217   : > { %1700 = vrot.lane.b32.xlu1 %v1683_v7, %s2372_s9  ;;  %1472 = vst.msk [vmem:[#allocation2 + $0x71] sm:$0xff] %vm1437_vm1, %v2193_v6  ;;  %v1543_v62 = vld [vmem:[#allocation2 + $0x52] sm:$0xff] }
 0x218   : > { %1558 = vrot.lane.b32.xlu0 %v1683_v7, %s2368_s29  ;;  %v2195_v53 = vpop.f32.mrf.mxu1  ;;  %v2906_v20 = vld [vmem:[#allocation2 + $0x50] sm:$0xff] }
 0x219   : > { %v2196_v10 = vadd.f32 %v2195_v53, %v2194_v9 }
 0x21a   : > { %v2916_v54 = vld [vmem:[#allocation2 + $0x60] sm:$0xff] }
 0x21b   : > { %1512 = vrot.lane.b32.xlu1 %v1493_v11, %s2366_s25  ;;  %1473 = vst.msk [vmem:[#allocation2 + $0x81] sm:$0xff] %vm1437_vm1, %v2196_v10  ;;  %v1639_v21 = vld [vmem:[#allocation2 + $0x61] sm:$0xff] }
 0x21c   : > { %1747 = vrot.lane.b32.xlu0 %v2864_v0, %s2369_s30  ;;  %v1687_v22 = vld [vmem:[#allocation2 + $0x62] sm:$0xff] }
 0x21e   : > { %v1497_v16 = vld [vmem:[#allocation2 + $0x71] sm:$0xff] }
 0x21f   : > { %1560 = vrot.lane.b32.xlu1 %v1541_v13, %s2368_s29  ;;  %v1545_v51 = vld [vmem:[#allocation2 + $0x72] sm:$0xff] }
 0x220   : > { %1795 = vrot.lane.b32.xlu0 %v1492_v59, %s2367_s28  ;;  %v2930_v23 = vld [vmem:[#allocation2 + $0x70] sm:$0xff] }
 0x222   : > { %v1593_v24 = vld [vmem:[#allocation2 + $0x80] sm:$0xff] }
 0x223   : > { %1749 = vrot.lane.b32.xlu1 %v2882_v56, %s2369_s30  ;;  %v1641_v8 = vld [vmem:[#allocation2 + $0x81] sm:$0xff] }
 0x224   : > { %1843 = vrot.lane.b32.xlu0 %v1683_v7, %s2373_s10  ;;  %v1689_v55 = vld [vmem:[#allocation2 + $0x82] sm:$0xff] }
 0x227   : > { %1797 = vrot.lane.b32.xlu1 %v1493_v11, %s2367_s28 }
 0x228   : > { %1606 = vrot.lane.b32.xlu0 %v2882_v56, %s2370_s8 }
 0x22b   : > { %1845 = vrot.lane.b32.xlu1 %v1541_v13, %s2373_s10 }
 0x22c   : > { %1654 = vrot.lane.b32.xlu0 %v1493_v11, %s2371_s11 }
 0x22f   : > { %1608 = vrot.lane.b32.xlu1 %v2892_v14, %s2370_s8 }
 0x230   : > { %1702 = vrot.lane.b32.xlu0 %v1541_v13, %s2372_s9  ;;  %v1891_v13 = vld [vmem:[%s2957_s14 + $0x8] sm:$0xff] }
 0x233   : > { %1656 = vrot.lane.b32.xlu1 %v1637_v15, %s2371_s11 }
 0x234   : > { %1514 = vrot.lane.b32.xlu0 %v1637_v15, %s2366_s25 }
 0x237   : > { %1704 = vrot.lane.b32.xlu1 %v1685_v17, %s2372_s9 }
 0x238   : > { %1562 = vrot.lane.b32.xlu0 %v1685_v17, %s2368_s29 }
 0x23b   : > { %1516 = vrot.lane.b32.xlu1 %v1495_v18, %s2366_s25 }
 0x23c   : > { %1751 = vrot.lane.b32.xlu0 %v2892_v14, %s2369_s30 }
 0x23f   : > { %1564 = vrot.lane.b32.xlu1 %v1543_v62, %s2368_s29 }
 0x240   : > { %1799 = vrot.lane.b32.xlu0 %v1637_v15, %s2367_s28 }
 0x243   : > { %1753 = vrot.lane.b32.xlu1 %v2906_v20, %s2369_s30 }
 0x244   : > { %1847 = vrot.lane.b32.xlu0 %v1685_v17, %s2373_s10 }
 0x247   : > { %1801 = vrot.lane.b32.xlu1 %v1495_v18, %s2367_s28 }
 0x248   : > { %1610 = vrot.lane.b32.xlu0 %v2906_v20, %s2370_s8 }
 0x24b   : > { %1849 = vrot.lane.b32.xlu1 %v1543_v62, %s2373_s10 }
 0x24c   : > { %1658 = vrot.lane.b32.xlu0 %v1495_v18, %s2371_s11 }
 0x24f   : > { %1612 = vrot.lane.b32.xlu1 %v2916_v54, %s2370_s8 }
 0x250   : > { %1706 = vrot.lane.b32.xlu0 %v1543_v62, %s2372_s9 }
 0x253   : > { %1660 = vrot.lane.b32.xlu1 %v1639_v21, %s2371_s11 }
 0x254   : > { %1518 = vrot.lane.b32.xlu0 %v1639_v21, %s2366_s25 }
 0x257   : > { %1708 = vrot.lane.b32.xlu1 %v1687_v22, %s2372_s9 }
 0x258   : > { %1566 = vrot.lane.b32.xlu0 %v1687_v22, %s2368_s29 }
 0x25b   : > { %1520 = vrot.lane.b32.xlu1 %v1497_v16, %s2366_s25 }
 0x25c   : > { %1755 = vrot.lane.b32.xlu0 %v2916_v54, %s2369_s30 }
 0x25f   : > { %1568 = vrot.lane.b32.xlu1 %v1545_v51, %s2368_s29 }
 0x260   : > { %1803 = vrot.lane.b32.xlu0 %v1639_v21, %s2367_s28 }
 0x263   : > { %1757 = vrot.lane.b32.xlu1 %v2930_v23, %s2369_s30 }
 0x264   : > { %1851 = vrot.lane.b32.xlu0 %v1687_v22, %s2373_s10 }
 0x267   : > { %1805 = vrot.lane.b32.xlu1 %v1497_v16, %s2367_s28 }
 0x268   : > { %1614 = vrot.lane.b32.xlu0 %v2930_v23, %s2370_s8 }
 0x26b   : > { %1616 = vrot.lane.b32.xlu1 %v1593_v24, %s2370_s8 }
 0x26c   : > { %1662 = vrot.lane.b32.xlu0 %v1497_v16, %s2371_s11 }
 0x26f   : > { %1664 = vrot.lane.b32.xlu1 %v1641_v8, %s2371_s11 }
 0x270   : > { %1710 = vrot.lane.b32.xlu0 %v1545_v51, %s2372_s9 }
 0x273   : > { %1712 = vrot.lane.b32.xlu1 %v1689_v55, %s2372_s9 }
 0x274   : > { %1759 = vrot.lane.b32.xlu0 %v1593_v24, %s2369_s30 }
 0x277   : > { %1853 = vrot.lane.b32.xlu1 %v1545_v51, %s2373_s10 }
 0x278   : > { %1807 = vrot.lane.b32.xlu0 %v1641_v8, %s2367_s28 }
 0x279   : > { %v1557_v19 = vpop.permute.xlu1 %1556 }
 0x27a   : > { %v1509_v27 = vpop.permute.xlu0 %1508 }
 0x27b   : > { %1857 = vrot.lane.b32.xlu1 %v1834_v29, %s2373_s10  ;;  %v1531_v42 = vadd.f32 %v2858_v60, %v1509_v27  ;;  %v2962_v60 = vld [vmem:[%s3017_s4] ss:$0 sm:$0xff] }
 0x27c   : > { %1855 = vrot.lane.b32.xlu0 %v1689_v55, %s2373_s10 }
 0x27d   : > { %v1511_v30 = vpop.permute.xlu1 %1510  ;;  %v1579_v52 = vadd.f32 %v1557_v19, %v1531_v42 }
 0x27e   : > { %v1603_v31 = vpop.permute.xlu0 %1602  ;;  %v1532_v16 = vadd.f32 %v2864_v0, %v1511_v30 }
 0x27f   : > { %v1626_v39 = vadd.f32 %v1603_v31, %v1578_v38 }
 0x281   : > { %v1605_v33 = vpop.permute.xlu1 %1604 }
 0x282   : > { %v1651_v32 = vpop.permute.xlu0 %1650  ;;  %v1627_v46 = vadd.f32 %v1605_v33, %v1579_v52  ;;  %v1893_v52 = vld [vmem:[%s2957_s14 + $0x18] sm:$0xff] }
 0x283   : > { %v1674_v43 = vadd.f32 %v1651_v32, %v1626_v39 }
 0x285   : > { %v1653_v48 = vpop.permute.xlu1 %1652 }
 0x286   : > { %v1699_v34 = vpop.permute.xlu0 %1698  ;;  %v1675_v47 = vadd.f32 %v1653_v48, %v1627_v46 }
 0x287   : > { %v1722_v44 = vadd.f32 %v1699_v34, %v1674_v43 }
 0x289   : > { %v1701_v36 = vpop.permute.xlu1 %1700 }
 0x28a   : > { %v1559_v37 = vpop.permute.xlu0 %1558  ;;  %v1723_v3 = vadd.f32 %v1701_v36, %v1675_v47 }
 0x28b   : > { %v1580_v8 = vadd.f32 %v1559_v37, %v1532_v16  ;;  %v1892_v37 = vld [vmem:[%s2957_s14 + $0x10] sm:$0xff] }
 0x28d   : > { %v1513_v40 = vpop.permute.xlu1 %1512 }
 0x28e   : > { %v1748_v41 = vpop.permute.xlu0 %1747  ;;  %v1533_v19 = vadd.f32 %v2882_v56, %v1513_v40 }
 0x28f   : > { %v1771_v57 = vadd.f32 %v1748_v41, %v1722_v44 }
 0x291   : > { %v1561_v45 = vpop.permute.xlu1 %1560 }
 0x292   : > { %v1796_v50 = vpop.permute.xlu0 %1795  ;;  %v1581_v32 = vadd.f32 %v1561_v45, %v1533_v19 }
 0x293   : > { %v1819_v58 = vadd.f32 %v1796_v50, %v1771_v57 }
 0x295   : > { %v1750_v59 = vpop.permute.xlu1 %1749 }
 0x296   : > { %v1844_v61 = vpop.permute.xlu0 %1843  ;;  %v1772_v6 = vadd.f32 %v1750_v59, %v1723_v3 }
 0x297   : > { %v1867_v63 = vadd.f32 %v1844_v61, %v1819_v58 }
 0x299   : > { %v1882_v4 = vadd.f32 %v2962_v60, %v1867_v63  ;;  %v1798_v49 = vpop.permute.xlu1 %1797 }
 0x29a   : > { %v1607_v5 = vpop.permute.xlu0 %1606  ;;  %v1820_v9 = vadd.f32 %v1798_v49, %v1772_v6 }
 0x29b   : > { %v1898_v7 = vadd.f32 %v1890_v1, %v1882_v4  ;;  %v1628_v25 = vadd.f32 %v1607_v5, %v1580_v8 }
 0x29d   : > { %1907 = vst.msk [vmem:[%s2970_s19] sm:$0xff] %vm1906_vm4, %v1898_v7  ;;  %v1846_v53 = vpop.permute.xlu1 %1845 }
 0x29e   : > { %v1655_v10 = vpop.permute.xlu0 %1654  ;;  %v1868_v11 = vadd.f32 %v1846_v53, %v1820_v9 }
 0x29f   : > { %v1676_v29 = vadd.f32 %v1655_v10, %v1628_v25 }
 0x2a0   : > { %v1883_v15 = vadd.f32 %v2962_v60, %v1868_v11 }
 0x2a1   : > { %v1609_v17 = vpop.permute.xlu1 %1608 }
 0x2a2   : > { %v1703_v18 = vpop.permute.xlu0 %1702  ;;  %v1899_v62 = vadd.f32 %v1891_v13, %v1883_v15  ;;  %v1629_v48 = vadd.f32 %v1609_v17, %v1581_v32 }
 0x2a3   : > { %v1724_v27 = vadd.f32 %v1703_v18, %v1676_v29 }
 0x2a4   : > { %1908 = vst.msk [vmem:[%s2970_s19 + $0x8] sm:$0xff] %vm1906_vm4, %v1899_v62  ;;  %v1894_v62 = vld [vmem:[%s2957_s14 + $0x20] sm:$0xff] }
 0x2a5   : > { %v1657_v21 = vpop.permute.xlu1 %1656 }
 0x2a6   : > { %v1515_v22 = vpop.permute.xlu0 %1514  ;;  %v1677_v30 = vadd.f32 %v1657_v21, %v1629_v48 }
 0x2a7   : > { %v1534_v63 = vadd.f32 %v2892_v14, %v1515_v22 }
 0x2a9   : > { %v1705_v51 = vpop.permute.xlu1 %1704 }
 0x2aa   : > { %v1563_v24 = vpop.permute.xlu0 %1562  ;;  %v1725_v38 = vadd.f32 %v1705_v51, %v1677_v30 }
 0x2ab   : > { %v1582_v4 = vadd.f32 %v1563_v24, %v1534_v63 }
 0x2ad   : > { %v1517_v55 = vpop.permute.xlu1 %1516 }
 0x2ae   : > { %v1752_v28 = vpop.permute.xlu0 %1751  ;;  %v1535_v51 = vadd.f32 %v2906_v20, %v1517_v55 }
 0x2af   : > { %v1773_v12 = vadd.f32 %v1752_v28, %v1724_v27 }
 0x2b1   : > { %v1565_v31 = vpop.permute.xlu1 %1564 }
 0x2b2   : > { %v1800_v33 = vpop.permute.xlu0 %1799  ;;  %v1583_v25 = vadd.f32 %v1565_v31, %v1535_v51 }
 0x2b3   : > { %v1821_v34 = vadd.f32 %v1800_v33, %v1773_v12 }
 0x2b5   : > { %v1754_v35 = vpop.permute.xlu1 %1753 }
 0x2b6   : > { %v1848_v0 = vpop.permute.xlu0 %1847  ;;  %v1774_v40 = vadd.f32 %v1754_v35, %v1725_v38 }
 0x2b7   : > { %v1869_v36 = vadd.f32 %v1848_v0, %v1821_v34 }
 0x2b9   : > { %v1884_v39 = vadd.f32 %v2962_v60, %v1869_v36  ;;  %v1802_v41 = vpop.permute.xlu1 %1801 }
 0x2ba   : > { %v1611_v56 = vpop.permute.xlu0 %1610  ;;  %v1822_v43 = vadd.f32 %v1802_v41, %v1774_v40 }
 0x2bb   : > { %v1900_v42 = vadd.f32 %v1892_v37, %v1884_v39  ;;  %v1630_v49 = vadd.f32 %v1611_v56, %v1582_v4 }
 0x2bd   : > { %1909 = vst.msk [vmem:[%s2970_s19 + $0x10] sm:$0xff] %vm1906_vm4, %v1900_v42  ;;  %v1850_v44 = vpop.permute.xlu1 %1849  ;;  %v1895_v42 = vld [vmem:[%s2957_s14 + $0x28] sm:$0xff] }
 0x2be   : > { %v1659_v45 = vpop.permute.xlu0 %1658  ;;  %v1870_v50 = vadd.f32 %v1850_v44, %v1822_v43 }
 0x2bf   : > { %v1678_v7 = vadd.f32 %v1659_v45, %v1630_v49 }
 0x2c0   : > { %v1885_v57 = vadd.f32 %v2962_v60, %v1870_v50 }
 0x2c1   : > { %v1613_v46 = vpop.permute.xlu1 %1612 }
 0x2c2   : > { %v1707_v58 = vpop.permute.xlu0 %1706  ;;  %v1901_v59 = vadd.f32 %v1893_v52, %v1885_v57  ;;  %v1631_v29 = vadd.f32 %v1613_v46, %v1583_v25 }
 0x2c3   : > { %v1726_v9 = vadd.f32 %v1707_v58, %v1678_v7 }
 0x2c4   : > { %1910 = vst.msk [vmem:[%s2970_s19 + $0x18] sm:$0xff] %vm1906_vm4, %v1901_v59  ;;  %v1897_v59 = vld [vmem:[%s2957_s14 + $0x38] sm:$0xff] }
 0x2c5   : > { %v1661_v61 = vpop.permute.xlu1 %1660 }
 0x2c6   : > { %v1519_v47 = vpop.permute.xlu0 %1518  ;;  %v1679_v12 = vadd.f32 %v1661_v61, %v1631_v29 }
 0x2c7   : > { %v1536_v19 = vadd.f32 %v2916_v54, %v1519_v47 }
 0x2c9   : > { %v1709_v1 = vpop.permute.xlu1 %1708 }
 0x2ca   : > { %v1567_v3 = vpop.permute.xlu0 %1566  ;;  %v1727_v35 = vadd.f32 %v1709_v1, %v1679_v12 }
 0x2cb   : > { %v1584_v48 = vadd.f32 %v1567_v3, %v1536_v19 }
 0x2cd   : > { %v1521_v5 = vpop.permute.xlu1 %1520 }
 0x2ce   : > { %v1756_v6 = vpop.permute.xlu0 %1755  ;;  %v1537_v28 = vadd.f32 %v2930_v23, %v1521_v5 }
 0x2cf   : > { %v1775_v11 = vadd.f32 %v1756_v6, %v1726_v9 }
 0x2d1   : > { %v1569_v53 = vpop.permute.xlu1 %1568 }
 0x2d2   : > { %v1804_v10 = vpop.permute.xlu0 %1803  ;;  %v1585_v27 = vadd.f32 %v1569_v53, %v1537_v28 }
 0x2d3   : > { %v1823_v13 = vadd.f32 %v1804_v10, %v1775_v11 }
 0x2d5   : > { %v1758_v15 = vpop.permute.xlu1 %1757 }
 0x2d6   : > { %v1852_v17 = vpop.permute.xlu0 %1851  ;;  %v1776_v36 = vadd.f32 %v1758_v15, %v1727_v35 }
 0x2d7   : > { %v1871_v18 = vadd.f32 %v1852_v17, %v1823_v13 }
 0x2d9   : > { %v1886_v14 = vadd.f32 %v2962_v60, %v1871_v18  ;;  %v1806_v21 = vpop.permute.xlu1 %1805 }
 0x2da   : > { %v1615_v22 = vpop.permute.xlu0 %1614  ;;  %v1824_v38 = vadd.f32 %v1806_v21, %v1776_v36 }
 0x2db   : > { %v1902_v16 = vadd.f32 %v1894_v62, %v1886_v14  ;;  %v1632_v0 = vadd.f32 %v1615_v22, %v1584_v48 }
 0x2dd   : > { %1911 = vst.msk [vmem:[%s2970_s19 + $0x20] sm:$0xff] %vm1906_vm4, %v1902_v16  ;;  %v1617_v24 = vpop.permute.xlu1 %1616 }
 0x2de   : > { %v1663_v8 = vpop.permute.xlu0 %1662  ;;  %v1633_v34 = vadd.f32 %v1617_v24, %v1585_v27 }
 0x2df   : > { %v1680_v37 = vadd.f32 %v1663_v8, %v1632_v0 }
 0x2e1   : > { %v1665_v33 = vpop.permute.xlu1 %1664 }
 0x2e2   : > { %v1711_v32 = vpop.permute.xlu0 %1710  ;;  %v1681_v20 = vadd.f32 %v1665_v33, %v1633_v34 }
 0x2e3   : > { %v1728_v23 = vadd.f32 %v1711_v32, %v1680_v37 }
 0x2e5   : > { %v1713_v55 = vpop.permute.xlu1 %1712 }
 0x2e6   : > { %v1760_v30 = vpop.permute.xlu0 %1759  ;;  %v1729_v31 = vadd.f32 %v1713_v55, %v1681_v20 }
 0x2e7   : > { %v1777_v56 = vadd.f32 %v1760_v30, %v1728_v23 }
 0x2e8   : > { %v1778_v54 = vadd.f32 %v2946_v26, %v1729_v31  ;;  %v1896_v26 = vld [vmem:[%s2957_s14 + $0x30] sm:$0xff] }
 0x2e9   : > { %v1854_v39 = vpop.permute.xlu1 %1853 }
 0x2ea   : > { %v1808_v41 = vpop.permute.xlu0 %1807  ;;  %v1872_v40 = vadd.f32 %v1854_v39, %v1824_v38  ;;  %v1826_v45 = vadd.f32 %v2940_v2, %v1778_v54 }
 0x2eb   : > { %v1825_v44 = vadd.f32 %v1808_v41, %v1777_v56 }
 0x2ec   : > { %v1887_v43 = vadd.f32 %v2962_v60, %v1872_v40 }
 0x2ed   : > { %v1858_v50 = vpop.permute.xlu1 %1857 }
 0x2ee   : > { %v1856_v52 = vpop.permute.xlu0 %1855  ;;  %v1903_v57 = vadd.f32 %v1895_v42, %v1887_v43  ;;  %v1874_v46 = vadd.f32 %v1858_v50, %v1826_v45 }
 0x2ef   : > { %v1873_v58 = vadd.f32 %v1856_v52, %v1825_v44 }
 0x2f0   : > { %1912 = vst.msk [vmem:[%s2970_s19 + $0x28] sm:$0xff] %vm1906_vm4, %v1903_v57  ;;  %v1889_v61 = vadd.f32 %v2962_v60, %v1874_v46 }
 0x2f1   : > { %v1888_v47 = vadd.f32 %v2962_v60, %v1873_v58 }
 0x2f2   : > { %v1905_v63 = vadd.f32 %v1897_v59, %v1889_v61 }
 0x2f3   : > { %v1904_v1 = vadd.f32 %v1896_v26, %v1888_v47 }
 0x2f4   : > { %1914 = vst.msk [vmem:[%s2970_s19 + $0x38] sm:$0xff] %vm1906_vm4, %v1905_v63 }
 0x2f5   : > { %1913 = vst.msk [vmem:[%s2970_s19 + $0x30] sm:$0xff] %vm1906_vm4, %v1904_v1 }
 0x2f6 PF: > { %s18_s24 = sadd.s32 1, %s2362_s24  }
 0x2f7   : > { %p15_p4 = scmp.ge.s32.totalorder %s18_s24, 4  }
 0x2f9   :  { %17 = sbr.rel (!%p15_p4) target bundleno = 1 (0x1), region = 92 }

// kernel: update_block_forward.3
= control target key start
LH: loop header
LB: loop body
LE: loop exit
PB: predicated region body
PF: predicated region fallthrough
CT: control target
= control target key end

     0   :  { %8 = vsyncpa [#allocation3], 0  ;;  %s5451_s0 = inlined_call_operand.vmem [shape: bf16[2,64,256], index: 0, kind: input, shape index: {}]   ;;  %s5452_s1 = inlined_call_operand.vmem [shape: bf16[256,2304], index: 1, kind: input, shape index: {}]   ;;  %s5453_s2 = inlined_call_operand.vmem [shape: f32[1,2304], index: 2, kind: input, shape index: {}]   ;;  %s5454_s3 = inlined_call_operand.hbm [shape: f32[2,64,2304], index: 3, kind: output, shape index: {}]  }
   0x1   :  { %10 = vsyncpa [#allocation3 + $0x1], 0  ;;  %s3967_s12 = smov 0   ;;  %s3969_s13 = smov 0  }
   0x2   :  { %s3971_s14 = smov 0   ;;  %s3973_s15 = smov 0  }
   0x3   :  { %s3975_s16 = smov 0   ;;  %s3977_s17 = smov 0  }
   0x4 LB: > { %s3014_s18 = sadd.s32 4294967295, %s3942_s17   ;;  %s3015_s19 = sadd.s32 4294967294, %s3942_s17   ;;  %s3942_s17 = sphi %s3977_s17, %s16_s17   ;;  %s3938_s16 = sphi %s3975_s16, %s5461_s16   ;;  %s3934_s15 = sphi %s3973_s15, %s5460_s15   ;;  %s3930_s14 = sphi %s3971_s14, %s5459_s14   ;;  %s3926_s13 = sphi %s3969_s13, %s5458_s13   ;;  %s3922_s12 = sphi %s3967_s12, %s5457_s12  }
   0x5   : > { %s28_s20 = sadd.s32 1, %s3938_s16  ;;  %s115_s21 = sadd.s32 1, %s3930_s14 }
   0x6   : > { %p30_p0 = scmp.ge.s32.totalorder %s28_s20, 2  ;;  %p125_p1 = scmp.ne.s32.totalorder %s3930_s14, %s3926_s13 }
   0x7   : > { %p126_p2 = scmp.eq.s32.totalorder %s3014_s18, 1  ;;  %p131_p3 = scmp.ne.s32.totalorder %s3926_s13, %s3922_s12 }
   0x8   : > { %s5463_s20 = smov (%p30_p0, %s28_s20), 0  ;;  %p132_p5 = scmp.eq.s32.totalorder %s3015_s19, 1 }
   0x9   : > { %p4007_p4 = por %p126_p2, %p125_p1  ;;  %s110_s23 = ssub.s32 %s3938_s16, %s5463_s20 }
   0xa   : > { %p3020_p6 = scmp.ge.s32.totalorder %s3942_s17, 1  ;;  %p113_p7 = scmp.eq.s32.totalorder %s110_s23, 0 }
   0xb   : > { %p4014_p8 = por %p132_p5, %p131_p3  ;;  %p175_p9 = scmp.lt.s32.totalorder %s3942_s17, 3 }
   0xc   : > { %s4020_s25 = scalar_select %p113_p7, %s3930_s14, %s115_s21  }
   0xd   : > { %p176_p10 = pnand %p3020_p6, %p175_p9 }
   0xe   : > { %p208_p11 = scmp.lt.s32.totalorder (!%p176_p10), %s3934_s15, 1  ;;  %s205_s11 = sand.u32 (!%p176_p10), 1, %s3926_s13  }
   0xf   : > { %179 = sbr.rel (%p176_p10) target bundleno = 565 (0x235), region = 32  ;;  %s5406_s28 = scalar_lea.sflag (!%p176_p10), [#allocation3], %s205_s11 }
  0x10   : > { %s3355_s30 = smul.u32 (!%p176_p10), 1152, %s205_s11 }
  0x11   : > { %s3356_s19 = smul.u32 (!%p176_p10), 18432, %s3934_s15 }
  0x12   : > { %s4932_s21 = scalar_lea.vmem (!%p176_p10), [#allocation2], %s3355_s30  ;;  %s3944_s30 = smov (!%p176_p10), [#allocation2]  }
  0x13   : > { %s2914_s23 = sshll.u32 (!%p176_p10), %s4932_s21, 4  ;;  %s5396_s27 = scalar_lea.hbm (!%p176_p10), %s5454_s3, %s3356_s19  ;;  %s5398_s23 = int_to_ptr.vmem [resolvable:$true] %s2914_s23 }
  0x14   : > { %v3414_v0 = vld [vmem:[%s5452_s1 + $0x3f4] ss:$72 sps:$4 sm:$0xff]   ;;  %v3418_v2 = vld [vmem:[%s5452_s1 + $0x3f0] ss:$72 sps:$4 sm:$0xff]   ;;  %v3420_v4 = vld [vmem:[%s5452_s1 + $0x364] ss:$72 sps:$4 sm:$0xff]  }
  0x15   : > { %v3416_v1 = vld [vmem:[%s5452_s1 + $0x3fc] ss:$72 sps:$4 sm:$0xff]   ;;  %2097 = vmatprep.subr.bf16.mxu0 %v3414_v0  ;;  %v3419_v3 = vld [vmem:[%s5452_s1 + $0x3f8] ss:$72 sps:$4 sm:$0xff]   ;;  %v3422_v5 = vld [vmem:[%s5452_s1 + $0x36c] ss:$72 sps:$4 sm:$0xff]  }
  0x16   : > { %2170 = vmatprep.subr.bf16.mxu1 %v3416_v1  ;;  %2098 = vmatpush1.bf16.msra.mxu0 %v3418_v2  ;;  %v3424_v6 = vld [vmem:[%s5452_s1 + $0x360] ss:$72 sps:$4 sm:$0xff]   ;;  %v3426_v8 = vld [vmem:[%s5452_s1 + $0x2d4] ss:$72 sps:$4 sm:$0xff]   ;;  %v3430_v10 = vld [vmem:[%s5452_s1 + $0x2d0] ss:$72 sps:$4 sm:$0xff]  }
  0x17   : > { %2171 = vmatpush1.bf16.msra.mxu1 %v3419_v3  ;;  %2099 = vmatprep.subr.bf16.mxu0 %v3420_v4  ;;  %v3425_v7 = vld [vmem:[%s5452_s1 + $0x368] ss:$72 sps:$4 sm:$0xff]   ;;  %v3428_v9 = vld [vmem:[%s5452_s1 + $0x2dc] ss:$72 sps:$4 sm:$0xff]   ;;  %v3431_v11 = vld [vmem:[%s5452_s1 + $0x2d8] ss:$72 sps:$4 sm:$0xff]  }
  0x18   : > { %2172 = vmatprep.subr.bf16.mxu1 %v3422_v5  ;;  %v3432_v12 = vld [vmem:[%s5452_s1 + $0x244] ss:$72 sps:$4 sm:$0xff]   ;;  %v3436_v14 = vld [vmem:[%s5452_s1 + $0x240] ss:$72 sps:$4 sm:$0xff]   ;;  %v3438_v16 = vld [vmem:[%s5452_s1 + $0x1b4] ss:$72 sps:$4 sm:$0xff]  }
  0x19   : > { %v3434_v13 = vld [vmem:[%s5452_s1 + $0x24c] ss:$72 sps:$4 sm:$0xff]   ;;  %v3437_v15 = vld [vmem:[%s5452_s1 + $0x248] ss:$72 sps:$4 sm:$0xff]   ;;  %v3440_v17 = vld [vmem:[%s5452_s1 + $0x1bc] ss:$72 sps:$4 sm:$0xff]  }
  0x1a   : > { %2100 = vmatpush1.bf16.msra.mxu0 %v3424_v6  ;;  %v3442_v18 = vld [vmem:[%s5452_s1 + $0x1b0] ss:$72 sps:$4 sm:$0xff]   ;;  %v3444_v20 = vld [vmem:[%s5452_s1 + $0x124] ss:$72 sps:$4 sm:$0xff]   ;;  %v3448_v22 = vld [vmem:[%s5452_s1 + $0x120] ss:$72 sps:$4 sm:$0xff]  }
  0x1b   : > { %2173 = vmatpush1.bf16.msra.mxu1 %v3425_v7  ;;  %2101 = vmatprep.subr.bf16.mxu0 %v3426_v8  ;;  %v3443_v19 = vld [vmem:[%s5452_s1 + $0x1b8] ss:$72 sps:$4 sm:$0xff]   ;;  %v3446_v21 = vld [vmem:[%s5452_s1 + $0x12c] ss:$72 sps:$4 sm:$0xff]   ;;  %v3449_v23 = vld [vmem:[%s5452_s1 + $0x128] ss:$72 sps:$4 sm:$0xff]  }
  0x1c   : > { %2174 = vmatprep.subr.bf16.mxu1 %v3428_v9  ;;  %v3450_v24 = vld [vmem:[%s5452_s1 + $0x94] ss:$72 sps:$4 sm:$0xff]   ;;  %v3454_v26 = vld [vmem:[%s5452_s1 + $0x90] ss:$72 sps:$4 sm:$0xff]   ;;  %v3456_v28 = vld [vmem:[%s5452_s1 + $0x4] ss:$72 sps:$4 sm:$0xff]  }
  0x1d   : > { %v3452_v25 = vld [vmem:[%s5452_s1 + $0x9c] ss:$72 sps:$4 sm:$0xff]   ;;  %v3455_v27 = vld [vmem:[%s5452_s1 + $0x98] ss:$72 sps:$4 sm:$0xff]   ;;  %v3458_v29 = vld [vmem:[%s5452_s1 + $0xc] ss:$72 sps:$4 sm:$0xff]  }
  0x1e   : > { %2102 = vmatpush1.bf16.msra.mxu0 %v3430_v10  ;;  %v3460_v30 = vld [vmem:[%s5452_s1] ss:$72 sps:$4 sm:$0xff]   ;;  %v3462_v32 = vld [vmem:[%s5452_s1 + $0x874] ss:$72 sps:$4 sm:$0xff]   ;;  %v3466_v34 = vld [vmem:[%s5452_s1 + $0x870] ss:$72 sps:$4 sm:$0xff]  }
  0x1f   : > { %2175 = vmatpush1.bf16.msra.mxu1 %v3431_v11  ;;  %2103 = vmatprep.subr.bf16.mxu0 %v3432_v12  ;;  %v3461_v31 = vld [vmem:[%s5452_s1 + $0x8] ss:$72 sps:$4 sm:$0xff]   ;;  %v3464_v33 = vld [vmem:[%s5452_s1 + $0x87c] ss:$72 sps:$4 sm:$0xff]   ;;  %v3467_v35 = vld [vmem:[%s5452_s1 + $0x878] ss:$72 sps:$4 sm:$0xff]  }
  0x20   : > { %2176 = vmatprep.subr.bf16.mxu1 %v3434_v13  ;;  %v3468_v36 = vld [vmem:[%s5452_s1 + $0x7e4] ss:$72 sps:$4 sm:$0xff]   ;;  %s209_s7 = scalar_select %p208_p11, %s3934_s15, 1  ;;  %v3472_v38 = vld [vmem:[%s5452_s1 + $0x7e0] ss:$72 sps:$4 sm:$0xff]  }
  0x21   : > { %v3470_v37 = vld [vmem:[%s5452_s1 + $0x7ec] ss:$72 sps:$4 sm:$0xff]   ;;  %v3473_v39 = vld [vmem:[%s5452_s1 + $0x7e8] ss:$72 sps:$4 sm:$0xff]   ;;  %v3476_v41 = vld [vmem:[%s5452_s1 + $0x75c] ss:$72 sps:$4 sm:$0xff]  }
  0x22   : > { %2104 = vmatpush1.bf16.msra.mxu0 %v3436_v14  ;;  %v3474_v40 = vld [vmem:[%s5452_s1 + $0x754] ss:$72 sps:$4 sm:$0xff]   ;;  %s3322_s26 = sshll.u32 %s209_s7, 6  ;;  %v3478_v42 = vld [vmem:[%s5452_s1 + $0x750] ss:$72 sps:$4 sm:$0xff]   ;;  %s3866_s29 = scalar_lea.vmem %s5398_s23, 18432 }
  0x23   : > { %2177 = vmatpush1.bf16.msra.mxu1 %v3437_v15  ;;  %2105 = vmatprep.subr.bf16.mxu0 %v3438_v16  ;;  %v3479_v43 = vld [vmem:[%s5452_s1 + $0x758] ss:$72 sps:$4 sm:$0xff]   ;;  %v3480_v44 = vld [vmem:[%s5452_s1 + $0x6c4] ss:$72 sps:$4 sm:$0xff]   ;;  %s4162_s9 = scalar_lea.vmem %s5451_s0, %s3322_s26  ;;  %v3485_v47 = vld [vmem:[%s5452_s1 + $0x6c8] ss:$72 sps:$4 sm:$0xff]   ;;  %p3867_p12 = scmp.ne.s32.totalorder %s5398_s23, %s3866_s29 }
  0x24   : > { %2178 = vmatprep.subr.bf16.mxu1 %v3440_v17  ;;  %v3482_v45 = vld [vmem:[%s5452_s1 + $0x6cc] ss:$72 sps:$4 sm:$0xff]   ;;  %v3484_v46 = vld [vmem:[%s5452_s1 + $0x6c0] ss:$72 sps:$4 sm:$0xff]   ;;  %v3488_v50 = vld [vmem:[%s5452_s1 + $0x63c] ss:$72 sps:$4 sm:$0xff]  }
  0x25   : > { %v4174_v48 = vld [vmem:[%s4162_s9 + $0x4] ss:$8 sps:$4 sm:$0xff]   ;;  %v3486_v49 = vld [vmem:[%s5452_s1 + $0x634] ss:$72 sps:$4 sm:$0xff]   ;;  %v3490_v51 = vld [vmem:[%s5452_s1 + $0x630] ss:$72 sps:$4 sm:$0xff]   ;;  %p3868_p13 = pnand %p3867_p12, %p4007_p4 }
  0x26   : > { %2106 = vmatpush1.bf16.msra.mxu0 %v3442_v18  ;;  %2129 = vmatprep.mubr.bf16.mxu0 %v4174_v48  ;;  %v3491_v52 = vld [vmem:[%s5452_s1 + $0x638] ss:$72 sps:$4 sm:$0xff]   ;;  %v3492_v53 = vld [vmem:[%s5452_s1 + $0x5a4] ss:$72 sps:$4 sm:$0xff]   ;;  %v3497_v56 = vld [vmem:[%s5452_s1 + $0x5a8] ss:$72 sps:$4 sm:$0xff]  }
  0x27   : > { %2179 = vmatpush1.bf16.msra.mxu1 %v3443_v19  ;;  %2107 = vmatprep.subr.bf16.mxu0 %v3444_v20  ;;  %v3494_v54 = vld [vmem:[%s5452_s1 + $0x5ac] ss:$72 sps:$4 sm:$0xff]   ;;  %v3496_v55 = vld [vmem:[%s5452_s1 + $0x5a0] ss:$72 sps:$4 sm:$0xff]   ;;  %v3500_v58 = vld [vmem:[%s5452_s1 + $0x51c] ss:$72 sps:$4 sm:$0xff]   ;;  %p3869_p0 = pneg %p3868_p13 }
  0x28   : > { %2180 = vmatprep.subr.bf16.mxu1 %v3446_v21  ;;  %2202 = vmatprep.mubr.bf16.mxu1 %v4174_v48  ;;  %v3498_v57 = vld [vmem:[%s5452_s1 + $0x514] ss:$72 sps:$4 sm:$0xff]   ;;  %v3502_v59 = vld [vmem:[%s5452_s1 + $0x510] ss:$72 sps:$4 sm:$0xff]   ;;  %v3504_v61 = vld [vmem:[%s5452_s1 + $0x484] ss:$72 sps:$4 sm:$0xff]  }
  0x29   : > { %v3503_v60 = vld [vmem:[%s5452_s1 + $0x518] ss:$72 sps:$4 sm:$0xff]   ;;  %v3506_v62 = vld [vmem:[%s5452_s1 + $0x48c] ss:$72 sps:$4 sm:$0xff]   ;;  %v3509_v0 = vld [vmem:[%s5452_s1 + $0x488] ss:$72 sps:$4 sm:$0xff]  }
  0x2a   : > { %2108 = vmatpush1.bf16.msra.mxu0 %v3448_v22  ;;  %v3508_v63 = vld [vmem:[%s5452_s1 + $0x480] ss:$72 sps:$4 sm:$0xff]   ;;  %v3515_v1 = vld [vmem:[%s5452_s1 + $0x404] ss:$72 sps:$4 sm:$0xff]   ;;  %v3521_v6 = vld [vmem:[%s5452_s1 + $0x374] ss:$72 sps:$4 sm:$0xff]  }
  0x2b   : > { %2181 = vmatpush1.bf16.msra.mxu1 %v3449_v23  ;;  %2109 = vmatprep.subr.bf16.mxu0 %v3450_v24  ;;  %v3518_v2 = vld [vmem:[%s5452_s1 + $0x40c] ss:$72 sps:$4 sm:$0xff]   ;;  %v4233_v3 = vld [vmem:[%s4162_s9] ss:$8 sps:$4 sm:$0xff]   ;;  %v3524_v7 = vld [vmem:[%s5452_s1 + $0x37c] ss:$72 sps:$4 sm:$0xff]  }
  0x2c   : > { %2182 = vmatprep.subr.bf16.mxu1 %v3452_v25  ;;  %v3513_v4 = vld [vmem:[%s5452_s1 + $0x400] ss:$72 sps:$4 sm:$0xff]   ;;  %v3519_v8 = vld [vmem:[%s5452_s1 + $0x370] ss:$72 sps:$4 sm:$0xff]   ;;  %v3527_v10 = vld [vmem:[%s5452_s1 + $0x2e4] ss:$72 sps:$4 sm:$0xff]  }
  0x2d   : > { %v3516_v5 = vld [vmem:[%s5452_s1 + $0x408] ss:$72 sps:$4 sm:$0xff]   ;;  %v3522_v9 = vld [vmem:[%s5452_s1 + $0x378] ss:$72 sps:$4 sm:$0xff]   ;;  %v4259_v11 = vld [vmem:[%s4162_s9 + $0x14] ss:$8 sps:$4 sm:$0xff]  }
  0x2e   : > { %2110 = vmatpush1.bf16.msra.mxu0 %v3454_v26  ;;  %v3530_v12 = vld [vmem:[%s5452_s1 + $0x2ec] ss:$72 sps:$4 sm:$0xff]   ;;  %v3525_v13 = vld [vmem:[%s5452_s1 + $0x2e0] ss:$72 sps:$4 sm:$0xff]   ;;  %v4273_v15 = vld [vmem:[%s4162_s9 + $0x10] ss:$8 sps:$4 sm:$0xff]  }
  0x2f   : > { %2183 = vmatpush1.bf16.msra.mxu1 %v3455_v27  ;;  %2111 = vmatprep.subr.bf16.mxu0 %v3456_v28  ;;  %v3528_v14 = vld [vmem:[%s5452_s1 + $0x2e8] ss:$72 sps:$4 sm:$0xff]   ;;  %v3533_v16 = vld [vmem:[%s5452_s1 + $0x254] ss:$72 sps:$4 sm:$0xff]   ;;  %v3534_v19 = vld [vmem:[%s5452_s1 + $0x258] ss:$72 sps:$4 sm:$0xff]  }
  0x30   : > { %2184 = vmatprep.subr.bf16.mxu1 %v3458_v29  ;;  %v3536_v17 = vld [vmem:[%s5452_s1 + $0x25c] ss:$72 sps:$4 sm:$0xff]   ;;  %v3531_v18 = vld [vmem:[%s5452_s1 + $0x250] ss:$72 sps:$4 sm:$0xff]   ;;  %v3542_v22 = vld [vmem:[%s5452_s1 + $0x1cc] ss:$72 sps:$4 sm:$0xff]  }
  0x31   : > { %v4290_v20 = vld [vmem:[%s4162_s9 + $0x24] ss:$8 sps:$4 sm:$0xff]   ;;  %v3537_v23 = vld [vmem:[%s5452_s1 + $0x1c0] ss:$72 sps:$4 sm:$0xff]   ;;  %v3545_v26 = vld [vmem:[%s5452_s1 + $0x134] ss:$72 sps:$4 sm:$0xff]  }
  0x32   : > { %2112 = vmatpush1.bf16.msra.mxu0 %v3460_v30  ;;  %v3539_v21 = vld [vmem:[%s5452_s1 + $0x1c4] ss:$72 sps:$4 sm:$0xff]   ;;  %v3540_v24 = vld [vmem:[%s5452_s1 + $0x1c8] ss:$72 sps:$4 sm:$0xff]   ;;  %v4316_v28 = vld [vmem:[%s4162_s9 + $0x34] ss:$8 sps:$4 sm:$0xff]  }
  0x33   : > { %2185 = vmatpush1.bf16.msra.mxu1 %v3461_v31  ;;  %2113 = vmatprep.subr.bf16.mxu0 %v3462_v32  ;;  %v4307_v25 = vld [vmem:[%s4162_s9 + $0x20] ss:$8 sps:$4 sm:$0xff]   ;;  %v3548_v27 = vld [vmem:[%s5452_s1 + $0x13c] ss:$72 sps:$4 sm:$0xff]   ;;  %v3543_v29 = vld [vmem:[%s5452_s1 + $0x130] ss:$72 sps:$4 sm:$0xff]  }
  0x34   : > { %2186 = vmatprep.subr.bf16.mxu1 %v3464_v33  ;;  %v3546_v30 = vld [vmem:[%s5452_s1 + $0x138] ss:$72 sps:$4 sm:$0xff]   ;;  %v3551_v31 = vld [vmem:[%s5452_s1 + $0xa4] ss:$72 sps:$4 sm:$0xff]   ;;  %s3870_s4 = sshll.u32 %s3944_s30, 4  ;;  %s3871_s4 = int_to_ptr.vmem [resolvable:$false] %s3870_s4 }
  0x35   : > { %v3554_v32 = vld [vmem:[%s5452_s1 + $0xac] ss:$72 sps:$4 sm:$0xff]   ;;  %v3549_v33 = vld [vmem:[%s5452_s1 + $0xa0] ss:$72 sps:$4 sm:$0xff]   ;;  %s3872_s5 = scalar_lea.vmem %s3871_s4, 36864  ;;  %p3873_p1 = scmp.lt.s32.totalorder %s5398_s23, %s3871_s4 }
  0x36   : > { %2114 = vmatpush2.bf16.msra.mxu0 %v3466_v34  ;;  %v3552_v34 = vld [vmem:[%s5452_s1 + $0xa8] ss:$72 sps:$4 sm:$0xff]   ;;  %p3874_p2 = scmp.lt.s32.totalorder %s3872_s5, %s3866_s29 }
  0x37   : > { %2187 = vmatpush2.bf16.msra.mxu1 %v3467_v35  ;;  %2115 = vmatprep.subr.bf16.mxu0 %v3468_v36  ;;  %v4341_v35 = vld [vmem:[%s4162_s9 + $0x30] ss:$8 sps:$4 sm:$0xff]   ;;  %v3557_v36 = vld [vmem:[%s5452_s1 + $0x14] ss:$72 sps:$4 sm:$0xff]  }
  0x38   : > { %2188 = vmatprep.subr.bf16.mxu1 %v3470_v37  ;;  %v3560_v37 = vld [vmem:[%s5452_s1 + $0x1c] ss:$72 sps:$4 sm:$0xff]   ;;  %p3875_p3 = por %p3874_p2, %p3873_p1 }
  0x3a   : > { %2116 = vmatpush2.bf16.msra.mxu0 %v3472_v38  ;;  %v3555_v38 = vld [vmem:[%s5452_s1 + $0x10] ss:$72 sps:$4 sm:$0xff]   ;;  %p3876_p5 = pnand %p3875_p3, %p3869_p0 }
  0x3b   : > { %2189 = vmatpush2.bf16.msra.mxu1 %v3473_v39  ;;  %2117 = vmatprep.subr.bf16.mxu0 %v3474_v40  ;;  %v3558_v39 = vld [vmem:[%s5452_s1 + $0x18] ss:$72 sps:$4 sm:$0xff]   ;;  %v3563_v40 = vld [vmem:[%s5452_s1 + $0x884] ss:$72 sps:$4 sm:$0xff]  }
  0x3c   : > { %2190 = vmatprep.subr.bf16.mxu1 %v3476_v41  ;;  %v3566_v41 = vld [vmem:[%s5452_s1 + $0x88c] ss:$72 sps:$4 sm:$0xff]  }
  0x3e   : > { %2118 = vmatpush2.bf16.msra.mxu0 %v3478_v42  ;;  %v3561_v42 = vld [vmem:[%s5452_s1 + $0x880] ss:$72 sps:$4 sm:$0xff]  }
  0x3f   : > { %2191 = vmatpush2.bf16.msra.mxu1 %v3479_v43  ;;  %2119 = vmatprep.subr.bf16.mxu0 %v3480_v44  ;;  %v3564_v43 = vld [vmem:[%s5452_s1 + $0x888] ss:$72 sps:$4 sm:$0xff]   ;;  %v3572_v44 = vld [vmem:[%s5452_s1 + $0x7f4] ss:$72 sps:$4 sm:$0xff]  }
  0x40   : > { %2192 = vmatprep.subr.bf16.mxu1 %v3482_v45  ;;  %v3575_v45 = vld [vmem:[%s5452_s1 + $0x7fc] ss:$72 sps:$4 sm:$0xff]  }
  0x42   : > { %2120 = vmatpush2.bf16.msra.mxu0 %v3484_v46  ;;  %v3570_v46 = vld [vmem:[%s5452_s1 + $0x7f0] ss:$72 sps:$4 sm:$0xff]  }
  0x43   : > { %2193 = vmatpush2.bf16.msra.mxu1 %v3485_v47  ;;  %2121 = vmatprep.subr.bf16.mxu0 %v3486_v49  ;;  %v3573_v47 = vld [vmem:[%s5452_s1 + $0x7f8] ss:$72 sps:$4 sm:$0xff]   ;;  %v3578_v49 = vld [vmem:[%s5452_s1 + $0x764] ss:$72 sps:$4 sm:$0xff]  }
  0x44   : > { %2194 = vmatprep.subr.bf16.mxu1 %v3488_v50  ;;  %v3581_v50 = vld [vmem:[%s5452_s1 + $0x76c] ss:$72 sps:$4 sm:$0xff]  }
  0x46   : > { %2122 = vmatpush2.bf16.msra.mxu0 %v3490_v51  ;;  %v3576_v51 = vld [vmem:[%s5452_s1 + $0x760] ss:$72 sps:$4 sm:$0xff]  }
  0x47   : > { %2195 = vmatpush2.bf16.msra.mxu1 %v3491_v52  ;;  %2123 = vmatprep.subr.bf16.mxu0 %v3492_v53  ;;  %v3579_v52 = vld [vmem:[%s5452_s1 + $0x768] ss:$72 sps:$4 sm:$0xff]   ;;  %v3587_v53 = vld [vmem:[%s5452_s1 + $0x6d4] ss:$72 sps:$4 sm:$0xff]  }
  0x48   : > { %2196 = vmatprep.subr.bf16.mxu1 %v3494_v54  ;;  %v3590_v54 = vld [vmem:[%s5452_s1 + $0x6dc] ss:$72 sps:$4 sm:$0xff]  }
  0x4a   : > { %2124 = vmatpush2.bf16.msra.mxu0 %v3496_v55  ;;  %v3585_v55 = vld [vmem:[%s5452_s1 + $0x6d0] ss:$72 sps:$4 sm:$0xff]  }
  0x4b   : > { %2197 = vmatpush2.bf16.msra.mxu1 %v3497_v56  ;;  %2125 = vmatprep.subr.bf16.mxu0 %v3498_v57  ;;  %v3588_v56 = vld [vmem:[%s5452_s1 + $0x6d8] ss:$72 sps:$4 sm:$0xff]   ;;  %v3593_v57 = vld [vmem:[%s5452_s1 + $0x644] ss:$72 sps:$4 sm:$0xff]  }
  0x4c   : > { %2198 = vmatprep.subr.bf16.mxu1 %v3500_v58  ;;  %v3596_v58 = vld [vmem:[%s5452_s1 + $0x64c] ss:$72 sps:$4 sm:$0xff]  }
  0x4e   : > { %2126 = vmatpush2.bf16.msra.mxu0 %v3502_v59  ;;  %v3591_v59 = vld [vmem:[%s5452_s1 + $0x640] ss:$72 sps:$4 sm:$0xff]  }
  0x4f   : > { %2199 = vmatpush2.bf16.msra.mxu1 %v3503_v60  ;;  %2127 = vmatprep.subr.bf16.mxu0 %v3504_v61  ;;  %v3594_v60 = vld [vmem:[%s5452_s1 + $0x648] ss:$72 sps:$4 sm:$0xff]   ;;  %v3602_v61 = vld [vmem:[%s5452_s1 + $0x5b4] ss:$72 sps:$4 sm:$0xff]  }
  0x50   : > { %2200 = vmatprep.subr.bf16.mxu1 %v3506_v62  ;;  %v3605_v62 = vld [vmem:[%s5452_s1 + $0x5bc] ss:$72 sps:$4 sm:$0xff]  }
  0x52   : > { %2128 = vmatpush2.bf16.msra.mxu0 %v3508_v63  ;;  %v3600_v63 = vld [vmem:[%s5452_s1 + $0x5b0] ss:$72 sps:$4 sm:$0xff]  }
  0x53   : > { %2201 = vmatpush2.bf16.msra.mxu1 %v3509_v0  ;;  %2243 = vmatprep.subr.bf16.mxu0 %v3515_v1  ;;  %v3603_v0 = vld [vmem:[%s5452_s1 + $0x5b8] ss:$72 sps:$4 sm:$0xff]   ;;  %v3608_v1 = vld [vmem:[%s5452_s1 + $0x524] ss:$72 sps:$4 sm:$0xff]  }
  0x54   : > { %2316 = vmatprep.subr.bf16.mxu1 %v3518_v2  ;;  %v3611_v2 = vld [vmem:[%s5452_s1 + $0x52c] ss:$72 sps:$4 sm:$0xff]  }
  0x55   : > { %2130 = vmatmul.mubr.bf16.vlgmr.msra.gmra.mxu0 %v4233_v3 }
  0x56   : > { %2203 = vmatmul.mubr.bf16.vlgmr.msra.gmra.mxu1 %v4233_v3  ;;  %2244 = vmatpush1.bf16.msra.mxu0 %v3513_v4  ;;  %v3606_v4 = vld [vmem:[%s5452_s1 + $0x520] ss:$72 sps:$4 sm:$0xff]  }
  0x57   : > { %2317 = vmatpush1.bf16.msra.mxu1 %v3516_v5  ;;  %2245 = vmatprep.subr.bf16.mxu0 %v3521_v6  ;;  %v3609_v5 = vld [vmem:[%s5452_s1 + $0x528] ss:$72 sps:$4 sm:$0xff]   ;;  %v3614_v6 = vld [vmem:[%s5452_s1 + $0x494] ss:$72 sps:$4 sm:$0xff]  }
  0x58   : > { %2318 = vmatprep.subr.bf16.mxu1 %v3524_v7  ;;  %2139 = vmatprep.mubr.bf16.mxu0 %v4259_v11  ;;  %v3617_v7 = vld [vmem:[%s5452_s1 + $0x49c] ss:$72 sps:$4 sm:$0xff]  }
  0x59   : > { %2212 = vmatprep.mubr.bf16.mxu1 %v4259_v11 }
  0x5a   : > { %2246 = vmatpush1.bf16.msra.mxu0 %v3519_v8  ;;  %v3612_v8 = vld [vmem:[%s5452_s1 + $0x490] ss:$72 sps:$4 sm:$0xff]  }
  0x5b   : > { %2319 = vmatpush1.bf16.msra.mxu1 %v3522_v9  ;;  %2247 = vmatprep.subr.bf16.mxu0 %v3527_v10  ;;  %v3615_v9 = vld [vmem:[%s5452_s1 + $0x498] ss:$72 sps:$4 sm:$0xff]   ;;  %v3620_v10 = vld [vmem:[%s5452_s1 + $0x414] ss:$72 sps:$4 sm:$0xff]  }
  0x5c   : > { %2320 = vmatprep.subr.bf16.mxu1 %v3530_v12  ;;  %v3623_v12 = vld [vmem:[%s5452_s1 + $0x41c] ss:$72 sps:$4 sm:$0xff]  }
  0x5d   : > { %2140 = vmatmul.mubr.bf16.gmra.mxu0 %v4273_v15 }
  0x5e   : > { %2213 = vmatmul.mubr.bf16.gmra.mxu1 %v4273_v15  ;;  %2248 = vmatpush1.bf16.msra.mxu0 %v3525_v13  ;;  %v3618_v13 = vld [vmem:[%s5452_s1 + $0x410] ss:$72 sps:$4 sm:$0xff]  }
  0x5f   : > { %2321 = vmatpush1.bf16.msra.mxu1 %v3528_v14  ;;  %2249 = vmatprep.subr.bf16.mxu0 %v3533_v16  ;;  %v3621_v14 = vld [vmem:[%s5452_s1 + $0x418] ss:$72 sps:$4 sm:$0xff]   ;;  %v3626_v16 = vld [vmem:[%s5452_s1 + $0x384] ss:$72 sps:$4 sm:$0xff]  }
  0x60   : > { %2322 = vmatprep.subr.bf16.mxu1 %v3536_v17  ;;  %2149 = vmatprep.mubr.bf16.mxu0 %v4290_v20  ;;  %v3629_v17 = vld [vmem:[%s5452_s1 + $0x38c] ss:$72 sps:$4 sm:$0xff]  }
  0x61   : > { %2222 = vmatprep.mubr.bf16.mxu1 %v4290_v20 }
  0x62   : > { %2250 = vmatpush1.bf16.msra.mxu0 %v3531_v18  ;;  %v3624_v18 = vld [vmem:[%s5452_s1 + $0x380] ss:$72 sps:$4 sm:$0xff]  }
  0x63   : > { %2323 = vmatpush1.bf16.msra.mxu1 %v3534_v19  ;;  %2251 = vmatprep.subr.bf16.mxu0 %v3539_v21  ;;  %v3627_v19 = vld [vmem:[%s5452_s1 + $0x388] ss:$72 sps:$4 sm:$0xff]   ;;  %v3632_v21 = vld [vmem:[%s5452_s1 + $0x2f4] ss:$72 sps:$4 sm:$0xff]  }
  0x64   : > { %2324 = vmatprep.subr.bf16.mxu1 %v3542_v22  ;;  %v3635_v22 = vld [vmem:[%s5452_s1 + $0x2fc] ss:$72 sps:$4 sm:$0xff]  }
  0x65   : > { %2150 = vmatmul.mubr.bf16.gmra.mxu0 %v4307_v25 }
  0x66   : > { %2223 = vmatmul.mubr.bf16.gmra.mxu1 %v4307_v25  ;;  %2252 = vmatpush1.bf16.msra.mxu0 %v3537_v23  ;;  %v3630_v23 = vld [vmem:[%s5452_s1 + $0x2f0] ss:$72 sps:$4 sm:$0xff]  }
  0x67   : > { %2325 = vmatpush1.bf16.msra.mxu1 %v3540_v24  ;;  %2253 = vmatprep.subr.bf16.mxu0 %v3545_v26  ;;  %v3633_v24 = vld [vmem:[%s5452_s1 + $0x2f8] ss:$72 sps:$4 sm:$0xff]   ;;  %v3638_v26 = vld [vmem:[%s5452_s1 + $0x264] ss:$72 sps:$4 sm:$0xff]  }
  0x68   : > { %2326 = vmatprep.subr.bf16.mxu1 %v3548_v27  ;;  %2159 = vmatprep.mubr.bf16.mxu0 %v4316_v28  ;;  %v3641_v27 = vld [vmem:[%s5452_s1 + $0x26c] ss:$72 sps:$4 sm:$0xff]  }
  0x69   : > { %2232 = vmatprep.mubr.bf16.mxu1 %v4316_v28 }
  0x6a   : > { %2254 = vmatpush1.bf16.msra.mxu0 %v3543_v29  ;;  %v3636_v29 = vld [vmem:[%s5452_s1 + $0x260] ss:$72 sps:$4 sm:$0xff]  }
  0x6b   : > { %2327 = vmatpush1.bf16.msra.mxu1 %v3546_v30  ;;  %2255 = vmatprep.subr.bf16.mxu0 %v3551_v31  ;;  %v3639_v30 = vld [vmem:[%s5452_s1 + $0x268] ss:$72 sps:$4 sm:$0xff]   ;;  %v3644_v31 = vld [vmem:[%s5452_s1 + $0x1d4] ss:$72 sps:$4 sm:$0xff]  }
  0x6c   : > { %2328 = vmatprep.subr.bf16.mxu1 %v3554_v32  ;;  %v3647_v32 = vld [vmem:[%s5452_s1 + $0x1dc] ss:$72 sps:$4 sm:$0xff]  }
  0x6d   : > { %2160 = vmatmul.mubr.bf16.gmra.mxu0 %v4341_v35 }
  0x6e   : > { %2233 = vmatmul.mubr.bf16.gmra.mxu1 %v4341_v35  ;;  %2256 = vmatpush1.bf16.msra.mxu0 %v3549_v33  ;;  %v3642_v33 = vld [vmem:[%s5452_s1 + $0x1d0] ss:$72 sps:$4 sm:$0xff]  }
  0x6f   : > { %2329 = vmatpush1.bf16.msra.mxu1 %v3552_v34  ;;  %2257 = vmatprep.subr.bf16.mxu0 %v3557_v36  ;;  %v3645_v34 = vld [vmem:[%s5452_s1 + $0x1d8] ss:$72 sps:$4 sm:$0xff]   ;;  %v3650_v36 = vld [vmem:[%s5452_s1 + $0x144] ss:$72 sps:$4 sm:$0xff]  }
  0x70   : > { %2330 = vmatprep.subr.bf16.mxu1 %v3560_v37  ;;  %2275 = vmatprep.mubr.bf16.mxu0 %v4174_v48  ;;  %v3653_v37 = vld [vmem:[%s5452_s1 + $0x14c] ss:$72 sps:$4 sm:$0xff]  }
  0x71   : > { %2348 = vmatprep.mubr.bf16.mxu1 %v4174_v48 }
  0x72   : > { %2258 = vmatpush1.bf16.msra.mxu0 %v3555_v38  ;;  %v3648_v38 = vld [vmem:[%s5452_s1 + $0x140] ss:$72 sps:$4 sm:$0xff]  }
  0x73   : > { %2331 = vmatpush1.bf16.msra.mxu1 %v3558_v39  ;;  %2259 = vmatprep.subr.bf16.mxu0 %v3563_v40  ;;  %v3651_v39 = vld [vmem:[%s5452_s1 + $0x148] ss:$72 sps:$4 sm:$0xff]   ;;  %v3656_v40 = vld [vmem:[%s5452_s1 + $0xb4] ss:$72 sps:$4 sm:$0xff]  }
  0x74   : > { %2332 = vmatprep.subr.bf16.mxu1 %v3566_v41  ;;  %v3659_v41 = vld [vmem:[%s5452_s1 + $0xbc] ss:$72 sps:$4 sm:$0xff]  }
  0x76   : > { %2260 = vmatpush2.bf16.msra.mxu0 %v3561_v42  ;;  %v3654_v42 = vld [vmem:[%s5452_s1 + $0xb0] ss:$72 sps:$4 sm:$0xff]  }
  0x77   : > { %2333 = vmatpush2.bf16.msra.mxu1 %v3564_v43  ;;  %2261 = vmatprep.subr.bf16.mxu0 %v3572_v44  ;;  %v3657_v43 = vld [vmem:[%s5452_s1 + $0xb8] ss:$72 sps:$4 sm:$0xff]   ;;  %v3662_v44 = vld [vmem:[%s5452_s1 + $0x24] ss:$72 sps:$4 sm:$0xff]  }
  0x78   : > { %2334 = vmatprep.subr.bf16.mxu1 %v3575_v45  ;;  %v3665_v45 = vld [vmem:[%s5452_s1 + $0x2c] ss:$72 sps:$4 sm:$0xff]  }
  0x7a   : > { %2262 = vmatpush2.bf16.msra.mxu0 %v3570_v46  ;;  %v3660_v46 = vld [vmem:[%s5452_s1 + $0x20] ss:$72 sps:$4 sm:$0xff]  }
  0x7b   : > { %2335 = vmatpush2.bf16.msra.mxu1 %v3573_v47  ;;  %2263 = vmatprep.subr.bf16.mxu0 %v3578_v49  ;;  %v3663_v47 = vld [vmem:[%s5452_s1 + $0x28] ss:$72 sps:$4 sm:$0xff]   ;;  %v3668_v49 = vld [vmem:[%s5452_s1 + $0x894] ss:$72 sps:$4 sm:$0xff]  }
  0x7c   : > { %2336 = vmatprep.subr.bf16.mxu1 %v3581_v50  ;;  %v3671_v50 = vld [vmem:[%s5452_s1 + $0x89c] ss:$72 sps:$4 sm:$0xff]  }
  0x7e   : > { %2264 = vmatpush2.bf16.msra.mxu0 %v3576_v51  ;;  %v3666_v51 = vld [vmem:[%s5452_s1 + $0x890] ss:$72 sps:$4 sm:$0xff]  }
  0x7f   : > { %2337 = vmatpush2.bf16.msra.mxu1 %v3579_v52  ;;  %2265 = vmatprep.subr.bf16.mxu0 %v3587_v53  ;;  %v3669_v52 = vld [vmem:[%s5452_s1 + $0x898] ss:$72 sps:$4 sm:$0xff]   ;;  %v3674_v53 = vld [vmem:[%s5452_s1 + $0x804] ss:$72 sps:$4 sm:$0xff]  }
  0x80   : > { %2338 = vmatprep.subr.bf16.mxu1 %v3590_v54  ;;  %v3672_v54 = vld [vmem:[%s5452_s1 + $0x800] ss:$72 sps:$4 sm:$0xff]  }
  0x82   : > { %2266 = vmatpush2.bf16.msra.mxu0 %v3585_v55  ;;  %v3675_v55 = vld [vmem:[%s5452_s1 + $0x808] ss:$72 sps:$4 sm:$0xff]  }
  0x83   : > { %2339 = vmatpush2.bf16.msra.mxu1 %v3588_v56  ;;  %2267 = vmatprep.subr.bf16.mxu0 %v3593_v57  ;;  %v3680_v56 = vld [vmem:[%s5452_s1 + $0x774] ss:$72 sps:$4 sm:$0xff]  }
  0x84   : > { %2340 = vmatprep.subr.bf16.mxu1 %v3596_v58  ;;  %v3683_v57 = vld [vmem:[%s5452_s1 + $0x77c] ss:$72 sps:$4 sm:$0xff]   ;;  %v3678_v58 = vld [vmem:[%s5452_s1 + $0x770] ss:$72 sps:$4 sm:$0xff]  }
  0x86   : > { %2268 = vmatpush2.bf16.msra.mxu0 %v3591_v59  ;;  %v3681_v59 = vld [vmem:[%s5452_s1 + $0x778] ss:$72 sps:$4 sm:$0xff]  }
  0x87   : > { %2341 = vmatpush2.bf16.msra.mxu1 %v3594_v60  ;;  %2269 = vmatprep.subr.bf16.mxu0 %v3602_v61  ;;  %v3686_v60 = vld [vmem:[%s5452_s1 + $0x6e4] ss:$72 sps:$4 sm:$0xff]  }
  0x88   : > { %2342 = vmatprep.subr.bf16.mxu1 %v3605_v62  ;;  %v3689_v61 = vld [vmem:[%s5452_s1 + $0x6ec] ss:$72 sps:$4 sm:$0xff]   ;;  %v3684_v62 = vld [vmem:[%s5452_s1 + $0x6e0] ss:$72 sps:$4 sm:$0xff]  }
  0x8a   : > { %2270 = vmatpush2.bf16.msra.mxu0 %v3600_v63  ;;  %v3687_v63 = vld [vmem:[%s5452_s1 + $0x6e8] ss:$72 sps:$4 sm:$0xff]  }
  0x8b   : > { %2343 = vmatpush2.bf16.msra.mxu1 %v3603_v0  ;;  %2271 = vmatprep.subr.bf16.mxu0 %v3608_v1  ;;  %v3692_v0 = vld [vmem:[%s5452_s1 + $0x654] ss:$72 sps:$4 sm:$0xff]  }
  0x8c   : > { %2344 = vmatprep.subr.bf16.mxu1 %v3611_v2  ;;  %v3695_v1 = vld [vmem:[%s5452_s1 + $0x65c] ss:$72 sps:$4 sm:$0xff]   ;;  %v3690_v2 = vld [vmem:[%s5452_s1 + $0x650] ss:$72 sps:$4 sm:$0xff]  }
  0x8e   : > { %2272 = vmatpush2.bf16.msra.mxu0 %v3606_v4  ;;  %v3693_v4 = vld [vmem:[%s5452_s1 + $0x658] ss:$72 sps:$4 sm:$0xff]  }
  0x8f   : > { %2345 = vmatpush2.bf16.msra.mxu1 %v3609_v5  ;;  %2273 = vmatprep.subr.bf16.mxu0 %v3614_v6  ;;  %v3698_v5 = vld [vmem:[%s5452_s1 + $0x5c4] ss:$72 sps:$4 sm:$0xff]  }
  0x90   : > { %2346 = vmatprep.subr.bf16.mxu1 %v3617_v7  ;;  %v3701_v6 = vld [vmem:[%s5452_s1 + $0x5cc] ss:$72 sps:$4 sm:$0xff]   ;;  %v3696_v7 = vld [vmem:[%s5452_s1 + $0x5c0] ss:$72 sps:$4 sm:$0xff]  }
  0x92   : > { %2274 = vmatpush2.bf16.msra.mxu0 %v3612_v8  ;;  %v3699_v8 = vld [vmem:[%s5452_s1 + $0x5c8] ss:$72 sps:$4 sm:$0xff]  }
  0x93   : > { %2347 = vmatpush2.bf16.msra.mxu1 %v3615_v9  ;;  %2389 = vmatprep.subr.bf16.mxu0 %v3620_v10  ;;  %v3704_v9 = vld [vmem:[%s5452_s1 + $0x534] ss:$72 sps:$4 sm:$0xff]  }
  0x94   : > { %2462 = vmatprep.subr.bf16.mxu1 %v3623_v12  ;;  %v3707_v10 = vld [vmem:[%s5452_s1 + $0x53c] ss:$72 sps:$4 sm:$0xff]   ;;  %v3702_v12 = vld [vmem:[%s5452_s1 + $0x530] ss:$72 sps:$4 sm:$0xff]  }
  0x95   : > { %2276 = vmatmul.mubr.bf16.vlgmr.msra.gmra.mxu0 %v4233_v3 }
  0x96   : > { %2349 = vmatmul.mubr.bf16.vlgmr.msra.gmra.mxu1 %v4233_v3  ;;  %2390 = vmatpush1.bf16.msra.mxu0 %v3618_v13  ;;  %v3705_v13 = vld [vmem:[%s5452_s1 + $0x538] ss:$72 sps:$4 sm:$0xff]  }
  0x97   : > { %2463 = vmatpush1.bf16.msra.mxu1 %v3621_v14  ;;  %2391 = vmatprep.subr.bf16.mxu0 %v3626_v16  ;;  %v3710_v14 = vld [vmem:[%s5452_s1 + $0x4a4] ss:$72 sps:$4 sm:$0xff]  }
  0x98   : > { %2464 = vmatprep.subr.bf16.mxu1 %v3629_v17  ;;  %2285 = vmatprep.mubr.bf16.mxu0 %v4259_v11  ;;  %v3713_v16 = vld [vmem:[%s5452_s1 + $0x4ac] ss:$72 sps:$4 sm:$0xff]   ;;  %v3708_v17 = vld [vmem:[%s5452_s1 + $0x4a0] ss:$72 sps:$4 sm:$0xff]  }
  0x99   : > { %2358 = vmatprep.mubr.bf16.mxu1 %v4259_v11 }
  0x9a   : > { %2392 = vmatpush1.bf16.msra.mxu0 %v3624_v18  ;;  %v3711_v18 = vld [vmem:[%s5452_s1 + $0x4a8] ss:$72 sps:$4 sm:$0xff]  }
  0x9b   : > { %2465 = vmatpush1.bf16.msra.mxu1 %v3627_v19  ;;  %2393 = vmatprep.subr.bf16.mxu0 %v3632_v21  ;;  %v3716_v19 = vld [vmem:[%s5452_s1 + $0x424] ss:$72 sps:$4 sm:$0xff]  }
  0x9c   : > { %2466 = vmatprep.subr.bf16.mxu1 %v3635_v22  ;;  %v3719_v21 = vld [vmem:[%s5452_s1 + $0x42c] ss:$72 sps:$4 sm:$0xff]   ;;  %v3714_v22 = vld [vmem:[%s5452_s1 + $0x420] ss:$72 sps:$4 sm:$0xff]  }
  0x9d   : > { %2286 = vmatmul.mubr.bf16.gmra.mxu0 %v4273_v15 }
  0x9e   : > { %2359 = vmatmul.mubr.bf16.gmra.mxu1 %v4273_v15  ;;  %2394 = vmatpush1.bf16.msra.mxu0 %v3630_v23  ;;  %v3717_v23 = vld [vmem:[%s5452_s1 + $0x428] ss:$72 sps:$4 sm:$0xff]  }
  0x9f   : > { %2467 = vmatpush1.bf16.msra.mxu1 %v3633_v24  ;;  %2395 = vmatprep.subr.bf16.mxu0 %v3638_v26  ;;  %v3722_v24 = vld [vmem:[%s5452_s1 + $0x394] ss:$72 sps:$4 sm:$0xff]  }
  0xa0   : > { %2468 = vmatprep.subr.bf16.mxu1 %v3641_v27  ;;  %2295 = vmatprep.mubr.bf16.mxu0 %v4290_v20  ;;  %v3725_v26 = vld [vmem:[%s5452_s1 + $0x39c] ss:$72 sps:$4 sm:$0xff]   ;;  %v3720_v27 = vld [vmem:[%s5452_s1 + $0x390] ss:$72 sps:$4 sm:$0xff]  }
  0xa1   : > { %2368 = vmatprep.mubr.bf16.mxu1 %v4290_v20 }
  0xa2   : > { %2396 = vmatpush1.bf16.msra.mxu0 %v3636_v29  ;;  %v3723_v29 = vld [vmem:[%s5452_s1 + $0x398] ss:$72 sps:$4 sm:$0xff]  }
  0xa3   : > { %2469 = vmatpush1.bf16.msra.mxu1 %v3639_v30  ;;  %2397 = vmatprep.subr.bf16.mxu0 %v3644_v31  ;;  %v3728_v30 = vld [vmem:[%s5452_s1 + $0x304] ss:$72 sps:$4 sm:$0xff]   ;;  %v3726_v31 = vld [vmem:[%s5452_s1 + $0x300] ss:$72 sps:$4 sm:$0xff]  }
  0xa4   : > { %2470 = vmatprep.subr.bf16.mxu1 %v3647_v32  ;;  %v3729_v32 = vld [vmem:[%s5452_s1 + $0x308] ss:$72 sps:$4 sm:$0xff]  }
  0xa5   : > { %2296 = vmatmul.mubr.bf16.gmra.mxu0 %v4307_v25 }
  0xa6   : > { %2369 = vmatmul.mubr.bf16.gmra.mxu1 %v4307_v25  ;;  %2398 = vmatpush1.bf16.msra.mxu0 %v3642_v33  ;;  %v3734_v33 = vld [vmem:[%s5452_s1 + $0x274] ss:$72 sps:$4 sm:$0xff]  }
  0xa7   : > { %2471 = vmatpush1.bf16.msra.mxu1 %v3645_v34  ;;  %2399 = vmatprep.subr.bf16.mxu0 %v3650_v36  ;;  %v3732_v34 = vld [vmem:[%s5452_s1 + $0x270] ss:$72 sps:$4 sm:$0xff]  }
  0xa8   : > { %2472 = vmatprep.subr.bf16.mxu1 %v3653_v37  ;;  %2305 = vmatprep.mubr.bf16.mxu0 %v4316_v28  ;;  %v3735_v36 = vld [vmem:[%s5452_s1 + $0x278] ss:$72 sps:$4 sm:$0xff]   ;;  %v3740_v37 = vld [vmem:[%s5452_s1 + $0x1e4] ss:$72 sps:$4 sm:$0xff]  }
  0xa9   : > { %2378 = vmatprep.mubr.bf16.mxu1 %v4316_v28 }
  0xaa   : > { %2400 = vmatpush1.bf16.msra.mxu0 %v3648_v38  ;;  %v3738_v38 = vld [vmem:[%s5452_s1 + $0x1e0] ss:$72 sps:$4 sm:$0xff]  }
  0xab   : > { %2473 = vmatpush1.bf16.msra.mxu1 %v3651_v39  ;;  %2401 = vmatprep.subr.bf16.mxu0 %v3656_v40  ;;  %v3741_v39 = vld [vmem:[%s5452_s1 + $0x1e8] ss:$72 sps:$4 sm:$0xff]   ;;  %v3746_v40 = vld [vmem:[%s5452_s1 + $0x154] ss:$72 sps:$4 sm:$0xff]  }
  0xac   : > { %2474 = vmatprep.subr.bf16.mxu1 %v3659_v41  ;;  %v3744_v41 = vld [vmem:[%s5452_s1 + $0x150] ss:$72 sps:$4 sm:$0xff]  }
  0xad   : > { %2306 = vmatmul.mubr.bf16.gmra.mxu0 %v4341_v35 }
  0xae   : > { %2379 = vmatmul.mubr.bf16.gmra.mxu1 %v4341_v35  ;;  %2402 = vmatpush1.bf16.msra.mxu0 %v3654_v42  ;;  %v3747_v42 = vld [vmem:[%s5452_s1 + $0x158] ss:$72 sps:$4 sm:$0xff]  }
  0xaf   : > { %2475 = vmatpush1.bf16.msra.mxu1 %v3657_v43  ;;  %2403 = vmatprep.subr.bf16.mxu0 %v3662_v44  ;;  %v3752_v43 = vld [vmem:[%s5452_s1 + $0xc4] ss:$72 sps:$4 sm:$0xff]   ;;  %v3750_v44 = vld [vmem:[%s5452_s1 + $0xc0] ss:$72 sps:$4 sm:$0xff]  }
  0xb0   : > { %2476 = vmatprep.subr.bf16.mxu1 %v3665_v45  ;;  %2421 = vmatprep.mubr.bf16.mxu0 %v4174_v48  ;;  %v3753_v45 = vld [vmem:[%s5452_s1 + $0xc8] ss:$72 sps:$4 sm:$0xff]  }
  0xb1   : > { %2494 = vmatprep.mubr.bf16.mxu1 %v4174_v48  ;;  %v3677_v48 = vld [vmem:[%s5452_s1 + $0x80c] ss:$72 sps:$4 sm:$0xff]  }
  0xb2   : > { %2404 = vmatpush1.bf16.msra.mxu0 %v3660_v46  ;;  %v3758_v46 = vld [vmem:[%s5452_s1 + $0x34] ss:$72 sps:$4 sm:$0xff]  }
  0xb3   : > { %2477 = vmatpush1.bf16.msra.mxu1 %v3663_v47  ;;  %2405 = vmatprep.subr.bf16.mxu0 %v3668_v49  ;;  %v3756_v47 = vld [vmem:[%s5452_s1 + $0x30] ss:$72 sps:$4 sm:$0xff]  }
  0xb4   : > { %2478 = vmatprep.subr.bf16.mxu1 %v3671_v50  ;;  %v3759_v49 = vld [vmem:[%s5452_s1 + $0x38] ss:$72 sps:$4 sm:$0xff]   ;;  %v3764_v50 = vld [vmem:[%s5452_s1 + $0x8a4] ss:$72 sps:$4 sm:$0xff]  }
  0xb6   : > { %2406 = vmatpush2.bf16.msra.mxu0 %v3666_v51  ;;  %v4780_v51 = vld [vmem:[%s4162_s9 + $0x4] ss:$8 sps:$4 sm:$0xff]  }
  0xb7   : > { %2479 = vmatpush2.bf16.msra.mxu1 %v3669_v52  ;;  %2407 = vmatprep.subr.bf16.mxu0 %v3674_v53  ;;  %v3762_v52 = vld [vmem:[%s5452_s1 + $0x8a0] ss:$72 sps:$4 sm:$0xff]  }
  0xb8   : > { %2480 = vmatprep.subr.bf16.mxu1 %v3677_v48  ;;  %v3765_v53 = vld [vmem:[%s5452_s1 + $0x8a8] ss:$72 sps:$4 sm:$0xff]   ;;  %v3770_v48 = vld [vmem:[%s5452_s1 + $0x814] ss:$72 sps:$4 sm:$0xff]  }
  0xba   : > { %2408 = vmatpush2.bf16.msra.mxu0 %v3672_v54  ;;  %v3773_v54 = vld [vmem:[%s5452_s1 + $0x81c] ss:$72 sps:$4 sm:$0xff]  }
  0xbb   : > { %2481 = vmatpush2.bf16.msra.mxu1 %v3675_v55  ;;  %2409 = vmatprep.subr.bf16.mxu0 %v3680_v56  ;;  %v3768_v55 = vld [vmem:[%s5452_s1 + $0x810] ss:$72 sps:$4 sm:$0xff]  }
  0xbc   : > { %2482 = vmatprep.subr.bf16.mxu1 %v3683_v57  ;;  %v3771_v56 = vld [vmem:[%s5452_s1 + $0x818] ss:$72 sps:$4 sm:$0xff]   ;;  %v3776_v57 = vld [vmem:[%s5452_s1 + $0x784] ss:$72 sps:$4 sm:$0xff]  }
  0xbe   : > { %2410 = vmatpush2.bf16.msra.mxu0 %v3678_v58  ;;  %v3779_v58 = vld [vmem:[%s5452_s1 + $0x78c] ss:$72 sps:$4 sm:$0xff]  }
  0xbf   : > { %2483 = vmatpush2.bf16.msra.mxu1 %v3681_v59  ;;  %2411 = vmatprep.subr.bf16.mxu0 %v3686_v60  ;;  %v3774_v59 = vld [vmem:[%s5452_s1 + $0x780] ss:$72 sps:$4 sm:$0xff]  }
  0xc0   : > { %2484 = vmatprep.subr.bf16.mxu1 %v3689_v61  ;;  %v3777_v60 = vld [vmem:[%s5452_s1 + $0x788] ss:$72 sps:$4 sm:$0xff]   ;;  %v3782_v61 = vld [vmem:[%s5452_s1 + $0x6f4] ss:$72 sps:$4 sm:$0xff]  }
  0xc2   : > { %2412 = vmatpush2.bf16.msra.mxu0 %v3684_v62  ;;  %v3785_v62 = vld [vmem:[%s5452_s1 + $0x6fc] ss:$72 sps:$4 sm:$0xff]  }
  0xc3   : > { %2485 = vmatpush2.bf16.msra.mxu1 %v3687_v63  ;;  %2413 = vmatprep.subr.bf16.mxu0 %v3692_v0  ;;  %v3780_v63 = vld [vmem:[%s5452_s1 + $0x6f0] ss:$72 sps:$4 sm:$0xff]  }
  0xc4   : > { %2486 = vmatprep.subr.bf16.mxu1 %v3695_v1  ;;  %v3783_v0 = vld [vmem:[%s5452_s1 + $0x6f8] ss:$72 sps:$4 sm:$0xff]   ;;  %v3788_v1 = vld [vmem:[%s5452_s1 + $0x664] ss:$72 sps:$4 sm:$0xff]  }
  0xc6   : > { %2414 = vmatpush2.bf16.msra.mxu0 %v3690_v2  ;;  %v3791_v2 = vld [vmem:[%s5452_s1 + $0x66c] ss:$72 sps:$4 sm:$0xff]  }
  0xc7   : > { %2487 = vmatpush2.bf16.msra.mxu1 %v3693_v4  ;;  %2415 = vmatprep.subr.bf16.mxu0 %v3698_v5  ;;  %v3786_v4 = vld [vmem:[%s5452_s1 + $0x660] ss:$72 sps:$4 sm:$0xff]  }
  0xc8   : > { %2488 = vmatprep.subr.bf16.mxu1 %v3701_v6  ;;  %v3789_v5 = vld [vmem:[%s5452_s1 + $0x668] ss:$72 sps:$4 sm:$0xff]   ;;  %v3794_v6 = vld [vmem:[%s5452_s1 + $0x5d4] ss:$72 sps:$4 sm:$0xff]  }
  0xca   : > { %2416 = vmatpush2.bf16.msra.mxu0 %v3696_v7  ;;  %v3797_v7 = vld [vmem:[%s5452_s1 + $0x5dc] ss:$72 sps:$4 sm:$0xff]  }
  0xcb   : > { %2489 = vmatpush2.bf16.msra.mxu1 %v3699_v8  ;;  %2417 = vmatprep.subr.bf16.mxu0 %v3704_v9  ;;  %v3792_v8 = vld [vmem:[%s5452_s1 + $0x5d0] ss:$72 sps:$4 sm:$0xff]  }
  0xcc   : > { %2490 = vmatprep.subr.bf16.mxu1 %v3707_v10  ;;  %v3795_v9 = vld [vmem:[%s5452_s1 + $0x5d8] ss:$72 sps:$4 sm:$0xff]   ;;  %v527_v10 = vlaneseq }
  0xce   : > { %2418 = vmatpush2.bf16.msra.mxu0 %v3702_v12  ;;  %v3800_v12 = vld [vmem:[%s5452_s1 + $0x544] ss:$72 sps:$4 sm:$0xff]  }
  0xcf   : > { %2491 = vmatpush2.bf16.msra.mxu1 %v3705_v13  ;;  %2419 = vmatprep.subr.bf16.mxu0 %v3710_v14  ;;  %v3803_v13 = vld [vmem:[%s5452_s1 + $0x54c] ss:$72 sps:$4 sm:$0xff]   ;;  %v3798_v14 = vld [vmem:[%s5452_s1 + $0x540] ss:$72 sps:$4 sm:$0xff]  }
  0xd0   : > { %2492 = vmatprep.subr.bf16.mxu1 %v3713_v16  ;;  %v3801_v16 = vld [vmem:[%s5452_s1 + $0x548] ss:$72 sps:$4 sm:$0xff]  }
  0xd2   : > { %2420 = vmatpush2.bf16.msra.mxu0 %v3708_v17  ;;  %v4862_v17 = vshrl.u32 %v527_v10, 7 }
  0xd3   : > { %2493 = vmatpush2.bf16.msra.mxu1 %v3711_v18  ;;  %2535 = vmatprep.subr.bf16.mxu0 %v3716_v19  ;;  %v3806_v18 = vld [vmem:[%s5452_s1 + $0x4b4] ss:$72 sps:$4 sm:$0xff]  }
  0xd4   : > { %2608 = vmatprep.subr.bf16.mxu1 %v3719_v21  ;;  %v3809_v19 = vld [vmem:[%s5452_s1 + $0x4bc] ss:$72 sps:$4 sm:$0xff]   ;;  %v3804_v21 = vld [vmem:[%s5452_s1 + $0x4b0] ss:$72 sps:$4 sm:$0xff]  }
  0xd5   : > { %2422 = vmatmul.mubr.bf16.vlgmr.msra.gmra.mxu0 %v4233_v3 }
  0xd6   : > { %2495 = vmatmul.mubr.bf16.vlgmr.msra.gmra.mxu1 %v4233_v3  ;;  %2536 = vmatpush1.bf16.msra.mxu0 %v3714_v22  ;;  %v3731_v3 = vld [vmem:[%s5452_s1 + $0x30c] ss:$72 sps:$4 sm:$0xff]   ;;  %v3807_v22 = vld [vmem:[%s5452_s1 + $0x4b8] ss:$72 sps:$4 sm:$0xff]  }
  0xd7   : > { %2609 = vmatpush1.bf16.msra.mxu1 %v3717_v23  ;;  %2537 = vmatprep.subr.bf16.mxu0 %v3722_v24  ;;  %v4878_v23 = vsub.s32 0, %v4862_v17  ;;  %v537_v24 = vsub.s32 2, %v4862_v17 }
  0xd8   : > { %2610 = vmatprep.subr.bf16.mxu1 %v3725_v26  ;;  %2431 = vmatprep.mubr.bf16.mxu0 %v4259_v11  ;;  %v4884_v26 = vld [vmem:[%s5453_s2] sm:$0xff] }
  0xd9   : > { %2504 = vmatprep.mubr.bf16.mxu1 %v4259_v11  ;;  %v3737_v11 = vld [vmem:[%s5452_s1 + $0x27c] ss:$72 sps:$4 sm:$0xff]  }
  0xda   : > { %2538 = vmatpush1.bf16.msra.mxu0 %v3720_v27  ;;  %v3812_v27 = vld [vmem:[%s5452_s1 + $0x434] ss:$72 sps:$4 sm:$0xff]  }
  0xdb   : > { %2611 = vmatpush1.bf16.msra.mxu1 %v3723_v29  ;;  %2539 = vmatprep.subr.bf16.mxu0 %v3728_v30  ;;  %v4890_v29 = vsub.s32 1, %v4862_v17  ;;  %v541_v30 = vsub.s32 3, %v4862_v17 }
  0xdc   : > { %2612 = vmatprep.subr.bf16.mxu1 %v3731_v3  ;;  %v4897_v3 = vrot.slane %v4884_v26, %v4878_v23 }
  0xdd   : > { %2432 = vmatmul.mubr.bf16.gmra.mxu0 %v4273_v15 }
  0xde   : > { %2505 = vmatmul.mubr.bf16.gmra.mxu1 %v4273_v15  ;;  %2540 = vmatpush1.bf16.msra.mxu0 %v3726_v31  ;;  %v3743_v15 = vld [vmem:[%s5452_s1 + $0x1ec] ss:$72 sps:$4 sm:$0xff]   ;;  %v4902_v31 = vrot.slane %v4884_v26, %v537_v24 }
  0xdf   : > { %2613 = vmatpush1.bf16.msra.mxu1 %v3729_v32  ;;  %2541 = vmatprep.subr.bf16.mxu0 %v3734_v33  ;;  %v3810_v32 = vld [vmem:[%s5452_s1 + $0x430] ss:$72 sps:$4 sm:$0xff]   ;;  %v3815_v33 = vld [vmem:[%s5452_s1 + $0x3a4] ss:$72 sps:$4 sm:$0xff]  }
  0xe0   : > { %2614 = vmatprep.subr.bf16.mxu1 %v3737_v11  ;;  %2441 = vmatprep.mubr.bf16.mxu0 %v4290_v20  ;;  %v4912_v11 = vrot.slane %v4884_v26, %v4890_v29 }
  0xe1   : > { %2514 = vmatprep.mubr.bf16.mxu1 %v4290_v20  ;;  %v3749_v20 = vld [vmem:[%s5452_s1 + $0x15c] ss:$72 sps:$4 sm:$0xff]  }
  0xe2   : > { %2542 = vmatpush1.bf16.msra.mxu0 %v3732_v34  ;;  %v4917_v34 = vrot.slane %v4884_v26, %v541_v30 }
  0xe3   : > { %2615 = vmatpush1.bf16.msra.mxu1 %v3735_v36  ;;  %2543 = vmatprep.subr.bf16.mxu0 %v3740_v37 }
  0xe4   : > { %2616 = vmatprep.subr.bf16.mxu1 %v3743_v15  ;;  %v4920_v15 = vld [vmem:[%s4162_s9] ss:$8 sps:$4 sm:$0xff]  }
  0xe5   : > { %2442 = vmatmul.mubr.bf16.gmra.mxu0 %v4307_v25 }
  0xe6   : > { %2515 = vmatmul.mubr.bf16.gmra.mxu1 %v4307_v25  ;;  %2544 = vmatpush1.bf16.msra.mxu0 %v3738_v38  ;;  %v3755_v25 = vld [vmem:[%s5452_s1 + $0xcc] ss:$72 sps:$4 sm:$0xff]  }
  0xe7   : > { %2617 = vmatpush1.bf16.msra.mxu1 %v3741_v39  ;;  %2545 = vmatprep.subr.bf16.mxu0 %v3746_v40  ;;  %v3813_v40 = vld [vmem:[%s5452_s1 + $0x3a0] ss:$72 sps:$4 sm:$0xff]  }
  0xe8   : > { %2618 = vmatprep.subr.bf16.mxu1 %v3749_v20  ;;  %2451 = vmatprep.mubr.bf16.mxu0 %v4316_v28 }
  0xe9   : > { %2524 = vmatprep.mubr.bf16.mxu1 %v4316_v28  ;;  %v3761_v28 = vld [vmem:[%s5452_s1 + $0x3c] ss:$72 sps:$4 sm:$0xff]  }
  0xea   : > { %2546 = vmatpush1.bf16.msra.mxu0 %v3744_v41 }
  0xeb   : > { %2619 = vmatpush1.bf16.msra.mxu1 %v3747_v42  ;;  %2547 = vmatprep.subr.bf16.mxu0 %v3752_v43  ;;  %v3818_v42 = vld [vmem:[%s5452_s1 + $0x314] ss:$72 sps:$4 sm:$0xff]  }
  0xec   : > { %2620 = vmatprep.subr.bf16.mxu1 %v3755_v25 }
  0xed   : > { %2452 = vmatmul.mubr.bf16.gmra.mxu0 %v4341_v35 }
  0xee   : > { %2525 = vmatmul.mubr.bf16.gmra.mxu1 %v4341_v35  ;;  %2548 = vmatpush1.bf16.msra.mxu0 %v3750_v44  ;;  %v3767_v35 = vld [vmem:[%s5452_s1 + $0x8ac] ss:$72 sps:$4 sm:$0xff]  }
  0xef   : > { %2621 = vmatpush1.bf16.msra.mxu1 %v3753_v45  ;;  %2549 = vmatprep.subr.bf16.mxu0 %v3758_v46  ;;  %v4939_v44 = vld [vmem:[%s4162_s9 + $0x14] ss:$8 sps:$4 sm:$0xff]  }
  0xf0   : > { %2622 = vmatprep.subr.bf16.mxu1 %v3761_v28  ;;  %2567 = vmatprep.mubr.bf16.mxu0 %v4780_v51 }
  0xf1   : > { %2640 = vmatprep.mubr.bf16.mxu1 %v4780_v51 }
  0xf2   : > { %2550 = vmatpush1.bf16.msra.mxu0 %v3756_v47 }
  0xf3   : > { %2623 = vmatpush1.bf16.msra.mxu1 %v3759_v49  ;;  %2551 = vmatprep.subr.bf16.mxu0 %v3764_v50  ;;  %v3816_v49 = vld [vmem:[%s5452_s1 + $0x310] ss:$72 sps:$4 sm:$0xff]  }
  0xf4   : > { %2624 = vmatprep.subr.bf16.mxu1 %v3767_v35 }
  0xf6   : > { %2552 = vmatpush2.bf16.msra.mxu0 %v3762_v52  ;;  %v3821_v52 = vld [vmem:[%s5452_s1 + $0x284] ss:$72 sps:$4 sm:$0xff]  }
  0xf7   : > { %2625 = vmatpush2.bf16.msra.mxu1 %v3765_v53  ;;  %2553 = vmatprep.subr.bf16.mxu0 %v3770_v48 }
  0xf8   : > { %2626 = vmatprep.subr.bf16.mxu1 %v3773_v54  ;;  %v4958_v54 = vld [vmem:[%s4162_s9 + $0x10] ss:$8 sps:$4 sm:$0xff]  }
  0xfa   : > { %2554 = vmatpush2.bf16.msra.mxu0 %v3768_v55 }
  0xfb   : > { %2627 = vmatpush2.bf16.msra.mxu1 %v3771_v56  ;;  %2555 = vmatprep.subr.bf16.mxu0 %v3776_v57  ;;  %v3819_v57 = vld [vmem:[%s5452_s1 + $0x280] ss:$72 sps:$4 sm:$0xff]  }
  0xfc   : > { %2628 = vmatprep.subr.bf16.mxu1 %v3779_v58 }
  0xfe   : > { %2556 = vmatpush2.bf16.msra.mxu0 %v3774_v59 }
  0xff   : > { %2629 = vmatpush2.bf16.msra.mxu1 %v3777_v60  ;;  %2557 = vmatprep.subr.bf16.mxu0 %v3782_v61  ;;  %v3824_v60 = vld [vmem:[%s5452_s1 + $0x1f4] ss:$72 sps:$4 sm:$0xff]  }
 0x100   : > { %2630 = vmatprep.subr.bf16.mxu1 %v3785_v62 }
 0x102   : > { %2558 = vmatpush2.bf16.msra.mxu0 %v3780_v63 }
 0x103   : > { %2631 = vmatpush2.bf16.msra.mxu1 %v3783_v0  ;;  %2559 = vmatprep.subr.bf16.mxu0 %v3788_v1  ;;  %v4977_v1 = vld [vmem:[%s4162_s9 + $0x24] ss:$8 sps:$4 sm:$0xff]  }
 0x104   : > { %2632 = vmatprep.subr.bf16.mxu1 %v3791_v2 }
 0x106   : > { %2560 = vmatpush2.bf16.msra.mxu0 %v3786_v4 }
 0x107   : > { %2633 = vmatpush2.bf16.msra.mxu1 %v3789_v5  ;;  %2561 = vmatprep.subr.bf16.mxu0 %v3794_v6  ;;  %v3822_v5 = vld [vmem:[%s5452_s1 + $0x1f0] ss:$72 sps:$4 sm:$0xff]  }
 0x108   : > { %2634 = vmatprep.subr.bf16.mxu1 %v3797_v7 }
 0x10a   : > { %2562 = vmatpush2.bf16.msra.mxu0 %v3792_v8  ;;  %v3827_v8 = vld [vmem:[%s5452_s1 + $0x164] ss:$72 sps:$4 sm:$0xff]  }
 0x10b   : > { %2635 = vmatpush2.bf16.msra.mxu1 %v3795_v9  ;;  %2563 = vmatprep.subr.bf16.mxu0 %v3800_v12 }
 0x10c   : > { %2636 = vmatprep.subr.bf16.mxu1 %v3803_v13 }
 0x10e   : > { %2564 = vmatpush2.bf16.msra.mxu0 %v3798_v14  ;;  %v4996_v14 = vld [vmem:[%s4162_s9 + $0x20] ss:$8 sps:$4 sm:$0xff]  }
 0x10f   : > { %2637 = vmatpush2.bf16.msra.mxu1 %v3801_v16  ;;  %2565 = vmatprep.subr.bf16.mxu0 %v3806_v18 }
 0x110   : > { %2638 = vmatprep.subr.bf16.mxu1 %v3809_v19  ;;  %v3825_v19 = vld [vmem:[%s5452_s1 + $0x160] ss:$72 sps:$4 sm:$0xff]  }
 0x112   : > { %2566 = vmatpush2.bf16.msra.mxu0 %v3804_v21 }
 0x113   : > { %2639 = vmatpush2.bf16.msra.mxu1 %v3807_v22  ;;  %2681 = vmatprep.subr.bf16.mxu0 %v3812_v27 }
 0x114   : > { %3323 = vmatprep.subr.bf16.mxu1 %v3812_v27  ;;  %v3830_v27 = vld [vmem:[%s5452_s1 + $0xd4] ss:$72 sps:$4 sm:$0xff]  }
 0x115   : > { %v2131_v36 = vpop.f32.mrf.mxu0  ;;  %2568 = vmatmul.mubr.bf16.vlgmr.msra.gmra.mxu0 %v4920_v15 }
 0x116   : > { %v2204_v37 = vpop.f32.mrf.mxu1  ;;  %2641 = vmatmul.mubr.bf16.vlgmr.msra.gmra.mxu1 %v4920_v15  ;;  %v2132_v38 = vadd.f32 %v2131_v36, %v4897_v3  ;;  %2682 = vmatpush1.bf16.msra.mxu0 %v3810_v32 }
 0x117   : > { %v2205_v39 = vadd.f32 %v2204_v37, %v4902_v31  ;;  %3339 = vmatpush1.bf16.msra.mxu1 %v3810_v32  ;;  %v2133_v20 = vpop.f32.mrf.mxu0  ;;  %2683 = vmatprep.subr.bf16.mxu0 %v3815_v33 }
 0x118   : > { %v2206_v41 = vpop.f32.mrf.mxu1  ;;  %3324 = vmatprep.subr.bf16.mxu1 %v3815_v33  ;;  %2754 = vst [vmem:[%s4932_s21] sm:$0xff] %v2132_v38  ;;  %v2134_v43 = vadd.f32 %v2133_v20, %v4912_v11  ;;  %2577 = vmatprep.mubr.bf16.mxu0 %v4939_v44  ;;  %v5015_v38 = vld [vmem:[%s4162_s9 + $0x34] ss:$8 sps:$4 sm:$0xff]   ;;  %v3828_v20 = vld [vmem:[%s5452_s1 + $0xd0] ss:$72 sps:$4 sm:$0xff]  }
 0x119   : > { %2756 = vst [vmem:[%s4932_s21 + $0x10] sm:$0xff] %v2205_v39  ;;  %v2207_v25 = vadd.f32 %v2206_v41, %v4917_v34  ;;  %2650 = vmatprep.mubr.bf16.mxu1 %v4939_v44  ;;  %v2135_v45 = vpop.f32.mrf.mxu0 }
 0x11a   : > { %v2208_v46 = vpop.f32.mrf.mxu1  ;;  %2755 = vst [vmem:[%s4932_s21 + $0x8] sm:$0xff] %v2134_v43  ;;  %v2136_v28 = vadd.f32 %v2135_v45, %v4897_v3  ;;  %2684 = vmatpush1.bf16.msra.mxu0 %v3813_v40  ;;  %v3833_v43 = vld [vmem:[%s5452_s1 + $0x44] ss:$72 sps:$4 sm:$0xff]  }
 0x11b   : > { %2757 = vst [vmem:[%s4932_s21 + $0x18] sm:$0xff] %v2207_v25  ;;  %v2209_v47 = vadd.f32 %v2208_v46, %v4902_v31  ;;  %3340 = vmatpush1.bf16.msra.mxu1 %v3813_v40  ;;  %v2137_v50 = vpop.f32.mrf.mxu0  ;;  %2685 = vmatprep.subr.bf16.mxu0 %v3818_v42 }
 0x11c   : > { %v2210_v35 = vpop.f32.mrf.mxu1  ;;  %3325 = vmatprep.subr.bf16.mxu1 %v3818_v42  ;;  %2772 = vst [vmem:[%s4932_s21 + $0x90] sm:$0xff] %v2136_v28  ;;  %v2138_v53 = vadd.f32 %v2137_v50, %v4912_v11 }
 0x11d   : > { %2774 = vst [vmem:[%s4932_s21 + $0xa0] sm:$0xff] %v2209_v47  ;;  %v2211_v48 = vadd.f32 %v2210_v35, %v4917_v34  ;;  %2578 = vmatmul.mubr.bf16.gmra.mxu0 %v4958_v54  ;;  %v2141_v55 = vpop.f32.mrf.mxu0  ;;  %v5034_v47 = vld [vmem:[%s4162_s9 + $0x30] ss:$8 sps:$4 sm:$0xff]   ;;  %v3831_v35 = vld [vmem:[%s5452_s1 + $0x40] ss:$72 sps:$4 sm:$0xff]  }
 0x11e   : > { %2651 = vmatmul.mubr.bf16.gmra.mxu1 %v4958_v54  ;;  %v2214_v56 = vpop.f32.mrf.mxu1  ;;  %2773 = vst [vmem:[%s4932_s21 + $0x98] sm:$0xff] %v2138_v53  ;;  %2686 = vmatpush1.bf16.msra.mxu0 %v3816_v49  ;;  %v2142_v58 = vadd.f32 %v2141_v55, %v4897_v3 }
 0x11f   : > { %2775 = vst [vmem:[%s4932_s21 + $0xa8] sm:$0xff] %v2211_v48  ;;  %3341 = vmatpush1.bf16.msra.mxu1 %v3816_v49  ;;  %v2215_v59 = vadd.f32 %v2214_v56, %v4902_v31  ;;  %2687 = vmatprep.subr.bf16.mxu0 %v3821_v52  ;;  %v2143_v61 = vpop.f32.mrf.mxu0  ;;  %v3836_v48 = vld [vmem:[%s5452_s1 + $0x8b4] ss:$72 sps:$4 sm:$0xff]  }
 0x120   : > { %3326 = vmatprep.subr.bf16.mxu1 %v3821_v52  ;;  %v2216_v62 = vpop.f32.mrf.mxu1  ;;  %2790 = vst [vmem:[%s4932_s21 + $0x120] sm:$0xff] %v2142_v58  ;;  %v2144_v63 = vadd.f32 %v2143_v61, %v4912_v11  ;;  %2587 = vmatprep.mubr.bf16.mxu0 %v4977_v1  ;;  %v3834_v61 = vld [vmem:[%s5452_s1 + $0x8b0] ss:$72 sps:$4 sm:$0xff]  }
 0x121   : > { %2792 = vst [vmem:[%s4932_s21 + $0x130] sm:$0xff] %v2215_v59  ;;  %v2217_v0 = vadd.f32 %v2216_v62, %v4917_v34  ;;  %2660 = vmatprep.mubr.bf16.mxu1 %v4977_v1  ;;  %v2145_v2 = vpop.f32.mrf.mxu0 }
 0x122   : > { %v2218_v4 = vpop.f32.mrf.mxu1  ;;  %2688 = vmatpush1.bf16.msra.mxu0 %v3819_v57  ;;  %2791 = vst [vmem:[%s4932_s21 + $0x128] sm:$0xff] %v2144_v63  ;;  %v2146_v6 = vadd.f32 %v2145_v2, %v4897_v3  ;;  %v3839_v63 = vld [vmem:[%s5452_s1 + $0x824] ss:$72 sps:$4 sm:$0xff]  }
 0x123   : > { %3342 = vmatpush1.bf16.msra.mxu1 %v3819_v57  ;;  %2793 = vst [vmem:[%s4932_s21 + $0x138] sm:$0xff] %v2217_v0  ;;  %v2219_v7 = vadd.f32 %v2218_v4, %v4902_v31  ;;  %2689 = vmatprep.subr.bf16.mxu0 %v3824_v60  ;;  %v2147_v9 = vpop.f32.mrf.mxu0 }
 0x124   : > { %3327 = vmatprep.subr.bf16.mxu1 %v3824_v60  ;;  %v2220_v10 = vpop.f32.mrf.mxu1  ;;  %2808 = vst [vmem:[%s4932_s21 + $0x1b0] sm:$0xff] %v2146_v6  ;;  %v2148_v12 = vadd.f32 %v2147_v9, %v4912_v11  ;;  %v3848_v6 = vld [vmem:[%s5452_s1 + $0x674] ss:$72 sps:$4 sm:$0xff]   ;;  %v3849_v9 = vld [vmem:[%s5452_s1 + $0x5e0] ss:$72 sps:$4 sm:$0xff]  }
 0x125   : > { %2810 = vst [vmem:[%s4932_s21 + $0x1c0] sm:$0xff] %v2219_v7  ;;  %v2221_v13 = vadd.f32 %v2220_v10, %v4917_v34  ;;  %2588 = vmatmul.mubr.bf16.gmra.mxu0 %v4996_v14  ;;  %v2151_v16 = vpop.f32.mrf.mxu0  ;;  %v3846_v7 = vld [vmem:[%s5452_s1 + $0x670] ss:$72 sps:$4 sm:$0xff]   ;;  %v3854_v10 = vld [vmem:[%s5452_s1 + $0x554] ss:$72 sps:$4 sm:$0xff]  }
 0x126   : > { %2661 = vmatmul.mubr.bf16.gmra.mxu1 %v4996_v14  ;;  %v2224_v18 = vpop.f32.mrf.mxu1  ;;  %2690 = vmatpush1.bf16.msra.mxu0 %v3822_v5  ;;  %2809 = vst [vmem:[%s4932_s21 + $0x1b8] sm:$0xff] %v2148_v12  ;;  %v2152_v21 = vadd.f32 %v2151_v16, %v4897_v3  ;;  %v3852_v12 = vld [vmem:[%s5452_s1 + $0x550] ss:$72 sps:$4 sm:$0xff]   ;;  %v3855_v16 = vld [vmem:[%s5452_s1 + $0x4c0] ss:$72 sps:$4 sm:$0xff]  }
 0x127   : > { %3343 = vmatpush1.bf16.msra.mxu1 %v3822_v5  ;;  %2811 = vst [vmem:[%s4932_s21 + $0x1c8] sm:$0xff] %v2221_v13  ;;  %v2225_v22 = vadd.f32 %v2224_v18, %v4902_v31  ;;  %2691 = vmatprep.subr.bf16.mxu0 %v3827_v8  ;;  %v2153_v32 = vpop.f32.mrf.mxu0  ;;  %v3843_v5 = vld [vmem:[%s5452_s1 + $0x700] ss:$72 sps:$4 sm:$0xff]   ;;  %v3857_v13 = vld [vmem:[%s5452_s1 + $0x4c4] ss:$72 sps:$4 sm:$0xff]   ;;  %v545_v18 = vsub.s32 4, %v4862_v17 }
 0x128   : > { %3328 = vmatprep.subr.bf16.mxu1 %v3827_v8  ;;  %v2226_v33 = vpop.f32.mrf.mxu1  ;;  %2826 = vst [vmem:[%s4932_s21 + $0x240] sm:$0xff] %v2152_v21  ;;  %v2154_v36 = vadd.f32 %v2153_v32, %v4912_v11  ;;  %2597 = vmatprep.mubr.bf16.mxu0 %v5015_v38  ;;  %v3851_v8 = vld [vmem:[%s5452_s1 + $0x5e4] ss:$72 sps:$4 sm:$0xff]   ;;  %v549_v21 = vsub.s32 5, %v4862_v17 }
 0x129   : > { %2828 = vst [vmem:[%s4932_s21 + $0x250] sm:$0xff] %v2225_v22  ;;  %v2227_v37 = vadd.f32 %v2226_v33, %v4917_v34  ;;  %2670 = vmatprep.mubr.bf16.mxu1 %v5015_v38  ;;  %v2155_v39 = vpop.f32.mrf.mxu0  ;;  %v557_v22 = vsub.s32 7, %v4862_v17 }
 0x12a   : > { %v2228_v40 = vpop.f32.mrf.mxu1  ;;  %2692 = vmatpush1.bf16.msra.mxu0 %v3825_v19  ;;  %2827 = vst [vmem:[%s4932_s21 + $0x248] sm:$0xff] %v2154_v36  ;;  %v2156_v41 = vadd.f32 %v2155_v39, %v4897_v3  ;;  %v5126_v33 = vrot.slane %v4884_v26, %v549_v21 }
 0x12b   : > { %3344 = vmatpush1.bf16.msra.mxu1 %v3825_v19  ;;  %2829 = vst [vmem:[%s4932_s21 + $0x258] sm:$0xff] %v2227_v37  ;;  %v2229_v42 = vadd.f32 %v2228_v40, %v4902_v31  ;;  %2693 = vmatprep.subr.bf16.mxu0 %v3830_v27  ;;  %v2157_v25 = vpop.f32.mrf.mxu0  ;;  %v553_v19 = vsub.s32 6, %v4862_v17  ;;  %v5131_v36 = vrot.slane %v4884_v26, %v557_v22 }
 0x12c   : > { %3329 = vmatprep.subr.bf16.mxu1 %v3830_v27  ;;  %v2230_v45 = vpop.f32.mrf.mxu1  ;;  %2844 = vst [vmem:[%s4932_s21 + $0x2d0] sm:$0xff] %v2156_v41  ;;  %v2158_v46 = vadd.f32 %v2157_v25, %v4912_v11  ;;  %v5116_v27 = vrot.slane %v4884_v26, %v545_v18 }
 0x12d   : > { %2846 = vst [vmem:[%s4932_s21 + $0x2e0] sm:$0xff] %v2229_v42  ;;  %v2231_v28 = vadd.f32 %v2230_v45, %v4917_v34  ;;  %2598 = vmatmul.mubr.bf16.gmra.mxu0 %v5034_v47  ;;  %v2161_v49 = vpop.f32.mrf.mxu0  ;;  %v5121_v32 = vrot.slane %v4884_v26, %v553_v19 }
 0x12e   : > { %2671 = vmatmul.mubr.bf16.gmra.mxu1 %v5034_v47  ;;  %v2234_v50 = vpop.f32.mrf.mxu1  ;;  %2694 = vmatpush1.bf16.msra.mxu0 %v3828_v20  ;;  %2845 = vst [vmem:[%s4932_s21 + $0x2d8] sm:$0xff] %v2158_v46  ;;  %v2162_v52 = vadd.f32 %v2161_v49, %v4897_v3 }
 0x12f   : > { %3345 = vmatpush1.bf16.msra.mxu1 %v3828_v20  ;;  %2847 = vst [vmem:[%s4932_s21 + $0x2e8] sm:$0xff] %v2231_v28  ;;  %v2235_v53 = vadd.f32 %v2234_v50, %v4902_v31  ;;  %2695 = vmatprep.subr.bf16.mxu0 %v3833_v43  ;;  %v2163_v55 = vpop.f32.mrf.mxu0 }
 0x130   : > { %3330 = vmatprep.subr.bf16.mxu1 %v3833_v43  ;;  %v2236_v56 = vpop.f32.mrf.mxu1  ;;  %2862 = vst [vmem:[%s4932_s21 + $0x360] sm:$0xff] %v2162_v52  ;;  %v2164_v57 = vadd.f32 %v2163_v55, %v4912_v11  ;;  %2713 = vmatprep.mubr.bf16.mxu0 %v4780_v51 }
 0x131   : > { %2864 = vst [vmem:[%s4932_s21 + $0x370] sm:$0xff] %v2235_v53  ;;  %v2237_v58 = vadd.f32 %v2236_v56, %v4917_v34  ;;  %2733 = vmatprep.mubr.bf16.mxu1 %v4977_v1  ;;  %v2165_v59 = vpop.f32.mrf.mxu0 }
 0x132   : > { %v2238_v60 = vpop.f32.mrf.mxu1  ;;  %2696 = vmatpush1.bf16.msra.mxu0 %v3831_v35  ;;  %2863 = vst [vmem:[%s4932_s21 + $0x368] sm:$0xff] %v2164_v57  ;;  %v2166_v62 = vadd.f32 %v2165_v59, %v4897_v3  ;;  %v3837_v3 = vld [vmem:[%s5452_s1 + $0x820] ss:$72 sps:$4 sm:$0xff]  }
 0x133   : > { %3346 = vmatpush1.bf16.msra.mxu1 %v3831_v35  ;;  %2865 = vst [vmem:[%s4932_s21 + $0x378] sm:$0xff] %v2237_v58  ;;  %v2239_v51 = vadd.f32 %v2238_v60, %v4902_v31  ;;  %2697 = vmatprep.subr.bf16.mxu0 %v3836_v48  ;;  %v2167_v0 = vpop.f32.mrf.mxu0  ;;  %v3842_v31 = vld [vmem:[%s5452_s1 + $0x794] ss:$72 sps:$4 sm:$0xff]  }
 0x134   : > { %3331 = vmatprep.subr.bf16.mxu1 %v3836_v48  ;;  %v2240_v1 = vpop.f32.mrf.mxu1  ;;  %2880 = vst [vmem:[%s4932_s21 + $0x3f0] sm:$0xff] %v2166_v62  ;;  %v2168_v2 = vadd.f32 %v2167_v0, %v4912_v11  ;;  %v3840_v11 = vld [vmem:[%s5452_s1 + $0x790] ss:$72 sps:$4 sm:$0xff]  }
 0x135   : > { %2882 = vst [vmem:[%s4932_s21 + $0x400] sm:$0xff] %v2239_v51  ;;  %v2241_v4 = vadd.f32 %v2240_v1, %v4917_v34  ;;  %v3845_v34 = vld [vmem:[%s5452_s1 + $0x704] ss:$72 sps:$4 sm:$0xff]  }
 0x136   : > { %2698 = vmatpush2.bf16.msra.mxu0 %v3834_v61  ;;  %2881 = vst [vmem:[%s4932_s21 + $0x3f8] sm:$0xff] %v2168_v2 }
 0x137   : > { %3347 = vmatpush2.bf16.msra.mxu1 %v3834_v61  ;;  %2883 = vst [vmem:[%s4932_s21 + $0x408] sm:$0xff] %v2241_v4  ;;  %2699 = vmatprep.subr.bf16.mxu0 %v3839_v63 }
 0x138   : > { %3332 = vmatprep.subr.bf16.mxu1 %v3839_v63 }
 0x13a   : > { %2700 = vmatpush2.bf16.msra.mxu0 %v3837_v3 }
 0x13b   : > { %3348 = vmatpush2.bf16.msra.mxu1 %v3837_v3  ;;  %2701 = vmatprep.subr.bf16.mxu0 %v3842_v31 }
 0x13c   : > { %3333 = vmatprep.subr.bf16.mxu1 %v3842_v31 }
 0x13e   : > { %2702 = vmatpush2.bf16.msra.mxu0 %v3840_v11 }
 0x13f   : > { %3349 = vmatpush2.bf16.msra.mxu1 %v3840_v11  ;;  %2703 = vmatprep.subr.bf16.mxu0 %v3845_v34 }
 0x140   : > { %3334 = vmatprep.subr.bf16.mxu1 %v3845_v34 }
 0x142   : > { %2704 = vmatpush2.bf16.msra.mxu0 %v3843_v5 }
 0x143   : > { %3350 = vmatpush2.bf16.msra.mxu1 %v3843_v5  ;;  %2705 = vmatprep.subr.bf16.mxu0 %v3848_v6 }
 0x144   : > { %3335 = vmatprep.subr.bf16.mxu1 %v3848_v6 }
 0x146   : > { %2706 = vmatpush2.bf16.msra.mxu0 %v3846_v7 }
 0x147   : > { %3351 = vmatpush2.bf16.msra.mxu1 %v3846_v7  ;;  %2707 = vmatprep.subr.bf16.mxu0 %v3851_v8 }
 0x148   : > { %3336 = vmatprep.subr.bf16.mxu1 %v3851_v8 }
 0x14a   : > { %2708 = vmatpush2.bf16.msra.mxu0 %v3849_v9 }
 0x14b   : > { %3352 = vmatpush2.bf16.msra.mxu1 %v3849_v9  ;;  %2709 = vmatprep.subr.bf16.mxu0 %v3854_v10 }
 0x14c   : > { %3337 = vmatprep.subr.bf16.mxu1 %v3854_v10 }
 0x14e   : > { %2710 = vmatpush2.bf16.msra.mxu0 %v3852_v12 }
 0x14f   : > { %3353 = vmatpush2.bf16.msra.mxu1 %v3852_v12  ;;  %2711 = vmatprep.subr.bf16.mxu0 %v3857_v13 }
 0x150   : > { %3338 = vmatprep.subr.bf16.mxu1 %v3857_v13 }
 0x152   : > { %2712 = vmatpush2.bf16.msra.mxu0 %v3855_v16 }
 0x153   : > { %3354 = vmatpush2.bf16.msra.mxu1 %v3855_v16 }
 0x155   : > { %v2277_v37 = vpop.f32.mrf.mxu0  ;;  %2714 = vmatmul.mubr.bf16.vlgmr.msra.gmra.mxu0 %v4920_v15 }
 0x156   : > { %v2350_v39 = vpop.f32.mrf.mxu1  ;;  %2734 = vmatmul.mubr.bf16.vlgmr.msra.gmra.mxu1 %v4996_v14  ;;  %v2278_v40 = vadd.f32 %v2277_v37, %v5116_v27  ;;  %2723 = vmatprep.mubr.bf16.mxu0 %v4939_v44 }
 0x157   : > { %v2351_v20 = vadd.f32 %v2350_v39, %v5121_v32  ;;  %2743 = vmatprep.mubr.bf16.mxu1 %v5015_v38  ;;  %v2279_v26 = vpop.f32.mrf.mxu0 }
 0x158   : > { %v2352_v41 = vpop.f32.mrf.mxu1  ;;  %2758 = vst [vmem:[%s4932_s21 + $0x20] sm:$0xff] %v2278_v40  ;;  %v2280_v42 = vadd.f32 %v2279_v26, %v5126_v33 }
 0x159   : > { %2760 = vst [vmem:[%s4932_s21 + $0x30] sm:$0xff] %v2351_v20  ;;  %v2353_v15 = vadd.f32 %v2352_v41, %v5131_v36  ;;  %v2281_v43 = vpop.f32.mrf.mxu0 }
 0x15a   : > { %v2354_v14 = vpop.f32.mrf.mxu1  ;;  %2759 = vst [vmem:[%s4932_s21 + $0x28] sm:$0xff] %v2280_v42  ;;  %v2282_v44 = vadd.f32 %v2281_v43, %v5116_v27 }
 0x15b   : > { %2761 = vst [vmem:[%s4932_s21 + $0x38] sm:$0xff] %v2353_v15  ;;  %v2355_v25 = vadd.f32 %v2354_v14, %v5121_v32  ;;  %v2283_v38 = vpop.f32.mrf.mxu0 }
 0x15c   : > { %v2356_v45 = vpop.f32.mrf.mxu1  ;;  %2776 = vst [vmem:[%s4932_s21 + $0xb0] sm:$0xff] %v2282_v44  ;;  %v2284_v46 = vadd.f32 %v2283_v38, %v5126_v33 }
 0x15d   : > { %2778 = vst [vmem:[%s4932_s21 + $0xc0] sm:$0xff] %v2355_v25  ;;  %v2357_v28 = vadd.f32 %v2356_v45, %v5131_v36  ;;  %2724 = vmatmul.mubr.bf16.gmra.mxu0 %v4958_v54  ;;  %v2287_v49 = vpop.f32.mrf.mxu0  ;;  %v5206_v45 = vld [vmem:[%s5453_s2 + $0x8] sm:$0xff] }
 0x15e   : > { %2744 = vmatmul.mubr.bf16.gmra.mxu1 %v5034_v47  ;;  %v2360_v50 = vpop.f32.mrf.mxu1  ;;  %2777 = vst [vmem:[%s4932_s21 + $0xb8] sm:$0xff] %v2284_v46  ;;  %v2288_v35 = vadd.f32 %v2287_v49, %v5116_v27 }
 0x15f   : > { %2779 = vst [vmem:[%s4932_s21 + $0xc8] sm:$0xff] %v2357_v28  ;;  %v2361_v52 = vadd.f32 %v2360_v50, %v5121_v32  ;;  %v2289_v53 = vpop.f32.mrf.mxu0 }
 0x160   : > { %v2362_v48 = vpop.f32.mrf.mxu1  ;;  %2794 = vst [vmem:[%s4932_s21 + $0x140] sm:$0xff] %v2288_v35  ;;  %v2290_v54 = vadd.f32 %v2289_v53, %v5126_v33 }
 0x161   : > { %2796 = vst [vmem:[%s4932_s21 + $0x150] sm:$0xff] %v2361_v52  ;;  %v2363_v47 = vadd.f32 %v2362_v48, %v5131_v36  ;;  %v2291_v55 = vpop.f32.mrf.mxu0 }
 0x162   : > { %v2364_v56 = vpop.f32.mrf.mxu1  ;;  %2795 = vst [vmem:[%s4932_s21 + $0x148] sm:$0xff] %v2290_v54  ;;  %v2292_v57 = vadd.f32 %v2291_v55, %v5116_v27 }
 0x163   : > { %2797 = vst [vmem:[%s4932_s21 + $0x158] sm:$0xff] %v2363_v47  ;;  %v2365_v58 = vadd.f32 %v2364_v56, %v5121_v32  ;;  %v2293_v59 = vpop.f32.mrf.mxu0 }
 0x164   : > { %v2366_v60 = vpop.f32.mrf.mxu1  ;;  %2812 = vst [vmem:[%s4932_s21 + $0x1d0] sm:$0xff] %v2292_v57  ;;  %v2294_v61 = vadd.f32 %v2293_v59, %v5126_v33 }
 0x165   : > { %2814 = vst [vmem:[%s4932_s21 + $0x1e0] sm:$0xff] %v2365_v58  ;;  %v2367_v62 = vadd.f32 %v2366_v60, %v5131_v36  ;;  %v2297_v51 = vpop.f32.mrf.mxu0 }
 0x166   : > { %v2370_v63 = vpop.f32.mrf.mxu1  ;;  %2813 = vst [vmem:[%s4932_s21 + $0x1d8] sm:$0xff] %v2294_v61  ;;  %v2298_v0 = vadd.f32 %v2297_v51, %v5116_v27 }
 0x167   : > { %2815 = vst [vmem:[%s4932_s21 + $0x1e8] sm:$0xff] %v2367_v62  ;;  %v2371_v1 = vadd.f32 %v2370_v63, %v5121_v32  ;;  %v2299_v2 = vpop.f32.mrf.mxu0 }
 0x168   : > { %v2372_v4 = vpop.f32.mrf.mxu1  ;;  %2830 = vst [vmem:[%s4932_s21 + $0x260] sm:$0xff] %v2298_v0  ;;  %v2300_v3 = vadd.f32 %v2299_v2, %v5126_v33 }
 0x169   : > { %2832 = vst [vmem:[%s4932_s21 + $0x270] sm:$0xff] %v2371_v1  ;;  %v2373_v31 = vadd.f32 %v2372_v4, %v5131_v36  ;;  %v2301_v11 = vpop.f32.mrf.mxu0 }
 0x16a   : > { %v2374_v34 = vpop.f32.mrf.mxu1  ;;  %2831 = vst [vmem:[%s4932_s21 + $0x268] sm:$0xff] %v2300_v3  ;;  %v2302_v5 = vadd.f32 %v2301_v11, %v5116_v27 }
 0x16b   : > { %2833 = vst [vmem:[%s4932_s21 + $0x278] sm:$0xff] %v2373_v31  ;;  %v2375_v6 = vadd.f32 %v2374_v34, %v5121_v32  ;;  %v2303_v7 = vpop.f32.mrf.mxu0 }
 0x16c   : > { %v2376_v8 = vpop.f32.mrf.mxu1  ;;  %2848 = vst [vmem:[%s4932_s21 + $0x2f0] sm:$0xff] %v2302_v5  ;;  %v2304_v9 = vadd.f32 %v2303_v7, %v5126_v33 }
 0x16d   : > { %2850 = vst [vmem:[%s4932_s21 + $0x300] sm:$0xff] %v2375_v6  ;;  %v2377_v10 = vadd.f32 %v2376_v8, %v5131_v36  ;;  %v2307_v12 = vpop.f32.mrf.mxu0 }
 0x16e   : > { %v2380_v13 = vpop.f32.mrf.mxu1  ;;  %2849 = vst [vmem:[%s4932_s21 + $0x2f8] sm:$0xff] %v2304_v9  ;;  %v2308_v16 = vadd.f32 %v2307_v12, %v5116_v27 }
 0x16f   : > { %2851 = vst [vmem:[%s4932_s21 + $0x308] sm:$0xff] %v2377_v10  ;;  %v2381_v37 = vadd.f32 %v2380_v13, %v5121_v32  ;;  %v2309_v39 = vpop.f32.mrf.mxu0 }
 0x170   : > { %v2382_v40 = vpop.f32.mrf.mxu1  ;;  %2866 = vst [vmem:[%s4932_s21 + $0x380] sm:$0xff] %v2308_v16  ;;  %v2310_v20 = vadd.f32 %v2309_v39, %v5126_v33 }
 0x171   : > { %2868 = vst [vmem:[%s4932_s21 + $0x390] sm:$0xff] %v2381_v37  ;;  %v2383_v26 = vadd.f32 %v2382_v40, %v5131_v36  ;;  %v2311_v41 = vpop.f32.mrf.mxu0 }
 0x172   : > { %v2384_v42 = vpop.f32.mrf.mxu1  ;;  %2867 = vst [vmem:[%s4932_s21 + $0x388] sm:$0xff] %v2310_v20  ;;  %v2312_v15 = vadd.f32 %v2311_v41, %v5116_v27  ;;  %v5210_v27 = vrot.slane %v5206_v45, %v4878_v23 }
 0x173   : > { %2869 = vst [vmem:[%s4932_s21 + $0x398] sm:$0xff] %v2383_v26  ;;  %v2385_v43 = vadd.f32 %v2384_v42, %v5121_v32  ;;  %v2313_v14 = vpop.f32.mrf.mxu0  ;;  %v5215_v32 = vrot.slane %v5206_v45, %v537_v24 }
 0x174   : > { %v2386_v44 = vpop.f32.mrf.mxu1  ;;  %2884 = vst [vmem:[%s4932_s21 + $0x410] sm:$0xff] %v2312_v15  ;;  %v2314_v25 = vadd.f32 %v2313_v14, %v5126_v33  ;;  %v5219_v33 = vrot.slane %v5206_v45, %v4890_v29 }
 0x175   : > { %2886 = vst [vmem:[%s4932_s21 + $0x420] sm:$0xff] %v2385_v43  ;;  %v2387_v38 = vadd.f32 %v2386_v44, %v5131_v36  ;;  %v5224_v36 = vrot.slane %v5206_v45, %v541_v30 }
 0x176   : > { %2885 = vst [vmem:[%s4932_s21 + $0x418] sm:$0xff] %v2314_v25 }
 0x177   : > { %2887 = vst [vmem:[%s4932_s21 + $0x428] sm:$0xff] %v2387_v38 }
 0x195   : > { %v2423_v46 = vpop.f32.mrf.mxu0 }
 0x196   : > { %v2496_v28 = vpop.f32.mrf.mxu1  ;;  %v2424_v49 = vadd.f32 %v2423_v46, %v5210_v27 }
 0x197   : > { %v2497_v50 = vadd.f32 %v2496_v28, %v5215_v32  ;;  %v2425_v24 = vpop.f32.mrf.mxu0 }
 0x198   : > { %v2498_v35 = vpop.f32.mrf.mxu1  ;;  %2762 = vst [vmem:[%s4932_s21 + $0x40] sm:$0xff] %v2424_v49  ;;  %v2426_v52 = vadd.f32 %v2425_v24, %v5219_v33 }
 0x199   : > { %2764 = vst [vmem:[%s4932_s21 + $0x50] sm:$0xff] %v2497_v50  ;;  %v2499_v53 = vadd.f32 %v2498_v35, %v5224_v36  ;;  %v2427_v30 = vpop.f32.mrf.mxu0 }
 0x19a   : > { %v2500_v48 = vpop.f32.mrf.mxu1  ;;  %2763 = vst [vmem:[%s4932_s21 + $0x48] sm:$0xff] %v2426_v52  ;;  %v2428_v54 = vadd.f32 %v2427_v30, %v5210_v27 }
 0x19b   : > { %2765 = vst [vmem:[%s4932_s21 + $0x58] sm:$0xff] %v2499_v53  ;;  %v2501_v47 = vadd.f32 %v2500_v48, %v5215_v32  ;;  %v2429_v55 = vpop.f32.mrf.mxu0 }
 0x19c   : > { %v2502_v56 = vpop.f32.mrf.mxu1  ;;  %2780 = vst [vmem:[%s4932_s21 + $0xd0] sm:$0xff] %v2428_v54  ;;  %v2430_v57 = vadd.f32 %v2429_v55, %v5219_v33  ;;  %v5293_v55 = vrot.slane %v5206_v45, %v545_v18 }
 0x19d   : > { %2782 = vst [vmem:[%s4932_s21 + $0xe0] sm:$0xff] %v2501_v47  ;;  %v2503_v58 = vadd.f32 %v2502_v56, %v5224_v36  ;;  %v2433_v59 = vpop.f32.mrf.mxu0 }
 0x19e   : > { %v2506_v60 = vpop.f32.mrf.mxu1  ;;  %2781 = vst [vmem:[%s4932_s21 + $0xd8] sm:$0xff] %v2430_v57  ;;  %v2434_v61 = vadd.f32 %v2433_v59, %v5210_v27 }
 0x19f   : > { %2783 = vst [vmem:[%s4932_s21 + $0xe8] sm:$0xff] %v2503_v58  ;;  %v2507_v62 = vadd.f32 %v2506_v60, %v5215_v32  ;;  %v2435_v51 = vpop.f32.mrf.mxu0 }
 0x1a0   : > { %v2508_v63 = vpop.f32.mrf.mxu1  ;;  %2798 = vst [vmem:[%s4932_s21 + $0x160] sm:$0xff] %v2434_v61  ;;  %v2436_v0 = vadd.f32 %v2435_v51, %v5219_v33 }
 0x1a1   : > { %2800 = vst [vmem:[%s4932_s21 + $0x170] sm:$0xff] %v2507_v62  ;;  %v2509_v1 = vadd.f32 %v2508_v63, %v5224_v36  ;;  %v2437_v2 = vpop.f32.mrf.mxu0 }
 0x1a2   : > { %v2510_v4 = vpop.f32.mrf.mxu1  ;;  %2799 = vst [vmem:[%s4932_s21 + $0x168] sm:$0xff] %v2436_v0  ;;  %v2438_v3 = vadd.f32 %v2437_v2, %v5210_v27 }
 0x1a3   : > { %2801 = vst [vmem:[%s4932_s21 + $0x178] sm:$0xff] %v2509_v1  ;;  %v2511_v31 = vadd.f32 %v2510_v4, %v5215_v32  ;;  %v2439_v11 = vpop.f32.mrf.mxu0 }
 0x1a4   : > { %v2512_v34 = vpop.f32.mrf.mxu1  ;;  %2816 = vst [vmem:[%s4932_s21 + $0x1f0] sm:$0xff] %v2438_v3  ;;  %v2440_v5 = vadd.f32 %v2439_v11, %v5219_v33 }
 0x1a5   : > { %2818 = vst [vmem:[%s4932_s21 + $0x200] sm:$0xff] %v2511_v31  ;;  %v2513_v6 = vadd.f32 %v2512_v34, %v5224_v36  ;;  %v2443_v7 = vpop.f32.mrf.mxu0 }
 0x1a6   : > { %v2516_v8 = vpop.f32.mrf.mxu1  ;;  %2817 = vst [vmem:[%s4932_s21 + $0x1f8] sm:$0xff] %v2440_v5  ;;  %v2444_v9 = vadd.f32 %v2443_v7, %v5210_v27 }
 0x1a7   : > { %2819 = vst [vmem:[%s4932_s21 + $0x208] sm:$0xff] %v2513_v6  ;;  %v2517_v10 = vadd.f32 %v2516_v8, %v5215_v32  ;;  %v2445_v12 = vpop.f32.mrf.mxu0 }
 0x1a8   : > { %v2518_v13 = vpop.f32.mrf.mxu1  ;;  %2834 = vst [vmem:[%s4932_s21 + $0x280] sm:$0xff] %v2444_v9  ;;  %v2446_v16 = vadd.f32 %v2445_v12, %v5219_v33 }
 0x1a9   : > { %2836 = vst [vmem:[%s4932_s21 + $0x290] sm:$0xff] %v2517_v10  ;;  %v2519_v37 = vadd.f32 %v2518_v13, %v5224_v36  ;;  %v2447_v39 = vpop.f32.mrf.mxu0 }
 0x1aa   : > { %v2520_v40 = vpop.f32.mrf.mxu1  ;;  %2835 = vst [vmem:[%s4932_s21 + $0x288] sm:$0xff] %v2446_v16  ;;  %v2448_v20 = vadd.f32 %v2447_v39, %v5210_v27 }
 0x1ab   : > { %2837 = vst [vmem:[%s4932_s21 + $0x298] sm:$0xff] %v2519_v37  ;;  %v2521_v26 = vadd.f32 %v2520_v40, %v5215_v32  ;;  %v2449_v41 = vpop.f32.mrf.mxu0 }
 0x1ac   : > { %v2522_v42 = vpop.f32.mrf.mxu1  ;;  %2852 = vst [vmem:[%s4932_s21 + $0x310] sm:$0xff] %v2448_v20  ;;  %v2450_v15 = vadd.f32 %v2449_v41, %v5219_v33 }
 0x1ad   : > { %2854 = vst [vmem:[%s4932_s21 + $0x320] sm:$0xff] %v2521_v26  ;;  %v2523_v43 = vadd.f32 %v2522_v42, %v5224_v36  ;;  %v2453_v14 = vpop.f32.mrf.mxu0 }
 0x1ae   : > { %v2526_v44 = vpop.f32.mrf.mxu1  ;;  %2853 = vst [vmem:[%s4932_s21 + $0x318] sm:$0xff] %v2450_v15  ;;  %v2454_v25 = vadd.f32 %v2453_v14, %v5210_v27 }
 0x1af   : > { %2855 = vst [vmem:[%s4932_s21 + $0x328] sm:$0xff] %v2523_v43  ;;  %v2527_v38 = vadd.f32 %v2526_v44, %v5215_v32  ;;  %v2455_v46 = vpop.f32.mrf.mxu0 }
 0x1b0   : > { %v2528_v28 = vpop.f32.mrf.mxu1  ;;  %2870 = vst [vmem:[%s4932_s21 + $0x3a0] sm:$0xff] %v2454_v25  ;;  %v2456_v49 = vadd.f32 %v2455_v46, %v5219_v33 }
 0x1b1   : > { %2872 = vst [vmem:[%s4932_s21 + $0x3b0] sm:$0xff] %v2527_v38  ;;  %v2529_v50 = vadd.f32 %v2528_v28, %v5224_v36  ;;  %v2457_v24 = vpop.f32.mrf.mxu0 }
 0x1b2   : > { %v2530_v35 = vpop.f32.mrf.mxu1  ;;  %2871 = vst [vmem:[%s4932_s21 + $0x3a8] sm:$0xff] %v2456_v49  ;;  %v2458_v52 = vadd.f32 %v2457_v24, %v5210_v27  ;;  %v5298_v27 = vrot.slane %v5206_v45, %v553_v19 }
 0x1b3   : > { %2873 = vst [vmem:[%s4932_s21 + $0x3b8] sm:$0xff] %v2529_v50  ;;  %v2531_v53 = vadd.f32 %v2530_v35, %v5215_v32  ;;  %v2459_v30 = vpop.f32.mrf.mxu0  ;;  %v5303_v32 = vrot.slane %v5206_v45, %v549_v21 }
 0x1b4   : > { %v2532_v48 = vpop.f32.mrf.mxu1  ;;  %2888 = vst [vmem:[%s4932_s21 + $0x430] sm:$0xff] %v2458_v52  ;;  %v2460_v54 = vadd.f32 %v2459_v30, %v5219_v33  ;;  %v5308_v33 = vrot.slane %v5206_v45, %v557_v22 }
 0x1b5   : > { %2890 = vst [vmem:[%s4932_s21 + $0x440] sm:$0xff] %v2531_v53  ;;  %v2533_v47 = vadd.f32 %v2532_v48, %v5224_v36 }
 0x1b6   : > { %2889 = vst [vmem:[%s4932_s21 + $0x438] sm:$0xff] %v2460_v54 }
 0x1b7   : > { %2891 = vst [vmem:[%s4932_s21 + $0x448] sm:$0xff] %v2533_v47 }
 0x1d5   : > { %v2569_v36 = vpop.f32.mrf.mxu0 }
 0x1d6   : > { %v2642_v18 = vpop.f32.mrf.mxu1  ;;  %v2570_v56 = vadd.f32 %v2569_v36, %v5293_v55 }
 0x1d7   : > { %v2643_v57 = vadd.f32 %v2642_v18, %v5298_v27  ;;  %v2571_v19 = vpop.f32.mrf.mxu0 }
 0x1d8   : > { %v2644_v58 = vpop.f32.mrf.mxu1  ;;  %2766 = vst [vmem:[%s4932_s21 + $0x60] sm:$0xff] %v2570_v56  ;;  %v2572_v21 = vadd.f32 %v2571_v19, %v5303_v32 }
 0x1d9   : > { %2768 = vst [vmem:[%s4932_s21 + $0x70] sm:$0xff] %v2643_v57  ;;  %v2645_v17 = vadd.f32 %v2644_v58, %v5308_v33  ;;  %v2573_v22 = vpop.f32.mrf.mxu0 }
 0x1da   : > { %v2646_v45 = vpop.f32.mrf.mxu1  ;;  %2767 = vst [vmem:[%s4932_s21 + $0x68] sm:$0xff] %v2572_v21  ;;  %v2574_v59 = vadd.f32 %v2573_v22, %v5293_v55  ;;  %v523_v21 = vld [vmem:[%s5453_s2 + $0x10] sm:$0x3] }
 0x1db   : > { %2769 = vst [vmem:[%s4932_s21 + $0x78] sm:$0xff] %v2645_v17  ;;  %v2647_v60 = vadd.f32 %v2646_v45, %v5298_v27  ;;  %v2575_v61 = vpop.f32.mrf.mxu0 }
 0x1dc   : > { %v2648_v62 = vpop.f32.mrf.mxu1  ;;  %2784 = vst [vmem:[%s4932_s21 + $0xf0] sm:$0xff] %v2574_v59  ;;  %v2576_v51 = vadd.f32 %v2575_v61, %v5303_v32 }
 0x1dd   : > { %2786 = vst [vmem:[%s4932_s21 + $0x100] sm:$0xff] %v2647_v60  ;;  %v2649_v63 = vadd.f32 %v2648_v62, %v5308_v33  ;;  %v2579_v0 = vpop.f32.mrf.mxu0 }
 0x1de   : > { %v2652_v1 = vpop.f32.mrf.mxu1  ;;  %2785 = vst [vmem:[%s4932_s21 + $0xf8] sm:$0xff] %v2576_v51  ;;  %v2580_v2 = vadd.f32 %v2579_v0, %v5293_v55 }
 0x1df   : > { %2787 = vst [vmem:[%s4932_s21 + $0x108] sm:$0xff] %v2649_v63  ;;  %v2653_v4 = vadd.f32 %v2652_v1, %v5298_v27  ;;  %v2581_v3 = vpop.f32.mrf.mxu0 }
 0x1e0   : > { %v2654_v31 = vpop.f32.mrf.mxu1  ;;  %2802 = vst [vmem:[%s4932_s21 + $0x180] sm:$0xff] %v2580_v2  ;;  %v2582_v11 = vadd.f32 %v2581_v3, %v5303_v32 }
 0x1e1   : > { %2804 = vst [vmem:[%s4932_s21 + $0x190] sm:$0xff] %v2653_v4  ;;  %v2655_v34 = vadd.f32 %v2654_v31, %v5308_v33  ;;  %v2583_v5 = vpop.f32.mrf.mxu0 }
 0x1e2   : > { %v2656_v6 = vpop.f32.mrf.mxu1  ;;  %2803 = vst [vmem:[%s4932_s21 + $0x188] sm:$0xff] %v2582_v11  ;;  %v2584_v7 = vadd.f32 %v2583_v5, %v5293_v55 }
 0x1e3   : > { %2805 = vst [vmem:[%s4932_s21 + $0x198] sm:$0xff] %v2655_v34  ;;  %v2657_v8 = vadd.f32 %v2656_v6, %v5298_v27  ;;  %v2585_v9 = vpop.f32.mrf.mxu0 }
 0x1e4   : > { %v2658_v10 = vpop.f32.mrf.mxu1  ;;  %2820 = vst [vmem:[%s4932_s21 + $0x210] sm:$0xff] %v2584_v7  ;;  %v2586_v12 = vadd.f32 %v2585_v9, %v5303_v32 }
 0x1e5   : > { %2822 = vst [vmem:[%s4932_s21 + $0x220] sm:$0xff] %v2657_v8  ;;  %v2659_v13 = vadd.f32 %v2658_v10, %v5308_v33  ;;  %v2589_v16 = vpop.f32.mrf.mxu0 }
 0x1e6   : > { %v2662_v37 = vpop.f32.mrf.mxu1  ;;  %2821 = vst [vmem:[%s4932_s21 + $0x218] sm:$0xff] %v2586_v12  ;;  %v2590_v39 = vadd.f32 %v2589_v16, %v5293_v55 }
 0x1e7   : > { %2823 = vst [vmem:[%s4932_s21 + $0x228] sm:$0xff] %v2659_v13  ;;  %v2663_v40 = vadd.f32 %v2662_v37, %v5298_v27  ;;  %v2591_v20 = vpop.f32.mrf.mxu0 }
 0x1e8   : > { %v2664_v26 = vpop.f32.mrf.mxu1  ;;  %2838 = vst [vmem:[%s4932_s21 + $0x2a0] sm:$0xff] %v2590_v39  ;;  %v2592_v41 = vadd.f32 %v2591_v20, %v5303_v32 }
 0x1e9   : > { %2840 = vst [vmem:[%s4932_s21 + $0x2b0] sm:$0xff] %v2663_v40  ;;  %v2665_v42 = vadd.f32 %v2664_v26, %v5308_v33  ;;  %v2593_v15 = vpop.f32.mrf.mxu0 }
 0x1ea   : > { %v2666_v43 = vpop.f32.mrf.mxu1  ;;  %2839 = vst [vmem:[%s4932_s21 + $0x2a8] sm:$0xff] %v2592_v41  ;;  %v2594_v14 = vadd.f32 %v2593_v15, %v5293_v55 }
 0x1eb   : > { %2841 = vst [vmem:[%s4932_s21 + $0x2b8] sm:$0xff] %v2665_v42  ;;  %v2667_v44 = vadd.f32 %v2666_v43, %v5298_v27  ;;  %v2595_v25 = vpop.f32.mrf.mxu0 }
 0x1ec   : > { %v2668_v38 = vpop.f32.mrf.mxu1  ;;  %2856 = vst [vmem:[%s4932_s21 + $0x330] sm:$0xff] %v2594_v14  ;;  %v2596_v46 = vadd.f32 %v2595_v25, %v5303_v32 }
 0x1ed   : > { %2858 = vst [vmem:[%s4932_s21 + $0x340] sm:$0xff] %v2667_v44  ;;  %v2669_v28 = vadd.f32 %v2668_v38, %v5308_v33  ;;  %v2599_v49 = vpop.f32.mrf.mxu0 }
 0x1ee   : > { %v2672_v50 = vpop.f32.mrf.mxu1  ;;  %2857 = vst [vmem:[%s4932_s21 + $0x338] sm:$0xff] %v2596_v46  ;;  %v2600_v24 = vadd.f32 %v2599_v49, %v5293_v55 }
 0x1ef   : > { %2859 = vst [vmem:[%s4932_s21 + $0x348] sm:$0xff] %v2669_v28  ;;  %v2673_v35 = vadd.f32 %v2672_v50, %v5298_v27  ;;  %v2601_v52 = vpop.f32.mrf.mxu0 }
 0x1f0   : > { %v2674_v53 = vpop.f32.mrf.mxu1  ;;  %2874 = vst [vmem:[%s4932_s21 + $0x3c0] sm:$0xff] %v2600_v24  ;;  %v2602_v30 = vadd.f32 %v2601_v52, %v5303_v32 }
 0x1f1   : > { %2876 = vst [vmem:[%s4932_s21 + $0x3d0] sm:$0xff] %v2673_v35  ;;  %v2675_v48 = vadd.f32 %v2674_v53, %v5308_v33  ;;  %v2603_v54 = vpop.f32.mrf.mxu0 }
 0x1f2   : > { %v2676_v47 = vpop.f32.mrf.mxu1  ;;  %2875 = vst [vmem:[%s4932_s21 + $0x3c8] sm:$0xff] %v2602_v30  ;;  %v2604_v36 = vadd.f32 %v2603_v54, %v5293_v55  ;;  %v594_v55 = vrot.slane %v523_v21, %v4878_v23 }
 0x1f3   : > { %2877 = vst [vmem:[%s4932_s21 + $0x3d8] sm:$0xff] %v2675_v48  ;;  %v2677_v18 = vadd.f32 %v2676_v47, %v5298_v27  ;;  %v2605_v56 = vpop.f32.mrf.mxu0  ;;  %v598_v27 = vrot.slane %v523_v21, %v4890_v29 }
 0x1f4   : > { %v2678_v57 = vpop.f32.mrf.mxu1  ;;  %2892 = vst [vmem:[%s4932_s21 + $0x450] sm:$0xff] %v2604_v36  ;;  %v2606_v19 = vadd.f32 %v2605_v56, %v5303_v32 }
 0x1f5   : > { %2894 = vst [vmem:[%s4932_s21 + $0x460] sm:$0xff] %v2677_v18  ;;  %v2679_v58 = vadd.f32 %v2678_v57, %v5308_v33 }
 0x1f6   : > { %2893 = vst [vmem:[%s4932_s21 + $0x458] sm:$0xff] %v2606_v19 }
 0x1f7   : > { %2895 = vst [vmem:[%s4932_s21 + $0x468] sm:$0xff] %v2679_v58 }
 0x215   : > { %v2715_v17 = vpop.f32.mrf.mxu0 }
 0x216   : > { %v2735_v22 = vpop.f32.mrf.mxu1  ;;  %v2716_v45 = vadd.f32 %v2715_v17, %v594_v55 }
 0x217   : > { %v2736_v59 = vadd.f32 %v2735_v22, %v594_v55  ;;  %v2717_v32 = vpop.f32.mrf.mxu0 }
 0x218   : > { %v2737_v33 = vpop.f32.mrf.mxu1  ;;  %2770 = vst [vmem:[%s4932_s21 + $0x80] sm:$0xff] %v2716_v45  ;;  %v2718_v60 = vadd.f32 %v2717_v32, %v598_v27 }
 0x219   : > { %2842 = vst [vmem:[%s4932_s21 + $0x2c0] sm:$0xff] %v2736_v59  ;;  %v2738_v61 = vadd.f32 %v2737_v33, %v598_v27  ;;  %v2719_v62 = vpop.f32.mrf.mxu0 }
 0x21a   : > { %v2739_v51 = vpop.f32.mrf.mxu1  ;;  %2771 = vst [vmem:[%s4932_s21 + $0x88] sm:$0xff] %v2718_v60  ;;  %v2720_v23 = vadd.f32 %v2719_v62, %v594_v55 }
 0x21b   : > { %2843 = vst [vmem:[%s4932_s21 + $0x2c8] sm:$0xff] %v2738_v61  ;;  %v2740_v29 = vadd.f32 %v2739_v51, %v594_v55  ;;  %v2721_v63 = vpop.f32.mrf.mxu0 }
 0x21c   : > { %v2741_v0 = vpop.f32.mrf.mxu1  ;;  %2788 = vst [vmem:[%s4932_s21 + $0x110] sm:$0xff] %v2720_v23  ;;  %v2722_v1 = vadd.f32 %v2721_v63, %v598_v27 }
 0x21d   : > { %2860 = vst [vmem:[%s4932_s21 + $0x350] sm:$0xff] %v2740_v29  ;;  %v2742_v2 = vadd.f32 %v2741_v0, %v598_v27  ;;  %v2725_v4 = vpop.f32.mrf.mxu0 }
 0x21e   : > { %v2745_v3 = vpop.f32.mrf.mxu1  ;;  %2789 = vst [vmem:[%s4932_s21 + $0x118] sm:$0xff] %v2722_v1  ;;  %v2726_v31 = vadd.f32 %v2725_v4, %v594_v55 }
 0x21f   : > { %2861 = vst [vmem:[%s4932_s21 + $0x358] sm:$0xff] %v2742_v2  ;;  %v2746_v11 = vadd.f32 %v2745_v3, %v594_v55  ;;  %v2727_v34 = vpop.f32.mrf.mxu0 }
 0x220   : > { %v2747_v5 = vpop.f32.mrf.mxu1  ;;  %2806 = vst [vmem:[%s4932_s21 + $0x1a0] sm:$0xff] %v2726_v31  ;;  %v2728_v6 = vadd.f32 %v2727_v34, %v598_v27 }
 0x221   : > { %2878 = vst [vmem:[%s4932_s21 + $0x3e0] sm:$0xff] %v2746_v11  ;;  %v2748_v7 = vadd.f32 %v2747_v5, %v598_v27  ;;  %v2729_v8 = vpop.f32.mrf.mxu0 }
 0x222   : > { %v2749_v9 = vpop.f32.mrf.mxu1  ;;  %2807 = vst [vmem:[%s4932_s21 + $0x1a8] sm:$0xff] %v2728_v6  ;;  %v2730_v10 = vadd.f32 %v2729_v8, %v594_v55 }
 0x223   : > { %2879 = vst [vmem:[%s4932_s21 + $0x3e8] sm:$0xff] %v2748_v7  ;;  %v2750_v12 = vadd.f32 %v2749_v9, %v594_v55  ;;  %v2731_v13 = vpop.f32.mrf.mxu0 }
 0x224   : > { %v2751_v16 = vpop.f32.mrf.mxu1  ;;  %2824 = vst [vmem:[%s4932_s21 + $0x230] sm:$0xff] %v2730_v10  ;;  %v2732_v37 = vadd.f32 %v2731_v13, %v598_v27 }
 0x225   : > { %2896 = vst [vmem:[%s4932_s21 + $0x470] sm:$0xff] %v2750_v12  ;;  %v2752_v39 = vadd.f32 %v2751_v16, %v598_v27 }
 0x226   : > { %2825 = vst [vmem:[%s4932_s21 + $0x238] sm:$0xff] %v2732_v37 }
 0x227   : > { %2897 = vst [vmem:[%s4932_s21 + $0x478] sm:$0xff] %v2752_v39 }
 0x228   : > { %3879 = shalt.err (!%p3876_p5)
}
 0x229   : > { %s3880_s11 = scalar_lea.hbm %s5396_s27, 18432  ;;  %s3884_s6 = scalar_lea.hbm %s5454_s3, 36864 }
 0x22a   : > { %p3881_p6 = scmp.ne.s32.totalorder %s5396_s27, %s3880_s11  ;;  %p3885_p10 = scmp.lt.s32.totalorder %s5396_s27, %s5454_s3 }
 0x22b   : > { %p3886_p11 = scmp.lt.s32.totalorder %s3884_s6, %s3880_s11 }
 0x22c   : > { %p3882_p7 = pnand %p3881_p6, %p4007_p4 }
 0x22d   : > { %p3887_p12 = por %p3886_p11, %p3885_p10 }
 0x22e   : > { %p3883_p9 = pneg %p3882_p7 }
 0x230   : > { %p3888_p13 = pnand %p3887_p12, %p3883_p9 }
 0x232   : > { %3891 = shalt.err (!%p3888_p13)
}
 0x233   : > { %s3945_s10 = smov 2304   ;;  %s3946_s18 = smov 144  }
 0x234   : > { %3357 = dma.vmem_to_hbm [thread:$0]  (%p4007_p4), %s5398_s23, 18432, %s5396_s27, %s5406_s28, %s3945_s10, %s3945_s10, %s3946_s18  }
 0x235 PF: > { %p3363_p0 = scmp.ge.s32.totalorder %s3942_s17, 2  ;;  %s2929_s19 = sand.u32 1, %s3922_s12  }
 0x236   : > { %s2930_s15 = scalar_lea.sflag [#allocation3], %s2929_s19 }
 0x237   : > { %p3360_p1 = pnand %p3363_p0, %p4014_p8 }
 0x239   : > { %p3361_p2 = pneg %p3360_p1 }
 0x23b   : > { %3917 = dma.done.wait (%p3361_p2), %s2930_s15, 18432  }
 0x23c   : > { %3919 = vsyncadd (%p3361_p2), %s2930_s15, 4294948864  ;;  %s16_s17 = sadd.s32 1, %s3942_s17   ;;  %s5457_s12 = smov %s3926_s13 }
 0x23d   : > { %p13_p3 = scmp.ge.s32.totalorder %s16_s17, 4   ;;  %s5458_s13 = smov %s3930_s14 }
 0x23e   : > { %s5459_s14 = smov %s4020_s25  ;;  %s5460_s15 = smov %s3938_s16 }
 0x23f   : > { %s5461_s16 = smov %s5463_s20  ;;  %15 = sbr.rel (!%p13_p3) target bundleno = 4 (0x4), region = 73 }
 0x244   :  { %2935 = vsyncpa [#allocation3], 1 }
 0x245   :  { %2937 = vsyncpa [#allocation3 + $0x1], 1 }

</bundles_post_ra>
